<compile_context>
chip_gen: v7x
topology: tpu7x:2x2x1
jax: 0.10.0
libtpu: 0.0.40
codegen_flags: <defaults>
</compile_context>

<pallas_src>
import jax
import jax.numpy as jnp
from jax import lax
from jax.experimental import pallas as pl
from jax.experimental.pallas import tpu as pltpu


def _make_aspp_kernel(H, W, Cp, K, dil, pad, halo_w):
    HW = H * W
    Hh = H + 2 * pad
    Wh = W + 2 * pad

    def kernel(x_ref, wf_ref, b1_ref, w2c_ref, w3c_ref, bt_ref, o_ref, halo_ref):
        # One grid step == one batch image; all slabs are lane-dense (last dim
        # = Cp, multiple of 128).  Matmul inputs are bf16, accumulation f32.
        x = x_ref[0]                                                # (HW, Cp) bf16

        # ---- branch 1 (+ its concate_conv slice), fused wide-N matmul -------
        fused = jnp.dot(x, wf_ref[...],
                        preferred_element_type=jnp.float32)         # (HW, 2*Cp)
        y1 = fused[:, :Cp] + b1_ref[...]          # conv_1 output (feeds conv_2)
        out = fused[:, Cp:]                       # x @ (W1 @ wc1); b1@wc1 is in Btot

        # ---- branch 2: zero-halo scratch (border-only zeroing) + per-tap dots
        zrow = jnp.zeros((pad, halo_w, Cp), halo_ref.dtype)
        halo_ref[0:pad, :, :] = zrow
        halo_ref[Hh - pad:Hh, :, :] = zrow
        zcol = jnp.zeros((H, pad, Cp), halo_ref.dtype)
        halo_ref[pad:pad + H, 0:pad, :] = zcol
        halo_ref[pad:pad + H, pad + W:Wh, :] = zcol
        halo_ref[pad:pad + H, pad:pad + W, :] = (
            y1.reshape(H, W, Cp).astype(halo_ref.dtype))

        # K*K accumulating dots (no im2col temporary).  w2c already has
        # diag(s2) @ wc[Cin:2Cin] folded in.
        for ki in range(K):
            for kj in range(K):
                tap = ki * K + kj
                win = halo_ref[ki * dil:ki * dil + H,
                               kj * dil:kj * dil + W, :]             # (H, W, Cp)
                out = out + jnp.dot(win.reshape(HW, Cp), w2c_ref[tap],
                                    preferred_element_type=jnp.float32)

        # ---- branch 3: global avg-pool -> bilinear(1x1 -> HxW) == constant --
        gavg = jnp.mean(x.astype(jnp.float32), axis=0, keepdims=True)  # (1, Cp)
        y3 = jnp.dot(gavg.astype(x.dtype), w3c_ref[...],
                     preferred_element_type=jnp.float32)                # (1, Cp)

        # ---- fused bias add + store ------------------------------------------
        o_ref[0] = (out + y3 + bt_ref[...]).astype(o_ref.dtype)

    return kernel


def _pad2(m, rows, cols, dtype=jnp.float32):
    m = jnp.asarray(m, jnp.float32)
    out = jnp.zeros((rows, cols), jnp.float32).at[:m.shape[0], :m.shape[1]].set(m)
    return out.astype(dtype)


def aspp_forward(x_nhwc, params, *, kernel_size, padding, dilation):
    N, H, W, Cin = x_nhwc.shape
    Cout = params["w2"].shape[-1]
    K = kernel_size
    # Required for channel consistency of the torch module (concat is 3*Cin).
    assert Cout == Cin, "concate_conv expects out_channels == in_channels"
    assert padding == dilation * (kernel_size - 1) // 2, "conv_2 must be 'same'"

    HW = H * W
    # Lane-dense channel width.  NOTE: for tiny Cin (like the test's 8) most of
    # the padded lanes are zeros; at production ASPP widths (>=128) this cost
    # vanishes.  Dispatching small-channel cases to a repacked layout is a
    # wrapper-level decision and intentionally not done here.
    Cp = ((max(Cin, Cout) + 127) // 128) * 128
    f32, bf16 = jnp.float32, jnp.bfloat16

    w1 = params["w1"].astype(f32); s1 = params["s1"].astype(f32); b1 = params["b1"].astype(f32)
    w2 = params["w2"].astype(f32); s2 = params["s2"].astype(f32); b2 = params["b2"].astype(f32)
    w3 = params["w3"].astype(f32); s3 = params["s3"].astype(f32); b3 = params["b3"].astype(f32)
    wc = params["wc"].astype(f32); bc = params["bc"].astype(f32)

    wc1, wc2, wc3 = wc[:Cin], wc[Cin:2 * Cin], wc[2 * Cin:]

    # Fold BN1 into the 1x1 weight; fuse branch-1's concate_conv slice so the
    # kernel does one (Cp, 2*Cp) matmul instead of two serial (Cp, Cp) dots.
    W1f = w1 * s1                                          # (Cin, Cin)
    Wfused = jnp.concatenate(
        [_pad2(W1f, Cp, Cp), _pad2(W1f @ wc1, Cp, Cp)], axis=1).astype(bf16)  # (Cp, 2Cp)
    B1p = _pad2(b1, 1, Cp, f32)                            # (1, Cp) f32 bias

    # Fold BN2 scale + the branch-2 slice of concate_conv into the KxK weight,
    # laid out per tap: (K*K, Cp, Cp).
    M2 = s2.reshape(Cout, 1) * wc2                         # diag(s2) @ wc2
    w2c = jnp.einsum("klio,oc->klic", w2, M2)              # (K, K, Cin, Cout)
    W2cp = (jnp.zeros((K, K, Cp, Cp), f32)
            .at[:, :, :Cin, :Cout].set(w2c)
            .reshape(K * K, Cp, Cp)
            .astype(bf16))

    # Fold BN3 + branch-3 slice of concate_conv (applied to the pooled vector).
    W3cp = _pad2((w3 * s3) @ wc3, Cp, Cp, bf16)            # (Cp, Cp)
    # All-branch fused bias (f32): bc + b1@wc1 + b2@wc2 + b3@wc3.
    Btot = _pad2(bc + b1 @ wc1 + b2 @ wc2 + b3 @ wc3, 1, Cp, f32)

    # Lane-dense bf16 input slab: (N, H*W, Cp), channel zero-padded.
    xp = jnp.pad(x_nhwc.astype(f32),
                 ((0, 0), (0, 0), (0, 0), (0, Cp - Cin))
                 ).reshape(N, HW, Cp).astype(bf16)

    # Halo scratch: sublane axis padded to a multiple of 16 (bf16 packing).
    Hh = H + 2 * padding
    Wh = W + 2 * padding
    halo_w = ((Wh + 15) // 16) * 16

    kern = _make_aspp_kernel(H, W, Cp, K, dilation, padding, halo_w)

    # Explicit VMEM budget from the actual buffer sum (with headroom).
    x_blk = HW * Cp * 2                      # bf16 input block
    o_blk = HW * Cp * 4                      # f32 output block
    w_bytes = (Cp * 2 * Cp + K * K * Cp * Cp + Cp * Cp) * 2 + 2 * Cp * 4
    halo_bytes = Hh * halo_w * Cp * 2
    tmp_bytes = HW * 2 * Cp * 4 + 3 * HW * Cp * 4
    needed = 2 * x_blk + 2 * o_blk + 2 * w_bytes + halo_bytes + tmp_bytes
    vmem_limit = int(min(128 * 1024 * 1024,
                         max(32 * 1024 * 1024, int(needed * 1.5))))

    flops = N * (2 * HW * Cp * (2 * Cp) + 2 * HW * Cp * Cp * K * K + 2 * Cp * Cp)
    bytes_accessed = (N * (x_blk + o_blk) + w_bytes)

    out_p = pl.pallas_call(
        kern,
        out_shape=jax.ShapeDtypeStruct((N, HW, Cp), x_nhwc.dtype),
        grid=(N,),
        in_specs=[
            pl.BlockSpec((1, HW, Cp), lambda n: (n, 0, 0)),        # x (bf16)
            pl.BlockSpec((Cp, 2 * Cp), lambda n: (0, 0)),          # [W1 | W1@wc1] (bf16)
            pl.BlockSpec((1, Cp), lambda n: (0, 0)),               # b1 (f32)
            pl.BlockSpec((K * K, Cp, Cp), lambda n: (0, 0, 0)),    # per-tap W2c (bf16)
            pl.BlockSpec((Cp, Cp), lambda n: (0, 0)),              # W3c (bf16)
            pl.BlockSpec((1, Cp), lambda n: (0, 0)),               # fused bias (f32)
        ],
        out_specs=pl.BlockSpec((1, HW, Cp), lambda n: (n, 0, 0)),
        scratch_shapes=[
            pltpu.VMEM((Hh, halo_w, Cp), jnp.bfloat16),
        ],
        compiler_params=pltpu.CompilerParams(
            dimension_semantics=("parallel",),
            vmem_limit_bytes=vmem_limit),
        cost_estimate=pl.CostEstimate(flops=int(flops), transcendentals=0,
                                      bytes_accessed=int(bytes_accessed)),
    )(xp, Wfused, B1p, W2cp, W3cp, Btot)

    return out_p[..., :Cout].reshape(N, H, W, Cout)


def aspp_reference(x, p, *, kernel_size, padding, dilation):
    """Pure-JAX NHWC reference (mirrors the PyTorch forward in eval mode)."""
    dn = ("NHWC", "HWIO", "NHWC")

    def conv1x1(a, w):  # w: (Cin, Cout)
        return lax.conv_general_dilated(a, w[None, None], (1, 1), "VALID",
                                        dimension_numbers=dn)

    y1 = conv1x1(x, p["w1"]) * p["s1"] + p["b1"]
    y2 = lax.conv_general_dilated(
        y1, p["w2"], (1, 1), ((padding, padding), (padding, padding)),
        rhs_dilation=(dilation, dilation), dimension_numbers=dn)
    y2 = y2 * p["s2"] + p["b2"]
    g = jnp.mean(x, axis=(1, 2), keepdims=True)                  # (N,1,1,Cin)
    y3 = conv1x1(g, p["w3"]) * p["s3"] + p["b3"]                 # (N,1,1,Cin)
    y3 = jnp.broadcast_to(y3, y1.shape)                          # bilinear(1x1) == const
    ycat = jnp.concatenate([y1, y2, y3], axis=-1)
    return conv1x1(ycat, p["wc"]) + p["bc"]


if __name__ == "__main__":
    # Small shapes: batch=2, in_channels=out_channels=8, spatial=16x16,
    # kernel_size=3, dilation=2, padding=2 ("same").
    N, H, W, Cin = 2, 16, 16, 8
    Cout = Cin
    K, dil = 3, 2
    pad = dil * (K - 1) // 2
    eps = 1e-5

    keys = jax.random.split(jax.random.PRNGKey(0), 18)

    def bn_fold(kg, kb, km, kv, C):
        gamma = 1.0 + 0.1 * jax.random.normal(kg, (C,), jnp.float32)
        beta = 0.1 * jax.random.normal(kb, (C,), jnp.float32)
        mean = 0.1 * jax.random.normal(km, (C,), jnp.float32)
        var = jnp.abs(1.0 + 0.1 * jax.random.normal(kv, (C,), jnp.float32))
        scale = gamma / jnp.sqrt(var + eps)
        bias = beta - mean * scale
        return scale[None, :], bias[None, :]

    s1, b1 = bn_fold(keys[1], keys[2], keys[3], keys[4], Cin)
    s2, b2 = bn_fold(keys[6], keys[7], keys[8], keys[9], Cout)
    s3, b3 = bn_fold(keys[11], keys[12], keys[13], keys[14], Cin)

    params = dict(
        w1=0.1 * jax.random.normal(keys[0], (Cin, Cin), jnp.float32),
        s1=s1, b1=b1,
        w2=0.1 * jax.random.normal(keys[5], (K, K, Cin, Cout), jnp.float32),
        s2=s2, b2=b2,
        w3=0.1 * jax.random.normal(keys[10], (Cin, Cin), jnp.float32),
        s3=s3, b3=b3,
        wc=0.1 * jax.random.normal(keys[15], (3 * Cin, Cout), jnp.float32),
        bc=0.1 * jax.random.normal(keys[16], (1, Cout), jnp.float32),
    )

    x = jax.random.normal(keys[17], (N, H, W, Cin), jnp.float32)  # NHWC

    out = aspp_forward(x, params, kernel_size=K, padding=pad, dilation=dil)
    out = jax.block_until_ready(out)

    ref = aspp_reference(x, params, kernel_size=K, padding=pad, dilation=dil)
    assert out.shape == (N, H, W, Cout)
    # bf16 matmul inputs with f32 accumulation -> slightly looser tolerance.
    assert jnp.allclose(out, ref, rtol=2e-2, atol=2e-2), (
        float(jnp.max(jnp.abs(out - ref))))

    print("KERNEL_OK")
</pallas_src>

<mosaic_0001>
module attributes {stable_mosaic.version = 11 : i64} {
  func.func @kernel(%arg0: i32, %arg1: memref<1x256x128xbf16, #tpu.memory_space<vmem>>, %arg2: memref<128x256xbf16, #tpu.memory_space<vmem>>, %arg3: memref<1x128xf32, #tpu.memory_space<vmem>>, %arg4: memref<9x128x128xbf16, #tpu.memory_space<vmem>>, %arg5: memref<128x128xbf16, #tpu.memory_space<vmem>>, %arg6: memref<1x128xf32, #tpu.memory_space<vmem>>, %arg7: memref<1x256x128xf32, #tpu.memory_space<vmem>>, %arg8: memref<20x32x128xbf16, #tpu.memory_space<vmem>>) attributes {dimension_semantics = [#tpu.dimension_semantics<parallel>], iteration_bounds = array<i64: 2>, scalar_prefetch = 0 : i64, scratch_operands = 1 : i64, tpu.core_type = #tpu.core_type<tc>, window_params = [{transform_indices = @transform_0, window_bounds = array<i64: 1, 256, 128>}, {pipeline_mode = #tpu.pipeline_mode<synchronous>, transform_indices = @transform_1, window_bounds = array<i64: 128, 256>}, {pipeline_mode = #tpu.pipeline_mode<synchronous>, transform_indices = @transform_2, window_bounds = array<i64: 1, 128>}, {pipeline_mode = #tpu.pipeline_mode<synchronous>, transform_indices = @transform_3, window_bounds = array<i64: 9, 128, 128>}, {pipeline_mode = #tpu.pipeline_mode<synchronous>, transform_indices = @transform_4, window_bounds = array<i64: 128, 128>}, {pipeline_mode = #tpu.pipeline_mode<synchronous>, transform_indices = @transform_5, window_bounds = array<i64: 1, 128>}, {transform_indices = @transform_6, window_bounds = array<i64: 1, 256, 128>}]} {
    %c0 = arith.constant 0 : index
    %c0_0 = arith.constant 0 : index
    %c0_1 = arith.constant 0 : index
    %0 = vector.load %arg1[%c0, %c0_0, %c0_1] : memref<1x256x128xbf16, #tpu.memory_space<vmem>>, vector<1x256x128xbf16>
    %1 = vector.shape_cast %0 : vector<1x256x128xbf16> to vector<256x128xbf16>
    %c0_2 = arith.constant 0 : index
    %c0_3 = arith.constant 0 : index
    %2 = vector.load %arg2[%c0_2, %c0_3] : memref<128x256xbf16, #tpu.memory_space<vmem>>, vector<128x256xbf16>
    %cst = arith.constant dense<0.000000e+00> : vector<256x256xf32>
    %3 = tpu.matmul %1, %2, %cst {dimension_numbers = #tpu.dot_dimension_numbers<[1], [0], [0], [1], [0, 0, 1, 1], [], []>} : vector<256x128xbf16>, vector<128x256xbf16>, vector<256x256xf32> -> vector<256x256xf32>
    %4 = vector.extract_strided_slice %3 {offsets = [0, 0], sizes = [256, 128], strides = [1, 1]} : vector<256x256xf32> to vector<256x128xf32>
    %c0_4 = arith.constant 0 : index
    %c0_5 = arith.constant 0 : index
    %5 = vector.load %arg3[%c0_4, %c0_5] : memref<1x128xf32, #tpu.memory_space<vmem>>, vector<1x128xf32>
    %6 = vector.broadcast %5 : vector<1x128xf32> to vector<256x128xf32>
    %7 = arith.addf %4, %6 : vector<256x128xf32>
    %8 = vector.extract_strided_slice %3 {offsets = [0, 128], sizes = [256, 128], strides = [1, 1]} : vector<256x256xf32> to vector<256x128xf32>
    %cst_6 = arith.constant 0.000000e+00 : bf16
    %9 = vector.broadcast %cst_6 : bf16 to vector<2x32x128xbf16>
    %c0_7 = arith.constant 0 : index
    %c0_8 = arith.constant 0 : index
    %c0_9 = arith.constant 0 : index
    %10 = vector.load %arg8[%c0_7, %c0_8, %c0_9] : memref<20x32x128xbf16, #tpu.memory_space<vmem>>, vector<2x32x128xbf16>
    tpu.vector_store %arg8[%c0_7, %c0_8, %c0_9], %9 {strides = array<i32>} : memref<20x32x128xbf16, #tpu.memory_space<vmem>>, vector<2x32x128xbf16>,
    %c18 = arith.constant 18 : index
    %c0_10 = arith.constant 0 : index
    %c0_11 = arith.constant 0 : index
    %11 = vector.load %arg8[%c18, %c0_10, %c0_11] : memref<20x32x128xbf16, #tpu.memory_space<vmem>>, vector<2x32x128xbf16>
    tpu.vector_store %arg8[%c18, %c0_10, %c0_11], %9 {strides = array<i32>} : memref<20x32x128xbf16, #tpu.memory_space<vmem>>, vector<2x32x128xbf16>,
    %cst_12 = arith.constant 0.000000e+00 : bf16
    %12 = vector.broadcast %cst_12 : bf16 to vector<16x2x128xbf16>
    %c2 = arith.constant 2 : index
    %c0_13 = arith.constant 0 : index
    %c0_14 = arith.constant 0 : index
    %13 = vector.load %arg8[%c2, %c0_13, %c0_14] : memref<20x32x128xbf16, #tpu.memory_space<vmem>>, vector<16x2x128xbf16>
    tpu.vector_store %arg8[%c2, %c0_13, %c0_14], %12 {strides = array<i32>} : memref<20x32x128xbf16, #tpu.memory_space<vmem>>, vector<16x2x128xbf16>,
    %c2_15 = arith.constant 2 : index
    %c18_16 = arith.constant 18 : index
    %c0_17 = arith.constant 0 : index
    %14 = vector.load %arg8[%c2_15, %c18_16, %c0_17] : memref<20x32x128xbf16, #tpu.memory_space<vmem>>, vector<16x2x128xbf16>
    tpu.vector_store %arg8[%c2_15, %c18_16, %c0_17], %12 {strides = array<i32>} : memref<20x32x128xbf16, #tpu.memory_space<vmem>>, vector<16x2x128xbf16>,
    %15 = vector.shape_cast %7 : vector<256x128xf32> to vector<16x16x128xf32>
    %16 = arith.truncf %15 : vector<16x16x128xf32> to vector<16x16x128xbf16>
    %c2_18 = arith.constant 2 : index
    %c2_19 = arith.constant 2 : index
    %c0_20 = arith.constant 0 : index
    %17 = vector.load %arg8[%c2_18, %c2_19, %c0_20] : memref<20x32x128xbf16, #tpu.memory_space<vmem>>, vector<16x16x128xbf16>
    tpu.vector_store %arg8[%c2_18, %c2_19, %c0_20], %16 {strides = array<i32>} : memref<20x32x128xbf16, #tpu.memory_space<vmem>>, vector<16x16x128xbf16>,
    %c0_21 = arith.constant 0 : index
    %c0_22 = arith.constant 0 : index
    %c0_23 = arith.constant 0 : index
    %18 = vector.load %arg8[%c0_21, %c0_22, %c0_23] : memref<20x32x128xbf16, #tpu.memory_space<vmem>>, vector<16x16x128xbf16>
    %19 = vector.shape_cast %18 : vector<16x16x128xbf16> to vector<256x128xbf16>
    %c0_24 = arith.constant 0 : index
    %c0_25 = arith.constant 0 : index
    %c0_26 = arith.constant 0 : index
    %20 = vector.load %arg4[%c0_24, %c0_25, %c0_26] : memref<9x128x128xbf16, #tpu.memory_space<vmem>>, vector<1x128x128xbf16>
    %21 = vector.shape_cast %20 : vector<1x128x128xbf16> to vector<128x128xbf16>
    %cst_27 = arith.constant dense<0.000000e+00> : vector<256x128xf32>
    %22 = tpu.matmul %19, %21, %cst_27 {dimension_numbers = #tpu.dot_dimension_numbers<[1], [0], [0], [1], [0, 0, 1, 1], [], []>} : vector<256x128xbf16>, vector<128x128xbf16>, vector<256x128xf32> -> vector<256x128xf32>
    %23 = arith.addf %8, %22 : vector<256x128xf32>
    %c0_28 = arith.constant 0 : index
    %c2_29 = arith.constant 2 : index
    %c0_30 = arith.constant 0 : index
    %24 = vector.load %arg8[%c0_28, %c2_29, %c0_30] : memref<20x32x128xbf16, #tpu.memory_space<vmem>>, vector<16x16x128xbf16>
    %25 = vector.shape_cast %24 : vector<16x16x128xbf16> to vector<256x128xbf16>
    %c1 = arith.constant 1 : index
    %c0_31 = arith.constant 0 : index
    %c0_32 = arith.constant 0 : index
    %26 = vector.load %arg4[%c1, %c0_31, %c0_32] : memref<9x128x128xbf16, #tpu.memory_space<vmem>>, vector<1x128x128xbf16>
    %27 = vector.shape_cast %26 : vector<1x128x128xbf16> to vector<128x128xbf16>
    %cst_33 = arith.constant dense<0.000000e+00> : vector<256x128xf32>
    %28 = tpu.matmul %25, %27, %cst_33 {dimension_numbers = #tpu.dot_dimension_numbers<[1], [0], [0], [1], [0, 0, 1, 1], [], []>} : vector<256x128xbf16>, vector<128x128xbf16>, vector<256x128xf32> -> vector<256x128xf32>
    %29 = arith.addf %23, %28 : vector<256x128xf32>
    %c0_34 = arith.constant 0 : index
    %c4 = arith.constant 4 : index
    %c0_35 = arith.constant 0 : index
    %30 = vector.load %arg8[%c0_34, %c4, %c0_35] : memref<20x32x128xbf16, #tpu.memory_space<vmem>>, vector<16x16x128xbf16>
    %31 = vector.shape_cast %30 : vector<16x16x128xbf16> to vector<256x128xbf16>
    %c2_36 = arith.constant 2 : index
    %c0_37 = arith.constant 0 : index
    %c0_38 = arith.constant 0 : index
    %32 = vector.load %arg4[%c2_36, %c0_37, %c0_38] : memref<9x128x128xbf16, #tpu.memory_space<vmem>>, vector<1x128x128xbf16>
    %33 = vector.shape_cast %32 : vector<1x128x128xbf16> to vector<128x128xbf16>
    %cst_39 = arith.constant dense<0.000000e+00> : vector<256x128xf32>
    %34 = tpu.matmul %31, %33, %cst_39 {dimension_numbers = #tpu.dot_dimension_numbers<[1], [0], [0], [1], [0, 0, 1, 1], [], []>} : vector<256x128xbf16>, vector<128x128xbf16>, vector<256x128xf32> -> vector<256x128xf32>
    %35 = arith.addf %29, %34 : vector<256x128xf32>
    %c2_40 = arith.constant 2 : index
    %c0_41 = arith.constant 0 : index
    %c0_42 = arith.constant 0 : index
    %36 = vector.load %arg8[%c2_40, %c0_41, %c0_42] : memref<20x32x128xbf16, #tpu.memory_space<vmem>>, vector<16x16x128xbf16>
    %37 = vector.shape_cast %36 : vector<16x16x128xbf16> to vector<256x128xbf16>
    %c3 = arith.constant 3 : index
    %c0_43 = arith.constant 0 : index
    %c0_44 = arith.constant 0 : index
    %38 = vector.load %arg4[%c3, %c0_43, %c0_44] : memref<9x128x128xbf16, #tpu.memory_space<vmem>>, vector<1x128x128xbf16>
    %39 = vector.shape_cast %38 : vector<1x128x128xbf16> to vector<128x128xbf16>
    %cst_45 = arith.constant dense<0.000000e+00> : vector<256x128xf32>
    %40 = tpu.matmul %37, %39, %cst_45 {dimension_numbers = #tpu.dot_dimension_numbers<[1], [0], [0], [1], [0, 0, 1, 1], [], []>} : vector<256x128xbf16>, vector<128x128xbf16>, vector<256x128xf32> -> vector<256x128xf32>
    %41 = arith.addf %35, %40 : vector<256x128xf32>
    %c2_46 = arith.constant 2 : index
    %c2_47 = arith.constant 2 : index
    %c0_48 = arith.constant 0 : index
    %42 = vector.load %arg8[%c2_46, %c2_47, %c0_48] : memref<20x32x128xbf16, #tpu.memory_space<vmem>>, vector<16x16x128xbf16>
    %43 = vector.shape_cast %42 : vector<16x16x128xbf16> to vector<256x128xbf16>
    %c4_49 = arith.constant 4 : index
    %c0_50 = arith.constant 0 : index
    %c0_51 = arith.constant 0 : index
    %44 = vector.load %arg4[%c4_49, %c0_50, %c0_51] : memref<9x128x128xbf16, #tpu.memory_space<vmem>>, vector<1x128x128xbf16>
    %45 = vector.shape_cast %44 : vector<1x128x128xbf16> to vector<128x128xbf16>
    %cst_52 = arith.constant dense<0.000000e+00> : vector<256x128xf32>
    %46 = tpu.matmul %43, %45, %cst_52 {dimension_numbers = #tpu.dot_dimension_numbers<[1], [0], [0], [1], [0, 0, 1, 1], [], []>} : vector<256x128xbf16>, vector<128x128xbf16>, vector<256x128xf32> -> vector<256x128xf32>
    %47 = arith.addf %41, %46 : vector<256x128xf32>
    %c2_53 = arith.constant 2 : index
    %c4_54 = arith.constant 4 : index
    %c0_55 = arith.constant 0 : index
    %48 = vector.load %arg8[%c2_53, %c4_54, %c0_55] : memref<20x32x128xbf16, #tpu.memory_space<vmem>>, vector<16x16x128xbf16>
    %49 = vector.shape_cast %48 : vector<16x16x128xbf16> to vector<256x128xbf16>
    %c5 = arith.constant 5 : index
    %c0_56 = arith.constant 0 : index
    %c0_57 = arith.constant 0 : index
    %50 = vector.load %arg4[%c5, %c0_56, %c0_57] : memref<9x128x128xbf16, #tpu.memory_space<vmem>>, vector<1x128x128xbf16>
    %51 = vector.shape_cast %50 : vector<1x128x128xbf16> to vector<128x128xbf16>
    %cst_58 = arith.constant dense<0.000000e+00> : vector<256x128xf32>
    %52 = tpu.matmul %49, %51, %cst_58 {dimension_numbers = #tpu.dot_dimension_numbers<[1], [0], [0], [1], [0, 0, 1, 1], [], []>} : vector<256x128xbf16>, vector<128x128xbf16>, vector<256x128xf32> -> vector<256x128xf32>
    %53 = arith.addf %47, %52 : vector<256x128xf32>
    %c4_59 = arith.constant 4 : index
    %c0_60 = arith.constant 0 : index
    %c0_61 = arith.constant 0 : index
    %54 = vector.load %arg8[%c4_59, %c0_60, %c0_61] : memref<20x32x128xbf16, #tpu.memory_space<vmem>>, vector<16x16x128xbf16>
    %55 = vector.shape_cast %54 : vector<16x16x128xbf16> to vector<256x128xbf16>
    %c6 = arith.constant 6 : index
    %c0_62 = arith.constant 0 : index
    %c0_63 = arith.constant 0 : index
    %56 = vector.load %arg4[%c6, %c0_62, %c0_63] : memref<9x128x128xbf16, #tpu.memory_space<vmem>>, vector<1x128x128xbf16>
    %57 = vector.shape_cast %56 : vector<1x128x128xbf16> to vector<128x128xbf16>
    %cst_64 = arith.constant dense<0.000000e+00> : vector<256x128xf32>
    %58 = tpu.matmul %55, %57, %cst_64 {dimension_numbers = #tpu.dot_dimension_numbers<[1], [0], [0], [1], [0, 0, 1, 1], [], []>} : vector<256x128xbf16>, vector<128x128xbf16>, vector<256x128xf32> -> vector<256x128xf32>
    %59 = arith.addf %53, %58 : vector<256x128xf32>
    %c4_65 = arith.constant 4 : index
    %c2_66 = arith.constant 2 : index
    %c0_67 = arith.constant 0 : index
    %60 = vector.load %arg8[%c4_65, %c2_66, %c0_67] : memref<20x32x128xbf16, #tpu.memory_space<vmem>>, vector<16x16x128xbf16>
    %61 = vector.shape_cast %60 : vector<16x16x128xbf16> to vector<256x128xbf16>
    %c7 = arith.constant 7 : index
    %c0_68 = arith.constant 0 : index
    %c0_69 = arith.constant 0 : index
    %62 = vector.load %arg4[%c7, %c0_68, %c0_69] : memref<9x128x128xbf16, #tpu.memory_space<vmem>>, vector<1x128x128xbf16>
    %63 = vector.shape_cast %62 : vector<1x128x128xbf16> to vector<128x128xbf16>
    %cst_70 = arith.constant dense<0.000000e+00> : vector<256x128xf32>
    %64 = tpu.matmul %61, %63, %cst_70 {dimension_numbers = #tpu.dot_dimension_numbers<[1], [0], [0], [1], [0, 0, 1, 1], [], []>} : vector<256x128xbf16>, vector<128x128xbf16>, vector<256x128xf32> -> vector<256x128xf32>
    %65 = arith.addf %59, %64 : vector<256x128xf32>
    %c4_71 = arith.constant 4 : index
    %c4_72 = arith.constant 4 : index
    %c0_73 = arith.constant 0 : index
    %66 = vector.load %arg8[%c4_71, %c4_72, %c0_73] : memref<20x32x128xbf16, #tpu.memory_space<vmem>>, vector<16x16x128xbf16>
    %67 = vector.shape_cast %66 : vector<16x16x128xbf16> to vector<256x128xbf16>
    %c8 = arith.constant 8 : index
    %c0_74 = arith.constant 0 : index
    %c0_75 = arith.constant 0 : index
    %68 = vector.load %arg4[%c8, %c0_74, %c0_75] : memref<9x128x128xbf16, #tpu.memory_space<vmem>>, vector<1x128x128xbf16>
    %69 = vector.shape_cast %68 : vector<1x128x128xbf16> to vector<128x128xbf16>
    %cst_76 = arith.constant dense<0.000000e+00> : vector<256x128xf32>
    %70 = tpu.matmul %67, %69, %cst_76 {dimension_numbers = #tpu.dot_dimension_numbers<[1], [0], [0], [1], [0, 0, 1, 1], [], []>} : vector<256x128xbf16>, vector<128x128xbf16>, vector<256x128xf32> -> vector<256x128xf32>
    %71 = arith.addf %65, %70 : vector<256x128xf32>
    %72 = arith.extf %1 : vector<256x128xbf16> to vector<256x128xf32>
    %cst_77 = arith.constant dense<0.000000e+00> : vector<128xf32>
    %73 = vector.multi_reduction <add>, %72, %cst_77 [0] : vector<256x128xf32> to vector<128xf32>
    %74 = vector.shape_cast %73 : vector<128xf32> to vector<1x128xf32>
    %cst_78 = arith.constant 2.560000e+02 : f32
    %75 = vector.broadcast %cst_78 : f32 to vector<1x128xf32>
    %76 = arith.divf %74, %75 : vector<1x128xf32>
    %77 = arith.truncf %76 : vector<1x128xf32> to vector<1x128xbf16>
    %c0_79 = arith.constant 0 : index
    %c0_80 = arith.constant 0 : index
    %78 = vector.load %arg5[%c0_79, %c0_80] : memref<128x128xbf16, #tpu.memory_space<vmem>>, vector<128x128xbf16>
    %cst_81 = arith.constant dense<0.000000e+00> : vector<1x128xf32>
    %79 = tpu.matmul %77, %78, %cst_81 {dimension_numbers = #tpu.dot_dimension_numbers<[1], [0], [0], [1], [0, 0, 1, 1], [], []>} : vector<1x128xbf16>, vector<128x128xbf16>, vector<1x128xf32> -> vector<1x128xf32>
    %80 = vector.broadcast %79 : vector<1x128xf32> to vector<256x128xf32>
    %81 = arith.addf %71, %80 : vector<256x128xf32>
    %c0_82 = arith.constant 0 : index
    %c0_83 = arith.constant 0 : index
    %82 = vector.load %arg6[%c0_82, %c0_83] : memref<1x128xf32, #tpu.memory_space<vmem>>, vector<1x128xf32>
    %83 = vector.broadcast %82 : vector<1x128xf32> to vector<256x128xf32>
    %84 = arith.addf %81, %83 : vector<256x128xf32>
    %c0_84 = arith.constant 0 : index
    %c0_85 = arith.constant 0 : index
    %c0_86 = arith.constant 0 : index
    %85 = vector.load %arg7[%c0_84, %c0_85, %c0_86] : memref<1x256x128xf32, #tpu.memory_space<vmem>>, vector<1x256x128xf32>
    %86 = vector.shape_cast %85 : vector<1x256x128xf32> to vector<256x128xf32>
    %87 = vector.shape_cast %84 : vector<256x128xf32> to vector<1x256x128xf32>
    tpu.vector_store %arg7[%c0_84, %c0_85, %c0_86], %87 {strides = array<i32>} : memref<1x256x128xf32, #tpu.memory_space<vmem>>, vector<1x256x128xf32>,
    return
  }
  func.func @transform_0(%arg0: i32) -> (i32, i32, i32) {
    %c0_i32 = arith.constant 0 : i32
    %c0_i32_0 = arith.constant 0 : i32
    %c0_i32_1 = arith.constant 0 : i32
    return %arg0, %c0_i32, %c0_i32_0 : i32, i32, i32
  }
  func.func @transform_1(%arg0: i32) -> (i32, i32) {
    %c0_i32 = arith.constant 0 : i32
    %c0_i32_0 = arith.constant 0 : i32
    %c0_i32_1 = arith.constant 0 : i32
    return %c0_i32, %c0_i32_0 : i32, i32
  }
  func.func @transform_2(%arg0: i32) -> (i32, i32) {
    %c0_i32 = arith.constant 0 : i32
    %c0_i32_0 = arith.constant 0 : i32
    %c0_i32_1 = arith.constant 0 : i32
    return %c0_i32, %c0_i32_0 : i32, i32
  }
  func.func @transform_3(%arg0: i32) -> (i32, i32, i32) {
    %c0_i32 = arith.constant 0 : i32
    %c0_i32_0 = arith.constant 0 : i32
    %c0_i32_1 = arith.constant 0 : i32
    %c0_i32_2 = arith.constant 0 : i32
    return %c0_i32, %c0_i32_0, %c0_i32_1 : i32, i32, i32
  }
  func.func @transform_4(%arg0: i32) -> (i32, i32) {
    %c0_i32 = arith.constant 0 : i32
    %c0_i32_0 = arith.constant 0 : i32
    %c0_i32_1 = arith.constant 0 : i32
    return %c0_i32, %c0_i32_0 : i32, i32
  }
  func.func @transform_5(%arg0: i32) -> (i32, i32) {
    %c0_i32 = arith.constant 0 : i32
    %c0_i32_0 = arith.constant 0 : i32
    %c0_i32_1 = arith.constant 0 : i32
    return %c0_i32, %c0_i32_0 : i32, i32
  }
  func.func @transform_6(%arg0: i32) -> (i32, i32, i32) {
    %c0_i32 = arith.constant 0 : i32
    %c0_i32_0 = arith.constant 0 : i32
    %c0_i32_1 = arith.constant 0 : i32
    return %arg0, %c0_i32, %c0_i32_0 : i32, i32, i32
  }
}

</mosaic_0001>

<bundles_post_ra>
// kernel: tpu_custom_call.1
= control target key start
LH: loop header
LB: loop body
LE: loop exit
PB: predicated region body
PF: predicated region fallthrough
CT: control target
= control target key end

     0   :  { %s7342_s0 = inlined_call_operand.hbm [shape: bf16[2,256,128], index: 0, kind: input, shape index: {}]   ;;  %s7343_s1 = inlined_call_operand.hbm [shape: bf16[128,256], index: 1, kind: input, shape index: {}]   ;;  %s7344_s2 = inlined_call_operand.vmem [shape: f32[1,128], index: 2, kind: input, shape index: {}]   ;;  %s7345_s3 = inlined_call_operand.hbm [shape: bf16[9,128,128], index: 3, kind: input, shape index: {}]   ;;  %s7346_s4 = inlined_call_operand.hbm [shape: bf16[128,128], index: 4, kind: input, shape index: {}]   ;;  %s7347_s5 = inlined_call_operand.vmem [shape: f32[1,128], index: 5, kind: input, shape index: {}]   ;;  %s7348_s6 = inlined_call_operand.hbm [shape: f32[2,256,128], index: 6, kind: output, shape index: {}]  }
   0x1   :  { %7355 = sst [smem:[#allocation72_spill]] %s7343_s1 }
   0x2   :  { %11 = vsyncpa [#allocation4], 0 }
   0x3   :  { %13 = vsyncpa [#allocation4 + $0x1], 0 }
   0x4   :  { %14 = vsyncpa [#allocation7], 0 }
   0x5   :  { %15 = vsyncpa [#allocation10], 0 }
   0x6   :  { %16 = vsyncpa [#allocation5], 0 }
   0x7   :  { %18 = vsyncpa [#allocation5 + $0x1], 0  ;;  %s5745_s21 = smov 0   ;;  %s5747_s22 = smov 0  }
   0x8   :  { %s5749_s23 = smov 0   ;;  %s5751_s24 = smov 0  }
   0x9 LB: > { %s5766_s25 = sadd.s32 4294967295, %s5694_s24   ;;  %s4448_s26 = sadd.s32 4294967294, %s5694_s24   ;;  %s5694_s24 = sphi %s5751_s24, %s7543_s24   ;;  %s5690_s23 = sphi %s5749_s23, %s7542_s23   ;;  %s5686_s22 = sphi %s5747_s22, %s7541_s22   ;;  %s5682_s21 = sphi %s5745_s21, %s7540_s21  }
   0xa   : > { %p44_p0 = scmp.ne.s32.totalorder %s5686_s22, %s5682_s21  ;;  %p7349_p1 = scmp.eq.s32.totalorder %s5766_s25, 0 }
   0xb   : > { %p179_p3 = scmp.eq.s32.totalorder %s4448_s26, 1  ;;  %p4449_p5 = scmp.ge.s32.totalorder %s5694_s24, 1 }
   0xc   : > { %p5775_p4 = por %p7349_p1, %p44_p0  ;;  %p186_p7 = scmp.lt.s32.totalorder %s5694_s24, 3 }
   0xd   : > { %p5780_p6 = por %p179_p3, %p44_p0  ;;  %s5696_s30 = smov [#allocation6]  }
   0xe   : > { %s7356_s27 = scalar_select %p5775_p4, 1, 0 }
   0xf   : > { %s7357_s28 = scalar_select %p5780_p6, 1, 0 }
  0x10   : > { %p5785_p8 = pnand %p4449_p5, %p186_p7  ;;  %s198_s7 = sshll.u32 %s5696_s30, 4  ;;  %s5789_s7 = int_to_ptr.vmem [resolvable:$true] %s198_s7 }
  0x11   : > { %s5697_s9 = smov [#allocation8]   ;;  %s7360_s1 = sld [smem:[#allocation72_spill]] }
  0x12   : > { %s7358_s29 = scalar_select %p5785_p8, 1, 0 }
  0x13   : > { %p5293_p9 = pneg %p5785_p8  ;;  %s214_s10 = sshll.u32 %s5697_s9, 4  ;;  %s5800_s10 = int_to_ptr.vmem [resolvable:$true] %s214_s10 }
  0x15   : > { %p5796_p11 = pnand %p5293_p9, %p7349_p1 }
  0x17   : > { %s5506_s13 = scalar_lea.hbm %s7360_s1, 2048  ;;  %p5810_p13 = pneg %p5796_p11 }
  0x18   : > { %p5507_p12 = scmp.ne.s32.totalorder %s7360_s1, %s5506_s13  ;;  %p5513_p5 = scmp.lt.u32.totalorder %s5506_s13, %s7360_s1 }
  0x1a   : > { %p5509_p0 = pnand %p5810_p13, %p5507_p12 }
  0x1c   : > { %p5510_p3 = pneg %p5509_p0 }
  0x1e   : > { %p5515_p7 = pnand %p5513_p5, %p5510_p3 }
  0x20   : > { %5518 = shalt.err (!%p5515_p7)
}
  0x21   : > { %s5519_s19 = scalar_lea.vmem %s5789_s7, 2048  ;;  %p5527_p2 = scmp.lt.s32.totalorder %s5789_s7, %s5789_s7 }
  0x22   : > { %p5520_p9 = scmp.ne.s32.totalorder %s5789_s7, %s5519_s19  ;;  %p5528_p6 = scmp.lt.s32.totalorder %s5519_s19, %s5519_s19 }
  0x24   : > { %p5522_p10 = pnand %p5520_p9, %p5810_p13  ;;  %p5529_p12 = por %p5528_p6, %p5527_p2 }
  0x26   : > { %p5523_p1 = pneg %p5522_p10 }
  0x28   : > { %p5530_p0 = pnand %p5529_p12, %p5523_p1 }
  0x2a   : > { %5533 = shalt.err (!%p5530_p0)
}
  0x2b   : > { %s5698_s20 = smov 128   ;;  %s5699_s26 = smov 8  }
  0x2c   : > { %5296 = dma.hbm_to_vmem [thread:$0]  (!%p5796_p11), %s7360_s1, 2048, %s5789_s7, [#allocation7], %s5698_s20, %s5698_s20, %s5699_s26  }
  0x2d   : > { %s5534_s13 = scalar_lea.hbm %s7345_s3, 9216 }
  0x2e   : > { %p5535_p2 = scmp.ne.s32.totalorder %s7345_s3, %s5534_s13  ;;  %p5541_p10 = scmp.lt.u32.totalorder %s5534_s13, %s7345_s3 }
  0x30   : > { %p5537_p1 = pnand %p5535_p2, %p5810_p13 }
  0x32   : > { %p5538_p6 = pneg %p5537_p1 }
  0x34   : > { %p5543_p3 = pnand %p5541_p10, %p5538_p6 }
  0x36   : > { %5546 = shalt.err (!%p5543_p3)
}
  0x37   : > { %s5547_s7 = scalar_lea.vmem %s5800_s10, 9216  ;;  %p5555_p12 = scmp.lt.s32.totalorder %s5800_s10, %s5800_s10 }
  0x38   : > { %p5548_p5 = scmp.ne.s32.totalorder %s5800_s10, %s5547_s7  ;;  %p5556_p0 = scmp.lt.s32.totalorder %s5547_s7, %s5547_s7 }
  0x3a   : > { %p5550_p7 = pnand %p5548_p5, %p5810_p13  ;;  %p5557_p2 = por %p5556_p0, %p5555_p12 }
  0x3c   : > { %p5551_p9 = pneg %p5550_p7 }
  0x3e   : > { %p5558_p1 = pnand %p5557_p2, %p5551_p9 }
  0x40   : > { %5561 = shalt.err (!%p5558_p1)
}
  0x41   : > { %s5700_s19 = smov 64   ;;  %s5701_s20 = smov 4  }
  0x42   : > { %5299 = dma.hbm_to_vmem [thread:$0]  (!%p5796_p11), %s7345_s3, 9216, %s5800_s10, [#allocation7], %s5700_s19, %s5700_s19, %s5701_s20  }
  0x43   : > { %s5702_s9 = smov [#allocation9]   ;;  %s5858_s12 = sadd.s32 1, %s5694_s24  }
  0x44   : > { %s227_s11 = sshll.u32 %s5702_s9, 4  ;;  %s5562_s15 = scalar_lea.hbm %s7346_s4, 1024  ;;  %s228_s11 = int_to_ptr.vmem [resolvable:$true] %s227_s11 }
  0x45   : > { %p5563_p6 = scmp.ne.s32.totalorder %s7346_s4, %s5562_s15  ;;  %p5569_p5 = scmp.lt.u32.totalorder %s5562_s15, %s7346_s4 }
  0x47   : > { %p5565_p10 = pnand %p5563_p6, %p5810_p13 }
  0x49   : > { %p5566_p3 = pneg %p5565_p10 }
  0x4b   : > { %p5571_p7 = pnand %p5569_p5, %p5566_p3 }
  0x4d   : > { %5574 = shalt.err (!%p5571_p7)
}
  0x4e   : > { %s5575_s10 = scalar_lea.vmem %s228_s11, 1024  ;;  %p5583_p2 = scmp.lt.s32.totalorder %s228_s11, %s228_s11 }
  0x4f   : > { %p5576_p9 = scmp.ne.s32.totalorder %s228_s11, %s5575_s10  ;;  %p5584_p1 = scmp.lt.s32.totalorder %s5575_s10, %s5575_s10 }
  0x51   : > { %p5578_p12 = pnand %p5576_p9, %p5810_p13  ;;  %p5585_p4 = por %p5584_p1, %p5583_p2 }
  0x53   : > { %p5579_p0 = pneg %p5578_p12 }
  0x55   : > { %p5586_p8 = pnand %p5585_p4, %p5579_p0 }
  0x57   : > { %5589 = shalt.err (!%p5586_p8)
}
  0x58   : > { %5302 = dma.hbm_to_vmem [thread:$0]  (!%p5796_p11), %s7346_s4, 1024, %s228_s11, [#allocation10], %s5700_s19, %s5700_s19, %s5701_s20  }
  0x59   : > { %s28_s16 = ssub.s32 %s5694_s24, %s5858_s12  ;;  %s31_s8 = sadd.s32 1, %s5690_s23 }
  0x5a   : > { %p29_p4 = scmp.eq.s32.totalorder %s28_s16, 0  ;;  %p38_p8 = scmp.ne.s32.totalorder %s5690_s23, %s5686_s22 }
  0x5b   : > { %p39_p13 = scmp.eq.s32.totalorder %s5694_s24, 0  ;;  %p5314_p6 = scmp.lt.s32.totalorder %s5694_s24, 2 }
  0x5c   : > { %s5889_s30 = scalar_select %p29_p4, %s5690_s23, %s31_s8  }
  0x5d   : > { %p40_p10 = por %p39_p13, %p38_p8  ;;  %p7362_p3 = scmp.eq.s32.totalorder %s5766_s25, 1 }
  0x5e   : > { %s244_s13 = sand.u32 1, %s5690_s23   ;;  %s4582_s14 = sshll.u32 %s5694_s24, 11 }
  0x5f   : > { %p5893_p5 = por %p7362_p3, %p38_p8  ;;  %s4454_s15 = sshll.u32 %s244_s13, 7 }
  0x60   : > { %s5902_s11 = scalar_lea.hbm %s7342_s0, %s4582_s14  ;;  %s248_s7 = scalar_lea.vmem [#allocation3], %s4454_s15 }
  0x61   : > { %s255_s10 = sshll.u32 %s248_s7, 4  ;;  %p5904_p11 = pnand %p5314_p6, %p40_p10  ;;  %s5908_s10 = int_to_ptr.vmem [resolvable:$true] %s255_s10 }
  0x62   : > { %s5910_s26 = scalar_lea.sflag [#allocation4], %s244_s13  ;;  %s5590_s16 = scalar_lea.hbm %s5902_s11, 2048 }
  0x63   : > { %p5591_p7 = scmp.ne.s32.totalorder %s5902_s11, %s5590_s16  ;;  %p5592_p9 = pneg %p5904_p11 }
  0x64   : > { %s5595_s15 = scalar_lea.hbm %s7342_s0, 4096  ;;  %p5596_p2 = scmp.lt.u32.totalorder %s5902_s11, %s7342_s0 }
  0x65   : > { %p5593_p12 = pnand %p5592_p9, %p5591_p7  ;;  %p5597_p1 = scmp.lt.u32.totalorder %s5595_s15, %s5590_s16 }
  0x66   : > { %p5599_p8 = scmp.lt.u32.totalorder %s5590_s16, %s5902_s11 }
  0x67   : > { %p5594_p0 = pneg %p5593_p12  ;;  %p5598_p4 = por %p5597_p1, %p5596_p2 }
  0x69   : > { %p5600_p13 = por %p5599_p8, %p5598_p4 }
  0x6b   : > { %p5601_p6 = pnand %p5600_p13, %p5594_p0 }
  0x6d   : > { %5604 = shalt.err (!%p5601_p6)
}
  0x6e   : > { %s5605_s13 = scalar_lea.vmem %s5908_s10, 2048  ;;  %s5703_s7 = smov [#allocation3]  }
  0x6f   : > { %p5606_p10 = scmp.ne.s32.totalorder %s5908_s10, %s5605_s13  ;;  %s5610_s8 = sshll.u32 %s5703_s7, 4  ;;  %s5611_s8 = int_to_ptr.vmem [resolvable:$false] %s5610_s8 }
  0x70   : > { %s5612_s14 = scalar_lea.vmem %s5611_s8, 4096  ;;  %p5613_p12 = scmp.lt.s32.totalorder %s5908_s10, %s5611_s8 }
  0x71   : > { %p5608_p3 = pnand %p5606_p10, %p5592_p9  ;;  %p5614_p2 = scmp.lt.s32.totalorder %s5612_s14, %s5605_s13 }
  0x73   : > { %p5609_p7 = pneg %p5608_p3  ;;  %p5615_p1 = por %p5614_p2, %p5613_p12 }
  0x75   : > { %p5616_p4 = pnand %p5615_p1, %p5609_p7 }
  0x77   : > { %5619 = shalt.err (!%p5616_p4)
}
  0x78   : > { %5306 = dma.hbm_to_vmem [thread:$0]  (!%p5904_p11), %s5902_s11, 2048, %s5908_s10, %s5910_s26, %s5700_s19, %s5700_s19, %s5701_s20  }
  0x79   : > { %p7365_p9 = scmp.ne.s32.totalorder %s7358_s29, 0 }
  0x7b   : > { %267 = sbr.rel (%p7365_p9) target bundleno = 1058 (0x422), region = 44 }
  0x82   : > { %s5944_s16 = sand.u32 1, %s5686_s22   ;;  %p7366_p0 = scmp.ne.s32.totalorder %s7356_s27, 0 }
  0x83   : > { %s4458_s15 = sshll.u32 %s5944_s16, 7  ;;  %s270_s17 = scalar_lea.sflag [#allocation4], %s5944_s16 }
  0x84   : > { %s5948_s18 = scalar_lea.vmem [#allocation3], %s4458_s15 }
  0x85   : > { %5665 = dma.done.wait (%p7366_p0), %s270_s17, 2048  }
  0x86   : > { %5667 = vsyncadd (%p7366_p0), %s270_s17, 4294965248  ;;  %p7367_p11 = scmp.eq.s32.totalorder %s5766_s25, 0 }
  0x88   : > { %5669 = dma.done.wait (%p7367_p11), [#allocation7], 11264   ;;  %p7368_p8 = pmov %p7367_p11 }
  0x8a   : > { %5671 = vsyncadd (%p7368_p8), [#allocation7], 4294956032  ;;  %p7369_p13 = pmov %p7368_p8 }
  0x8b   : > { %p7370_p6 = pmov %p7368_p8 }
  0x8c   : > { %5673 = dma.done.wait (%p7369_p13), [#allocation10], 1024  }
  0x8d   : > { %5675 = vsyncadd (%p7370_p6), [#allocation10], 4294966272  ;;  %v5704_v0 = vmov 0   ;;  %v5363_v1 = vld [vmem:[#allocation6 + $0x4] ss:$8 sps:$4 sm:$0xff]   ;;  %v5373_v8 = vld [vmem:[#allocation8 + $0x10] sm:$0xff]  }
  0x8e   : > { %571 = vmatprep.mubr.bf16.mxu0 %v5704_v0  ;;  %771 = vst [vmem:[#allocation2] sm:$0xff] %v5704_v0  ;;  %772 = vst [vmem:[#allocation2 + $0x8] sm:$0xff] %v5704_v0  ;;  %4825 = vmatprep.mubr.bf16.mxu1 %v5704_v0  ;;  %v5365_v2 = vld [vmem:[#allocation8] sm:$0xff]   ;;  %v5367_v4 = vld [vmem:[#allocation6 + $0x14] ss:$8 sps:$4 sm:$0xff]   ;;  %vm1633_vm0 = vcmask 1045504  }
  0x8f   : > { %773 = vst [vmem:[#allocation2 + $0x10] sm:$0xff] %v5704_v0  ;;  %774 = vst [vmem:[#allocation2 + $0x18] sm:$0xff] %v5704_v0  ;;  %539 = vmatprep.subr.bf16.mxu0 %v5363_v1  ;;  %v5366_v3 = vld [vmem:[#allocation6] ss:$8 sps:$4 sm:$0xff]   ;;  %4809 = vmatprep.subr.bf16.mxu1 %v5365_v2  ;;  %v5370_v6 = vld [vmem:[#allocation6 + $0x10] ss:$8 sps:$4 sm:$0xff]  }
  0x90   : > { %776 = vst [vmem:[#allocation2 + $0x120] sm:$0xff] %v5704_v0  ;;  %777 = vst [vmem:[#allocation2 + $0x128] sm:$0xff] %v5704_v0  ;;  %540 = vmatpush1.bf16.msra.mxu0 %v5366_v3  ;;  %4810 = vmatpush3.bf16.msra.mxu1 %v5365_v2  ;;  %v5369_v5 = vld [vmem:[#allocation8 + $0x8] sm:$0xff]   ;;  %v5375_v10 = vld [vmem:[#allocation6 + $0x34] ss:$8 sps:$4 sm:$0xff]   ;;  %vm1246_vm1 = vcmask 1046528  }
  0x91   : > { %778 = vst [vmem:[#allocation2 + $0x130] sm:$0xff] %v5704_v0  ;;  %779 = vst [vmem:[#allocation2 + $0x138] sm:$0xff] %v5704_v0  ;;  %541 = vmatprep.subr.bf16.mxu0 %v5367_v4  ;;  %v5371_v7 = vld [vmem:[#allocation6 + $0x24] ss:$8 sps:$4 sm:$0xff]   ;;  %4811 = vmatprep.subr.bf16.mxu1 %v5369_v5  ;;  %v5374_v9 = vld [vmem:[#allocation6 + $0x20] ss:$8 sps:$4 sm:$0xff]  }
  0x92   : > { %781 = vst [vmem:[#allocation2 + $0x20] sm:$0x1] %v5704_v0  ;;  %782 = vst [vmem:[#allocation2 + $0x30] sm:$0x1] %v5704_v0  ;;  %v5377_v11 = vld [vmem:[#allocation8 + $0x18] sm:$0xff]   ;;  %v5381_v14 = vld [vmem:[#allocation8 + $0x20] sm:$0xff]  }
  0x93   : > { %783 = vst [vmem:[#allocation2 + $0x40] sm:$0x1] %v5704_v0  ;;  %784 = vst [vmem:[#allocation2 + $0x50] sm:$0x1] %v5704_v0  ;;  %v5378_v12 = vld [vmem:[#allocation6 + $0x30] ss:$8 sps:$4 sm:$0xff]  }
  0x94   : > { %785 = vst [vmem:[#allocation2 + $0x60] sm:$0x1] %v5704_v0  ;;  %786 = vst [vmem:[#allocation2 + $0x70] sm:$0x1] %v5704_v0  ;;  %542 = vmatpush1.bf16.msra.mxu0 %v5370_v6  ;;  %4812 = vmatpush3.bf16.msra.mxu1 %v5369_v5  ;;  %v5379_v13 = vld [vmem:[#allocation6 + $0x44] ss:$8 sps:$4 sm:$0xff]  }
  0x95   : > { %787 = vst [vmem:[#allocation2 + $0x80] sm:$0x1] %v5704_v0  ;;  %788 = vst [vmem:[#allocation2 + $0x90] sm:$0x1] %v5704_v0  ;;  %543 = vmatprep.subr.bf16.mxu0 %v5371_v7  ;;  %4813 = vmatprep.subr.bf16.mxu1 %v5373_v8  ;;  %v5382_v15 = vld [vmem:[#allocation6 + $0x40] ss:$8 sps:$4 sm:$0xff]  }
  0x96   : > { %789 = vst [vmem:[#allocation2 + $0xa0] sm:$0x1] %v5704_v0  ;;  %790 = vst [vmem:[#allocation2 + $0xb0] sm:$0x1] %v5704_v0  ;;  %v5383_v16 = vld [vmem:[#allocation6 + $0x54] ss:$8 sps:$4 sm:$0xff]  }
  0x97   : > { %791 = vst [vmem:[#allocation2 + $0xc0] sm:$0x1] %v5704_v0  ;;  %792 = vst [vmem:[#allocation2 + $0xd0] sm:$0x1] %v5704_v0  ;;  %v5385_v17 = vld [vmem:[#allocation8 + $0x28] sm:$0xff]   ;;  %v315_v18 = vld [vmem:[%s5948_s18] sm:$0xff]  }
  0x98   : > { %793 = vst [vmem:[#allocation2 + $0xe0] sm:$0x1] %v5704_v0  ;;  %794 = vst [vmem:[#allocation2 + $0xf0] sm:$0x1] %v5704_v0  ;;  %544 = vmatpush1.bf16.msra.mxu0 %v5374_v9  ;;  %4814 = vmatpush3.bf16.msra.mxu1 %v5373_v8  ;;  %v4049_v19 = vunpack.c.l.bf16 %v315_v18  ;;  %v4050_v20 = vunpack.c.h.bf16 %v315_v18  ;;  %v317_v21 = vld [vmem:[%s5948_s18 + $0x8] sm:$0xff]   ;;  %v5389_v25 = vld [vmem:[#allocation8 + $0x30] sm:$0xff]  }
  0x99   : > { %795 = vst [vmem:[#allocation2 + $0x100] sm:$0x1] %v5704_v0  ;;  %796 = vst [vmem:[#allocation2 + $0x110] sm:$0x1] %v5704_v0  ;;  %545 = vmatprep.subr.bf16.mxu0 %v5375_v10  ;;  %4815 = vmatprep.subr.bf16.mxu1 %v5377_v11  ;;  %v5386_v22 = vld [vmem:[#allocation6 + $0x50] ss:$8 sps:$4 sm:$0xff]   ;;  %v4051_v23 = vunpack.c.l.bf16 %v317_v21  ;;  %v4052_v27 = vunpack.c.h.bf16 %v317_v21 }
  0x9a   : > { %797 = vst [vmem:[#allocation2 + $0x28] sm:$0x2] %v5704_v0  ;;  %798 = vst [vmem:[#allocation2 + $0x38] sm:$0x2] %v5704_v0  ;;  %v5387_v24 = vld [vmem:[#allocation6 + $0x64] ss:$8 sps:$4 sm:$0xff]   ;;  %v4081_v26 = vadd.f32 %v4050_v20, %v4049_v19 }
  0x9b   : > { %799 = vst [vmem:[#allocation2 + $0x48] sm:$0x2] %v5704_v0  ;;  %800 = vst [vmem:[#allocation2 + $0x58] sm:$0x2] %v5704_v0  ;;  %v6007_v28 = vld [vmem:[%s5948_s18 + $0x10] sm:$0xff]   ;;  %v5393_v31 = vld [vmem:[#allocation8 + $0x38] sm:$0xff]  }
  0x9c   : > { %801 = vst [vmem:[#allocation2 + $0x68] sm:$0x2] %v5704_v0  ;;  %802 = vst [vmem:[#allocation2 + $0x78] sm:$0x2] %v5704_v0  ;;  %546 = vmatpush1.bf16.msra.mxu0 %v5378_v12  ;;  %4816 = vmatpush3.bf16.msra.mxu1 %v5377_v11  ;;  %v5390_v29 = vld [vmem:[#allocation6 + $0x60] ss:$8 sps:$4 sm:$0xff]   ;;  %v4082_v32 = vadd.f32 %v4081_v26, %v4051_v23  ;;  %v4053_v33 = vunpack.c.l.bf16 %v6007_v28  ;;  %v4054_v36 = vunpack.c.h.bf16 %v6007_v28 }
  0x9d   : > { %803 = vst [vmem:[#allocation2 + $0x88] sm:$0x2] %v5704_v0  ;;  %804 = vst [vmem:[#allocation2 + $0x98] sm:$0x2] %v5704_v0  ;;  %547 = vmatprep.subr.bf16.mxu0 %v5379_v13  ;;  %4817 = vmatprep.subr.bf16.mxu1 %v5381_v14  ;;  %v5391_v30 = vld [vmem:[#allocation6 + $0x74] ss:$8 sps:$4 sm:$0xff]  }
  0x9e   : > { %805 = vst [vmem:[#allocation2 + $0xa8] sm:$0x2] %v5704_v0  ;;  %806 = vst [vmem:[#allocation2 + $0xb8] sm:$0x2] %v5704_v0  ;;  %v6011_v34 = vld [vmem:[%s5948_s18 + $0x18] sm:$0xff]   ;;  %v4083_v35 = vadd.f32 %v4082_v32, %v4052_v27  ;;  %v6016_v40 = vld [vmem:[%s5948_s18 + $0x20] sm:$0xff]  }
  0x9f   : > { %807 = vst [vmem:[#allocation2 + $0xc8] sm:$0x2] %v5704_v0  ;;  %808 = vst [vmem:[#allocation2 + $0xd8] sm:$0x2] %v5704_v0  ;;  %v5394_v37 = vld [vmem:[#allocation6 + $0x70] ss:$8 sps:$4 sm:$0xff]   ;;  %v4055_v39 = vunpack.c.l.bf16 %v6011_v34  ;;  %v4056_v43 = vunpack.c.h.bf16 %v6011_v34  ;;  %v4057_v45 = vunpack.c.l.bf16 %v6016_v40  ;;  %v4058_v49 = vunpack.c.h.bf16 %v6016_v40 }
  0xa0   : > { %809 = vst [vmem:[#allocation2 + $0xe8] sm:$0x2] %v5704_v0  ;;  %810 = vst [vmem:[#allocation2 + $0xf8] sm:$0x2] %v5704_v0  ;;  %548 = vmatpush1.bf16.msra.mxu0 %v5382_v15  ;;  %4818 = vmatpush3.bf16.msra.mxu1 %v5381_v14  ;;  %v4084_v38 = vadd.f32 %v4083_v35, %v4053_v33  ;;  %v6018_v41 = vld [vmem:[#allocation8 + $0x80] sm:$0xff]   ;;  %v5412_v46 = vld [vmem:[#allocation8 + $0x88] sm:$0xff]  }
  0xa1   : > { %811 = vst [vmem:[#allocation2 + $0x108] sm:$0x2] %v5704_v0  ;;  %812 = vst [vmem:[#allocation2 + $0x118] sm:$0x2] %v5704_v0  ;;  %549 = vmatprep.subr.bf16.mxu0 %v5383_v16  ;;  %4819 = vmatprep.subr.bf16.mxu1 %v5385_v17  ;;  %v6023_v47 = vld [vmem:[%s5948_s18 + $0x28] sm:$0xff]   ;;  %v5413_v52 = vld [vmem:[#allocation8 + $0x90] sm:$0xff]  }
  0xa2   : > { %v4085_v42 = vadd.f32 %v4084_v38, %v4054_v36  ;;  %v4059_v51 = vunpack.c.l.bf16 %v6023_v47  ;;  %v6031_v53 = vld [vmem:[%s5948_s18 + $0x30] sm:$0xff]   ;;  %v4060_v55 = vunpack.c.h.bf16 %v6023_v47  ;;  %v5414_v58 = vld [vmem:[#allocation8 + $0x98] sm:$0xff]   ;;  %v331_v1 = vld [vmem:[%s5948_s18 + $0x40] sm:$0xff]   ;;  %vm5706_vm2 = vmmov 0   ;;  %s4462_s19 = sshll.u32 %s5944_s16, 8  ;;  %s4583_s1 = sshll.u32 %s5766_s25, 12 }
  0xa3   : > { %v4061_v57 = vunpack.c.l.bf16 %v6031_v53  ;;  %v6037_v59 = vld [vmem:[%s5948_s18 + $0x38] sm:$0xff]   ;;  %v4062_v61 = vunpack.c.h.bf16 %v6031_v53  ;;  %v4065_v5 = vunpack.c.l.bf16 %v331_v1  ;;  %v333_v6 = vld [vmem:[%s5948_s18 + $0x48] sm:$0xff]   ;;  %v4066_v8 = vunpack.c.h.bf16 %v331_v1  ;;  %v335_v11 = vld [vmem:[%s5948_s18 + $0x50] sm:$0xff]   ;;  %s7237_s10 = scalar_lea.vmem [#allocation11], %s4462_s19  ;;  %s7280_s7 = scalar_lea.hbm %s7348_s6, %s4583_s1 }
  0xa4   : > { %550 = vmatpush1.bf16.msra.mxu0 %v5386_v22  ;;  %4820 = vmatpush3.bf16.msra.mxu1 %v5385_v17  ;;  %v4086_v44 = vadd.f32 %v4085_v42, %v4055_v39  ;;  %v4063_v63 = vunpack.c.l.bf16 %v6037_v59  ;;  %v4064_v3 = vunpack.c.h.bf16 %v6037_v59  ;;  %v4067_v10 = vunpack.c.l.bf16 %v333_v6  ;;  %v337_v16 = vld [vmem:[%s5948_s18 + $0x58] sm:$0xff]   ;;  %v341_v26 = vld [vmem:[%s5948_s18 + $0x68] sm:$0xff]   ;;  %s4346_s26 = sshll.u32 %s7237_s10, 4  ;;  %s4333_s8 = scalar_lea.sflag [#allocation5], %s5944_s16  ;;  %s7282_s26 = int_to_ptr.vmem [resolvable:$true] %s4346_s26 }
  0xa5   : > { %551 = vmatprep.subr.bf16.mxu0 %v5387_v24  ;;  %4821 = vmatprep.subr.bf16.mxu1 %v5389_v25  ;;  %v4068_v13 = vunpack.c.h.bf16 %v333_v6  ;;  %v4069_v15 = vunpack.c.l.bf16 %v335_v11  ;;  %v4071_v20 = vunpack.c.l.bf16 %v337_v16  ;;  %v4072_v23 = vunpack.c.h.bf16 %v337_v16  ;;  %v345_v38 = vld [vmem:[%s5948_s18 + $0x78] sm:$0xff]   ;;  %s5620_s14 = scalar_lea.vmem %s7282_s26, 4096  ;;  %s5707_s15 = smov [#allocation11]  }
  0xa6   : > { %v4087_v48 = vadd.f32 %v4086_v44, %v4056_v43  ;;  %v4076_v33 = vunpack.c.h.bf16 %v341_v26  ;;  %v4079_v42 = vunpack.c.l.bf16 %v345_v38  ;;  %p5621_p10 = scmp.ne.s32.totalorder %s7282_s26, %s5620_s14  ;;  %s5624_s17 = sshll.u32 %s5707_s15, 4  ;;  %s5625_s17 = int_to_ptr.vmem [resolvable:$false] %s5624_s17 }
  0xa7   : > { %p5627_p12 = scmp.lt.s32.totalorder %s7282_s26, %s5625_s17 }
  0xa8   : > { %552 = vmatpush1.bf16.msra.mxu0 %v5390_v29  ;;  %4822 = vmatpush3.bf16.msra.mxu1 %v5389_v25  ;;  %v4088_v50 = vadd.f32 %v4087_v48, %v4057_v45  ;;  %v6077_v48 = vld [vmem:[#allocation8 + $0xb0] sm:$0xff]   ;;  %p5622_p3 = pnand %p5621_p10, %p5893_p5 }
  0xa9   : > { %553 = vmatprep.subr.bf16.mxu0 %v5391_v30  ;;  %4823 = vmatprep.subr.bf16.mxu1 %v5393_v31  ;;  %v4075_v30 = vunpack.c.l.bf16 %v341_v26 }
  0xaa   : > { %v4089_v54 = vadd.f32 %v4088_v50, %v4058_v49  ;;  %v5418_v49 = vld [vmem:[#allocation8 + $0xb8] sm:$0xff]   ;;  %v1569_v50 = vld [vmem:[#allocation2] sm:$0xfc]  ;;  %p5623_p7 = pneg %p5622_p3 }
  0xac   : > { %554 = vmatpush1.bf16.msra.mxu0 %v5394_v37  ;;  %4824 = vmatpush3.bf16.msra.mxu1 %v5393_v31  ;;  %v4090_v56 = vadd.f32 %v4089_v54, %v4059_v51  ;;  %v343_v31 = vld [vmem:[%s5948_s18 + $0x70] sm:$0xff]   ;;  %v1570_v51 = vld [vmem:[#allocation2 + $0x8] sm:$0x3]  ;;  %v5419_v54 = vld [vmem:[#allocation8 + $0x100] sm:$0xff]  }
  0xad   : > { %4905 = vmatprep.subr.bf16.mxu0 %v6018_v41  ;;  %v4077_v35 = vunpack.c.l.bf16 %v343_v31  ;;  %v4078_v37 = vunpack.c.h.bf16 %v343_v31 }
  0xae   : > { %v4091_v60 = vadd.f32 %v4090_v56, %v4060_v55  ;;  %v1571_v56 = vld [vmem:[#allocation2 + $0x10] sm:$0xfc] }
  0xaf   : > { %572 = vmatmul.mubr.bf16.vlgmr.msra.gmra.mrb[0].mxu0 %v315_v18  ;;  %4826 = vmatmul.mubr.bf16.vlgmr.msra.gmra.mrb[0].mxu1 %v5704_v0  ;;  %v4070_v18 = vunpack.c.h.bf16 %v335_v11 }
  0xb0   : > { %581 = vmatprep.mubr.bf16.mxu0 %v5704_v0  ;;  %4906 = vmatpush3.bf16.msra.mxu0 %v6018_v41  ;;  %v4092_v62 = vadd.f32 %v4091_v60, %v4061_v57  ;;  %v1572_v57 = vld [vmem:[#allocation2 + $0x18] sm:$0x3] }
  0xb1   : > { %4907 = vmatprep.subr.bf16.mxu0 %v5412_v46 }
  0xb2   : > { %v4093_v2 = vadd.f32 %v4092_v62, %v4062_v61  ;;  %v5420_v61 = vld [vmem:[#allocation8 + $0x108] sm:$0xff]   ;;  %v5422_v62 = vld [vmem:[#allocation8 + $0x118] sm:$0xff]  }
  0xb4   : > { %4908 = vmatpush3.bf16.msra.mxu0 %v5412_v46  ;;  %v4094_v4 = vadd.f32 %v4093_v2, %v4063_v63  ;;  %v6068_v46 = vld [vmem:[#allocation8 + $0xa0] sm:$0xff]   ;;  %v5425_v2 = vld [vmem:[#allocation8 + $0x130] sm:$0xff]  }
  0xb5   : > { %4909 = vmatprep.subr.bf16.mxu0 %v5413_v52  ;;  %v5423_v63 = vld [vmem:[#allocation8 + $0x120] sm:$0xff]  }
  0xb6   : > { %v4095_v7 = vadd.f32 %v4094_v4, %v4064_v3  ;;  %v5426_v3 = vld [vmem:[#allocation8 + $0x40] sm:$0xff]   ;;  %v5427_v4 = vld [vmem:[#allocation8 + $0x138] sm:$0xff]  }
  0xb7   : > { %582 = vmatmul.mubr.bf16.gmra.mrb[4].mxu0 %v317_v21  ;;  %v339_v21 = vld [vmem:[%s5948_s18 + $0x60] sm:$0xff]   ;;  %4857 = vmatprep.subr.bf16.mxu1 %v5426_v3  ;;  %s5626_s18 = scalar_lea.vmem %s5625_s17, 8192 }
  0xb8   : > { %591 = vmatprep.mubr.bf16.mxu0 %v5704_v0  ;;  %4910 = vmatpush3.bf16.msra.mxu0 %v5413_v52  ;;  %v4096_v9 = vadd.f32 %v4095_v7, %v4065_v5  ;;  %v4073_v25 = vunpack.c.l.bf16 %v339_v21  ;;  %v1634_v52 = vrot.slane %v1569_v50, 2  ;;  %v5428_v5 = vld [vmem:[#allocation8 + $0x48] sm:$0xff]   ;;  %v5430_v7 = vld [vmem:[#allocation8 + $0x58] sm:$0xff]   ;;  %p5628_p2 = scmp.lt.s32.totalorder %s5626_s18, %s5620_s14 }
  0xb9   : > { %4911 = vmatprep.subr.bf16.mxu0 %v5414_v58  ;;  %4858 = vmatpush3.bf16.msra.mxu1 %v5426_v3 }
  0xba   : > { %v4097_v12 = vadd.f32 %v4096_v9, %v4066_v8  ;;  %4859 = vmatprep.subr.bf16.mxu1 %v5428_v5  ;;  %v5431_v8 = vld [vmem:[#allocation8 + $0x60] sm:$0xff]   ;;  %v5432_v9 = vld [vmem:[#allocation8 + $0x68] sm:$0xff]   ;;  %p5629_p1 = por %p5628_p2, %p5627_p12 }
  0xbc   : > { %4912 = vmatpush3.bf16.msra.mxu0 %v5414_v58  ;;  %v4098_v14 = vadd.f32 %v4097_v12, %v4067_v10  ;;  %v1637_v58 = vrot.slane %v1571_v56, 2  ;;  %v5433_v10 = vld [vmem:[#allocation8 + $0x70] sm:$0xff]   ;;  %v5435_v12 = vld [vmem:[#allocation8 + $0x78] sm:$0xff]   ;;  %p5630_p4 = pnand %p5629_p1, %p5623_p7 }
  0xbd   : > { %4913 = vmatprep.subr.bf16.mxu0 %v6068_v46  ;;  %4860 = vmatpush3.bf16.msra.mxu1 %v5428_v5 }
  0xbe   : > { %v4099_v17 = vadd.f32 %v4098_v14, %v4068_v13  ;;  %v6093_v14 = vld [vmem:[%s7344_s2] ss:$0 sm:$0xff] }
  0xbf   : > { %592 = vmatmul.mubr.bf16.gmra.mrb[8].mxu0 %v6007_v28  ;;  %v4074_v28 = vunpack.c.h.bf16 %v339_v21 }
  0xc0   : > { %601 = vmatprep.mubr.bf16.mxu0 %v5704_v0  ;;  %v4100_v19 = vadd.f32 %v4099_v17, %v4069_v15  ;;  %4914 = vmatpush3.bf16.msra.mxu0 %v6068_v46 }
  0xc2   : > { %v4101_v22 = vadd.f32 %v4100_v19, %v4070_v18 }
  0xc4   : > { %v4102_v24 = vadd.f32 %v4101_v22, %v4071_v20 }
  0xc6   : > { %v4103_v27 = vadd.f32 %v4102_v24, %v4072_v23 }
  0xc7   : > { %602 = vmatmul.mubr.bf16.gmra.mrb[12].mxu0 %v6011_v34 }
  0xc8   : > { %611 = vmatprep.mubr.bf16.mxu0 %v5704_v0  ;;  %v4104_v29 = vadd.f32 %v4103_v27, %v4073_v25 }
  0xca   : > { %v4105_v32 = vadd.f32 %v4104_v29, %v4074_v28 }
  0xcc   : > { %v4106_v34 = vadd.f32 %v4105_v32, %v4075_v30 }
  0xce   : > { %v4107_v36 = vadd.f32 %v4106_v34, %v4076_v33 }
  0xcf   : > { %612 = vmatmul.mubr.bf16.gmra.mrb[16].mxu0 %v6016_v40  ;;  %v4080_v40 = vunpack.c.h.bf16 %v345_v38 }
  0xd0   : > { %621 = vmatprep.mubr.bf16.mxu0 %v5704_v0  ;;  %v4108_v39 = vadd.f32 %v4107_v36, %v4077_v35 }
  0xd2   : > { %v4109_v43 = vadd.f32 %v4108_v39, %v4078_v37 }
  0xd4   : > { %v4110_v44 = vadd.f32 %v4109_v43, %v4079_v42 }
  0xd6   : > { %v6059_v45 = vadd.f32 %v4110_v44, %v4080_v40 }
  0xd7   : > { %622 = vmatmul.mubr.bf16.gmra.mrb[20].mxu0 %v6023_v47  ;;  %v6072_v47 = vld [vmem:[#allocation8 + $0xa8] sm:$0xff]  }
  0xd8   : > { %631 = vmatprep.mubr.bf16.mxu0 %v5704_v0  ;;  %7371 = vst [vmem:[#allocation16_spill] sm:$0xff] %v6059_v45  ;;  %4915 = vmatprep.subr.bf16.mxu0 %v6072_v47 }
  0xd9   : > { %4916 = vmatpush3.bf16.msra.mxu0 %v6072_v47 }
  0xda   : > { %4917 = vmatprep.subr.bf16.mxu0 %v6077_v48 }
  0xdd   : > { %4918 = vmatpush3.bf16.msra.mxu0 %v6077_v48 }
  0xde   : > { %4919 = vmatprep.subr.bf16.mxu0 %v5418_v49 }
  0xdf   : > { %632 = vmatmul.mubr.bf16.gmra.mrb[24].mxu0 %v6031_v53  ;;  %v1635_v53 = vrot.slane %v1570_v51, 2 }
  0xe0   : > { %641 = vmatprep.mubr.bf16.mxu0 %v5704_v0 }
  0xe1   : > { %4920 = vmatpush3.bf16.msra.mxu0 %v5418_v49  ;;  %v1636_v55 = vsel %vm1633_vm0, %v1634_v52, %v1635_v53 }
  0xe2   : > { %5001 = vmatprep.subr.bf16.mxu0 %v5419_v54 }
  0xe7   : > { %642 = vmatmul.mubr.bf16.gmra.mrb[28].mxu0 %v6037_v59  ;;  %v1638_v59 = vrot.slane %v1572_v57, 2 }
  0xe8   : > { %651 = vmatprep.mubr.bf16.mxu0 %v5704_v0 }
  0xe9   : > { %v1639_v60 = vsel %vm1633_vm0, %v1637_v58, %v1638_v59 }
  0xef   : > { %652 = vmatmul.mubr.bf16.gmra.mrb[32].mxu0 %v331_v1  ;;  %v5424_v1 = vld [vmem:[#allocation8 + $0x128] sm:$0xff]  }
  0xf0   : > { %661 = vmatprep.mubr.bf16.mxu0 %v5704_v0 }
  0xf7   : > { %662 = vmatmul.mubr.bf16.gmra.mrb[36].mxu0 %v333_v6  ;;  %v5429_v6 = vld [vmem:[#allocation8 + $0x50] sm:$0xff]  }
  0xf8   : > { %671 = vmatprep.mubr.bf16.mxu0 %v5704_v0  ;;  %4861 = vmatprep.subr.bf16.mxu1 %v5429_v6 }
  0xf9   : > { %4862 = vmatpush3.bf16.msra.mxu1 %v5429_v6 }
  0xfa   : > { %4863 = vmatprep.subr.bf16.mxu1 %v5430_v7 }
  0xfd   : > { %4864 = vmatpush3.bf16.msra.mxu1 %v5430_v7 }
  0xfe   : > { %4865 = vmatprep.subr.bf16.mxu1 %v5431_v8 }
  0xff   : > { %672 = vmatmul.mubr.bf16.gmra.mrb[40].mxu0 %v335_v11  ;;  %v6086_v11 = vld [vmem:[#allocation8 + $0x180] sm:$0xff]  }
 0x100   : > { %681 = vmatprep.mubr.bf16.mxu0 %v5704_v0 }
 0x101   : > { %4866 = vmatpush3.bf16.msra.mxu1 %v5431_v8 }
 0x102   : > { %4867 = vmatprep.subr.bf16.mxu1 %v5432_v9 }
 0x105   : > { %4868 = vmatpush3.bf16.msra.mxu1 %v5432_v9 }
 0x106   : > { %4869 = vmatprep.subr.bf16.mxu1 %v5433_v10 }
 0x107   : > { %682 = vmatmul.mubr.bf16.gmra.mrb[44].mxu0 %v337_v16 }
 0x108   : > { %691 = vmatprep.mubr.bf16.mxu0 %v5704_v0 }
 0x109   : > { %4870 = vmatpush3.bf16.msra.mxu1 %v5433_v10 }
 0x10a   : > { %4871 = vmatprep.subr.bf16.mxu1 %v5435_v12 }
 0x10d   : > { %4872 = vmatpush3.bf16.msra.mxu1 %v5435_v12 }
 0x10e   : > { %5261 = vmatprep.subr.bf16.mxu1 %v6018_v41 }
 0x10f   : > { %692 = vmatmul.mubr.bf16.gmra.mrb[48].mxu0 %v339_v21 }
 0x110   : > { %701 = vmatprep.mubr.bf16.mxu0 %v5704_v0 }
 0x117   : > { %702 = vmatmul.mubr.bf16.gmra.mrb[52].mxu0 %v341_v26 }
 0x118   : > { %711 = vmatprep.mubr.bf16.mxu0 %v5704_v0 }
 0x11f   : > { %712 = vmatmul.mubr.bf16.gmra.mrb[56].mxu0 %v343_v31 }
 0x120   : > { %721 = vmatprep.mubr.bf16.mxu0 %v5704_v0  ;;  %v5421_v0 = vld [vmem:[#allocation8 + $0x110] sm:$0xff]  }
 0x127   : > { %722 = vmatmul.mubr.bf16.gmra.mrb[60].mxu0 %v345_v38 }
 0x128   : > { %4921 = vmatprep.mubr.bf16.mxu0 %v1636_v55 }
 0x12f   : > { %4922 = vmatmul.mubr.bf16.vlgmr.msra.gmra.mrb[64].mxu0 %v1639_v60 }
 0x130   : > { %5002 = vmatpush3.bf16.msra.mxu0 %v5419_v54 }
 0x131   : > { %5003 = vmatprep.subr.bf16.mxu0 %v5420_v61 }
 0x134   : > { %5004 = vmatpush3.bf16.msra.mxu0 %v5420_v61 }
 0x135   : > { %5005 = vmatprep.subr.bf16.mxu0 %v5421_v0 }
 0x138   : > { %5006 = vmatpush3.bf16.msra.mxu0 %v5421_v0 }
 0x139   : > { %5007 = vmatprep.subr.bf16.mxu0 %v5422_v62 }
 0x13c   : > { %5008 = vmatpush3.bf16.msra.mxu0 %v5422_v62 }
 0x13d   : > { %5009 = vmatprep.subr.bf16.mxu0 %v5423_v63 }
 0x140   : > { %5010 = vmatpush3.bf16.msra.mxu0 %v5423_v63 }
 0x141   : > { %5011 = vmatprep.subr.bf16.mxu0 %v5424_v1 }
 0x144   : > { %5012 = vmatpush3.bf16.msra.mxu0 %v5424_v1 }
 0x145   : > { %5013 = vmatprep.subr.bf16.mxu0 %v5425_v2 }
 0x148   : > { %5014 = vmatpush3.bf16.msra.mxu0 %v5425_v2 }
 0x149   : > { %5015 = vmatprep.subr.bf16.mxu0 %v5427_v4 }
 0x14c   : > { %5016 = vmatpush3.bf16.msra.mxu0 %v5427_v4 }
 0x14d   : > { %5097 = vmatprep.subr.bf16.mxu0 %v6086_v11 }
 0x182   : > { %v573_v13 = vpop.f32.mrb[0].mxu0  ;;  %v4827_v15 = vpop.f32.mrb[0].mxu1 }
 0x183   : > { %v575_v16 = vpop.f32.mrb[1].mxu0  ;;  %v1023_v17 = vpop.f32.mrb[1].mxu1  ;;  %v739_v21 = vadd.f32 %v6093_v14, %v573_v13 }
 0x184   : > { %v6095_v18 = vadd.f32 %v1023_v17, %v575_v16  ;;  %v577_v19 = vpop.f32.mrb[2].mxu0  ;;  %v4828_v20 = vpop.f32.mrb[2].mxu1 }
 0x185   : > { %v740_v22 = vadd.f32 %v6093_v14, %v577_v19  ;;  %v579_v23 = vpop.f32.mrb[3].mxu0  ;;  %v1026_v24 = vpop.f32.mrb[3].mxu1 }
 0x186   : > { %7372 = vst [vmem:[#allocation17_spill] sm:$0xff] %v6095_v18  ;;  %v6099_v41 = vadd.f32 %v1026_v24, %v579_v23 }
 0x187   : > { %v813_v25 = vpack.c.bf16 %v740_v22, %v739_v21 }
 0x188   : > { %7373 = vst [vmem:[#allocation18_spill] sm:$0xff] %v6099_v41 }
 0x189   : > { %v845_v26 = vrot.slane %v813_v25, 7 }
 0x18a   : > { %v583_v27 = vpop.f32.mrb[4].mxu0 }
 0x18b   : > { %877 = vst [vmem:[#allocation2 + $0x20] sm:$0xfe] %v845_v26  ;;  %878 = vst [vmem:[#allocation2 + $0x28] sm:$0x1] %v845_v26  ;;  %v585_v28 = vpop.f32.mrb[5].mxu0  ;;  %v741_v31 = vadd.f32 %v6093_v14, %v583_v27 }
 0x18c   : > { %v6101_v29 = vadd.f32 %v4827_v15, %v585_v28  ;;  %v587_v30 = vpop.f32.mrb[6].mxu0 }
 0x18d   : > { %v742_v32 = vadd.f32 %v6093_v14, %v587_v30  ;;  %v589_v33 = vpop.f32.mrb[7].mxu0 }
 0x18e   : > { %7374 = vst [vmem:[#allocation19_spill] sm:$0xff] %v6101_v29  ;;  %v6105_v34 = vadd.f32 %v4828_v20, %v589_v33 }
 0x18f   : > { %v814_v35 = vpack.c.bf16 %v742_v32, %v741_v31 }
 0x190   : > { %7375 = vst [vmem:[#allocation20_spill] sm:$0xff] %v6105_v34 }
 0x191   : > { %v846_v36 = vrot.slane %v814_v35, 7 }
 0x192   : > { %v593_v37 = vpop.f32.mrb[8].mxu0  ;;  %v911_v38 = vld [vmem:[#allocation2 + $0x20] sm:$0xff]  ;;  %v1574_v42 = vld [vmem:[#allocation2 + $0x28] sm:$0x3] }
 0x193   : > { %v1573_v39 = vld [vmem:[#allocation2 + $0x20] sm:$0xfc]  ;;  %879 = vst [vmem:[#allocation2 + $0x30] sm:$0xfe] %v846_v36  ;;  %880 = vst [vmem:[#allocation2 + $0x38] sm:$0x1] %v846_v36  ;;  %4829 = vmatprep.mubr.bf16.mxu1 %v911_v38  ;;  %v743_v50 = vadd.f32 %v6093_v14, %v593_v37 }
 0x194   : > { %v6107_v43 = vpop.f32.mrb[9].mxu0  ;;  %v1640_v40 = vrot.slane %v1573_v39, 2  ;;  %v1641_v44 = vrot.slane %v1574_v42, 2 }
 0x195   : > { %v597_v49 = vpop.f32.mrb[10].mxu0 }
 0x196   : > { %v744_v51 = vadd.f32 %v6093_v14, %v597_v49  ;;  %v6111_v52 = vpop.f32.mrb[11].mxu0  ;;  %v1642_v53 = vsel %vm1633_vm0, %v1640_v40, %v1641_v44 }
 0x197   : > { %4925 = vmatprep.mubr.bf16.mxu0 %v1642_v53 }
 0x198   : > { %v815_v54 = vpack.c.bf16 %v744_v51, %v743_v50 }
 0x19a   : > { %v847_v55 = vrot.slane %v815_v54, 7  ;;  %v603_v56 = vpop.f32.mrb[12].mxu0  ;;  %v912_v57 = vld [vmem:[#allocation2 + $0x30] sm:$0xff]  ;;  %v1576_v59 = vld [vmem:[#allocation2 + $0x38] sm:$0x3] }
 0x19b   : > { %v1575_v58 = vld [vmem:[#allocation2 + $0x30] sm:$0xfc]  ;;  %v6114_v60 = vpop.f32.mrb[13].mxu0  ;;  %4830 = vmatmul.mubr.bf16.gmra.mrb[4].mxu1 %v912_v57  ;;  %v1644_v0 = vrot.slane %v1576_v59, 2  ;;  %v745_v63 = vadd.f32 %v6093_v14, %v603_v56  ;;  %v2231_v59 = vld [vmem:[#allocation2 + $0x28] sm:$0x1] }
 0x19c   : > { %881 = vst [vmem:[#allocation2 + $0x40] sm:$0xfe] %v847_v55  ;;  %882 = vst [vmem:[#allocation2 + $0x48] sm:$0x1] %v847_v55  ;;  %v1643_v61 = vrot.slane %v1575_v58, 2  ;;  %v607_v62 = vpop.f32.mrb[14].mxu0 }
 0x19d   : > { %v746_v1 = vadd.f32 %v6093_v14, %v607_v62  ;;  %v6118_v2 = vpop.f32.mrb[15].mxu0  ;;  %v2230_v58 = vld [vmem:[#allocation2 + $0x20] sm:$0xfe] }
 0x19e   : > { %v1645_v3 = vsel %vm1633_vm0, %v1643_v61, %v1644_v0  ;;  %v2294_v62 = vrot.slane %v2230_v58, 1 }
 0x19f   : > { %4926 = vmatmul.mubr.bf16.gmra.mrb[68].mxu0 %v1645_v3  ;;  %v816_v4 = vpack.c.bf16 %v746_v1, %v745_v63  ;;  %v2295_v63 = vrot.slane %v2231_v59, 1 }
 0x1a1   : > { %v848_v5 = vrot.slane %v816_v4, 7 }
 0x1a2   : > { %v613_v6 = vpop.f32.mrb[16].mxu0 }
 0x1a3   : > { %v6121_v7 = vld [vmem:[#allocation2 + $0x40] sm:$0xff]  ;;  %v1578_v9 = vld [vmem:[#allocation2 + $0x48] sm:$0x3]  ;;  %883 = vst [vmem:[#allocation2 + $0x50] sm:$0xfe] %v848_v5  ;;  %v6123_v10 = vpop.f32.mrb[17].mxu0  ;;  %v747_v16 = vadd.f32 %v6093_v14, %v613_v6 }
 0x1a4   : > { %v1577_v8 = vld [vmem:[#allocation2 + $0x40] sm:$0xfc]  ;;  %884 = vst [vmem:[#allocation2 + $0x58] sm:$0x1] %v848_v5  ;;  %4833 = vmatprep.mubr.bf16.mxu1 %v6121_v7  ;;  %v1647_v13 = vrot.slane %v1578_v9, 2  ;;  %v617_v15 = vpop.f32.mrb[18].mxu0 }
 0x1a5   : > { %v1646_v12 = vrot.slane %v1577_v8, 2  ;;  %v748_v17 = vadd.f32 %v6093_v14, %v617_v15  ;;  %v6128_v19 = vpop.f32.mrb[19].mxu0 }
 0x1a7   : > { %v1648_v20 = vsel %vm1633_vm0, %v1646_v12, %v1647_v13  ;;  %v817_v21 = vpack.c.bf16 %v748_v17, %v747_v16 }
 0x1a8   : > { %4929 = vmatprep.mubr.bf16.mxu0 %v1648_v20  ;;  %v2296_v20 = vsel %vm1246_vm1, %v2294_v62, %v2295_v63 }
 0x1a9   : > { %v849_v22 = vrot.slane %v817_v21, 7  ;;  %v2232_v21 = vld [vmem:[#allocation2 + $0x30] sm:$0xfe] }
 0x1aa   : > { %v623_v23 = vpop.f32.mrb[20].mxu0  ;;  %v6131_v24 = vld [vmem:[#allocation2 + $0x50] sm:$0xff] }
 0x1ab   : > { %v1579_v25 = vld [vmem:[#allocation2 + $0x50] sm:$0xfc]  ;;  %v1580_v26 = vld [vmem:[#allocation2 + $0x58] sm:$0x3]  ;;  %885 = vst [vmem:[#allocation2 + $0x60] sm:$0xfe] %v849_v22  ;;  %4834 = vmatmul.mubr.bf16.gmra.mrb[8].mxu1 %v6131_v24  ;;  %v749_v32 = vadd.f32 %v6093_v14, %v623_v23 }
 0x1ac   : > { %886 = vst [vmem:[#allocation2 + $0x68] sm:$0x1] %v849_v22  ;;  %v6133_v27 = vpop.f32.mrb[21].mxu0  ;;  %v1649_v28 = vrot.slane %v1579_v25, 2  ;;  %v1650_v30 = vrot.slane %v1580_v26, 2 }
 0x1ad   : > { %v627_v31 = vpop.f32.mrb[22].mxu0  ;;  %v2233_v22 = vld [vmem:[#allocation2 + $0x38] sm:$0x1]  ;;  %v2234_v25 = vld [vmem:[#allocation2 + $0x40] sm:$0xfe] }
 0x1ae   : > { %v750_v33 = vadd.f32 %v6093_v14, %v627_v31  ;;  %v6138_v35 = vpop.f32.mrb[23].mxu0  ;;  %v1651_v36 = vsel %vm1633_vm0, %v1649_v28, %v1650_v30  ;;  %v2235_v26 = vld [vmem:[#allocation2 + $0x48] sm:$0x1]  ;;  %v2297_v30 = vrot.slane %v2232_v21, 1  ;;  %v2298_v31 = vrot.slane %v2233_v22, 1 }
 0x1af   : > { %4930 = vmatmul.mubr.bf16.gmra.mrb[72].mxu0 %v1651_v36  ;;  %v2300_v36 = vrot.slane %v2234_v25, 1 }
 0x1b0   : > { %v818_v37 = vpack.c.bf16 %v750_v33, %v749_v32 }
 0x1b2   : > { %v850_v38 = vrot.slane %v818_v37, 7  ;;  %v633_v39 = vpop.f32.mrb[24].mxu0  ;;  %v6141_v42 = vld [vmem:[#allocation2 + $0x60] sm:$0xff]  ;;  %v2301_v37 = vrot.slane %v2235_v26, 1 }
 0x1b3   : > { %v1581_v40 = vld [vmem:[#allocation2 + $0x60] sm:$0xfc]  ;;  %v1582_v44 = vld [vmem:[#allocation2 + $0x68] sm:$0x3]  ;;  %v6143_v49 = vpop.f32.mrb[25].mxu0  ;;  %4837 = vmatprep.mubr.bf16.mxu1 %v6141_v42  ;;  %v751_v54 = vadd.f32 %v6093_v14, %v633_v39 }
 0x1b4   : > { %887 = vst [vmem:[#allocation2 + $0x70] sm:$0xfe] %v850_v38  ;;  %888 = vst [vmem:[#allocation2 + $0x78] sm:$0x1] %v850_v38  ;;  %v1652_v50 = vrot.slane %v1581_v40, 2  ;;  %v1653_v51 = vrot.slane %v1582_v44, 2 }
 0x1b5   : > { %v637_v53 = vpop.f32.mrb[26].mxu0  ;;  %v5436_v40 = vld [vmem:[#allocation8 + $0x188] sm:$0xff]   ;;  %v2238_v59 = vld [vmem:[#allocation2 + $0x60] sm:$0xfe] }
 0x1b6   : > { %v752_v55 = vadd.f32 %v6093_v14, %v637_v53  ;;  %v6148_v56 = vpop.f32.mrb[27].mxu0  ;;  %v1654_v57 = vsel %vm1633_vm0, %v1652_v50, %v1653_v51  ;;  %v2299_v53 = vsel %vm1246_vm1, %v2297_v30, %v2298_v31  ;;  %v5439_v31 = vld [vmem:[#allocation8 + $0x1a0] sm:$0xff]  }
 0x1b7   : > { %4933 = vmatprep.mubr.bf16.mxu0 %v1654_v57  ;;  %v2237_v57 = vld [vmem:[#allocation2 + $0x58] sm:$0x1] }
 0x1b8   : > { %v819_v61 = vpack.c.bf16 %v752_v55, %v751_v54  ;;  %v2302_v54 = vsel %vm1246_vm1, %v2300_v36, %v2301_v37  ;;  %v2236_v55 = vld [vmem:[#allocation2 + $0x50] sm:$0xfe] }
 0x1b9   : > { %v2303_v63 = vrot.slane %v2236_v55, 1  ;;  %v5440_v55 = vld [vmem:[#allocation8 + $0x1a8] sm:$0xff]  }
 0x1ba   : > { %v851_v0 = vrot.slane %v819_v61, 7  ;;  %v643_v1 = vpop.f32.mrb[28].mxu0  ;;  %v2239_v61 = vld [vmem:[#allocation2 + $0x68] sm:$0x1] }
 0x1bb   : > { %v6151_v3 = vld [vmem:[#allocation2 + $0x70] sm:$0xff]  ;;  %v1584_v5 = vld [vmem:[#allocation2 + $0x78] sm:$0x3]  ;;  %v6153_v6 = vpop.f32.mrb[29].mxu0  ;;  %v753_v13 = vadd.f32 %v6093_v14, %v643_v1  ;;  %v2304_v1 = vrot.slane %v2237_v57, 1 }
 0x1bc   : > { %v1583_v4 = vld [vmem:[#allocation2 + $0x70] sm:$0xfc]  ;;  %889 = vst [vmem:[#allocation2 + $0x80] sm:$0xfe] %v851_v0  ;;  %890 = vst [vmem:[#allocation2 + $0x88] sm:$0x1] %v851_v0  ;;  %4838 = vmatmul.mubr.bf16.gmra.mrb[12].mxu1 %v6151_v3 }
 0x1bd   : > { %v1655_v8 = vrot.slane %v1583_v4, 2  ;;  %v1656_v9 = vrot.slane %v1584_v5, 2  ;;  %v647_v12 = vpop.f32.mrb[30].mxu0  ;;  %v5437_v0 = vld [vmem:[#allocation8 + $0x190] sm:$0xff]   ;;  %v2305_v21 = vsel %vm1246_vm1, %v2303_v63, %v2304_v1  ;;  %v2241_v25 = vld [vmem:[#allocation2 + $0x78] sm:$0x1] }
 0x1be   : > { %v754_v15 = vadd.f32 %v6093_v14, %v647_v12  ;;  %v6158_v16 = vpop.f32.mrb[31].mxu0  ;;  %v2310_v37 = vrot.slane %v2241_v25, 1 }
 0x1bf   : > { %v1657_v17 = vsel %vm1633_vm0, %v1655_v8, %v1656_v9  ;;  %v2306_v8 = vrot.slane %v2238_v59, 1  ;;  %v2307_v9 = vrot.slane %v2239_v61, 1 }
 0x1c0   : > { %4934 = vmatmul.mubr.bf16.gmra.mrb[76].mxu0 %v1657_v17  ;;  %v820_v23 = vpack.c.bf16 %v754_v15, %v753_v13 }
 0x1c1   : > { %5017 = vmatprep.mubr.bf16.mxu0 %v2296_v20  ;;  %v2308_v22 = vsel %vm1246_vm1, %v2306_v8, %v2307_v9  ;;  %v5441_v9 = vld [vmem:[#allocation8 + $0x1b0] sm:$0xff]  }
 0x1c2   : > { %v852_v28 = vrot.slane %v820_v23, 7  ;;  %v653_v32 = vpop.f32.mrb[32].mxu0  ;;  %v2240_v23 = vld [vmem:[#allocation2 + $0x70] sm:$0xfe] }
 0x1c3   : > { %v6162_v33 = vld [vmem:[#allocation2 + $0x80] sm:$0xff]  ;;  %v6164_v38 = vpop.f32.mrb[33].mxu0  ;;  %v755_v44 = vadd.f32 %v6093_v14, %v653_v32  ;;  %v2243_v30 = vld [vmem:[#allocation2 + $0x88] sm:$0x1]  ;;  %v2309_v36 = vrot.slane %v2240_v23, 1 }
 0x1c4   : > { %891 = vst [vmem:[#allocation2 + $0x90] sm:$0xfe] %v852_v28  ;;  %892 = vst [vmem:[#allocation2 + $0x98] sm:$0x1] %v852_v28  ;;  %4841 = vmatprep.mubr.bf16.mxu1 %v6162_v33  ;;  %v657_v39 = vpop.f32.mrb[34].mxu0 }
 0x1c5   : > { %v756_v50 = vadd.f32 %v6093_v14, %v657_v39  ;;  %v6169_v51 = vpop.f32.mrb[35].mxu0  ;;  %v2242_v28 = vld [vmem:[#allocation2 + $0x80] sm:$0xfe]  ;;  %v2311_v61 = vsel %vm1246_vm1, %v2309_v36, %v2310_v37 }
 0x1c7   : > { %v821_v58 = vpack.c.bf16 %v756_v50, %v755_v44  ;;  %v2312_v44 = vrot.slane %v2242_v28, 1  ;;  %v2313_v50 = vrot.slane %v2243_v30, 1  ;;  %v5442_v28 = vld [vmem:[#allocation8 + $0x1b8] sm:$0xff]  }
 0x1c8   : > { %5018 = vmatmul.mubr.bf16.vlgmr.msra.gmra.mrb[80].mxu0 %v2299_v53 }
 0x1c9   : > { %5021 = vmatprep.mubr.bf16.mxu0 %v2302_v54  ;;  %5098 = vmatpush3.bf16.msra.mxu0 %v6086_v11  ;;  %v853_v62 = vrot.slane %v821_v58, 7  ;;  %v5438_v11 = vld [vmem:[#allocation8 + $0x198] sm:$0xff]  }
 0x1ca   : > { %5099 = vmatprep.subr.bf16.mxu0 %v5436_v40  ;;  %v663_v4 = vpop.f32.mrb[36].mxu0 }
 0x1cb   : > { %v6174_v5 = vld [vmem:[#allocation2 + $0x90] sm:$0xff]  ;;  %893 = vst [vmem:[#allocation2 + $0xa0] sm:$0xfe] %v853_v62  ;;  %894 = vst [vmem:[#allocation2 + $0xa8] sm:$0x1] %v853_v62  ;;  %v6176_v12 = vpop.f32.mrb[37].mxu0  ;;  %v757_v15 = vadd.f32 %v6093_v14, %v663_v4 }
 0x1cc   : > { %4842 = vmatmul.mubr.bf16.gmra.mrb[16].mxu1 %v6174_v5  ;;  %v667_v13 = vpop.f32.mrb[38].mxu0  ;;  %v2244_v62 = vld [vmem:[#allocation2 + $0x90] sm:$0xfe]  ;;  %v2245_v63 = vld [vmem:[#allocation2 + $0x98] sm:$0x1] }
 0x1cd   : > { %5100 = vmatpush3.bf16.msra.mxu0 %v5436_v40  ;;  %v758_v17 = vadd.f32 %v6093_v14, %v667_v13  ;;  %v6181_v20 = vpop.f32.mrb[39].mxu0 }
 0x1ce   : > { %5101 = vmatprep.subr.bf16.mxu0 %v5437_v0 }
 0x1cf   : > { %v822_v26 = vpack.c.bf16 %v758_v17, %v757_v15  ;;  %v2316_v15 = vrot.slane %v2245_v63, 1 }
 0x1d0   : > { %5022 = vmatmul.mubr.bf16.gmra.mrb[84].mxu0 %v2305_v21 }
 0x1d1   : > { %5025 = vmatprep.mubr.bf16.mxu0 %v2308_v22  ;;  %5102 = vmatpush3.bf16.msra.mxu0 %v5437_v0  ;;  %v854_v32 = vrot.slane %v822_v26, 7  ;;  %v2314_v0 = vsel %vm1246_vm1, %v2312_v44, %v2313_v50 }
 0x1d2   : > { %5103 = vmatprep.subr.bf16.mxu0 %v5438_v11  ;;  %v673_v39 = vpop.f32.mrb[40].mxu0  ;;  %v6185_v40 = vld [vmem:[#allocation2 + $0xa0] sm:$0xff]  ;;  %v2247_v8 = vld [vmem:[#allocation2 + $0xa8] sm:$0x1] }
 0x1d3   : > { %895 = vst [vmem:[#allocation2 + $0xb0] sm:$0xfe] %v854_v32  ;;  %896 = vst [vmem:[#allocation2 + $0xb8] sm:$0x1] %v854_v32  ;;  %v6187_v53 = vpop.f32.mrb[41].mxu0  ;;  %4845 = vmatprep.mubr.bf16.mxu1 %v6185_v40  ;;  %v759_v57 = vadd.f32 %v6093_v14, %v673_v39  ;;  %v2319_v23 = vrot.slane %v2247_v8, 1 }
 0x1d4   : > { %v677_v54 = vpop.f32.mrb[42].mxu0  ;;  %v2246_v4 = vld [vmem:[#allocation2 + $0xa0] sm:$0xfe] }
 0x1d5   : > { %5104 = vmatpush3.bf16.msra.mxu0 %v5438_v11  ;;  %v760_v58 = vadd.f32 %v6093_v14, %v677_v54  ;;  %v6192_v59 = vpop.f32.mrb[43].mxu0  ;;  %v2315_v11 = vrot.slane %v2244_v62, 1  ;;  %v2318_v22 = vrot.slane %v2246_v4, 1  ;;  %v6207_v54 = vld [vmem:[#allocation8 + $0x200] sm:$0xff]  }
 0x1d6   : > { %5105 = vmatprep.subr.bf16.mxu0 %v5439_v31 }
 0x1d7   : > { %v823_v1 = vpack.c.bf16 %v760_v58, %v759_v57  ;;  %v2317_v36 = vsel %vm1246_vm1, %v2315_v11, %v2316_v15  ;;  %v2320_v37 = vsel %vm1246_vm1, %v2318_v22, %v2319_v23 }
 0x1d8   : > { %5026 = vmatmul.mubr.bf16.gmra.mrb[88].mxu0 %v2311_v61 }
 0x1d9   : > { %5029 = vmatprep.mubr.bf16.mxu0 %v2314_v0  ;;  %5106 = vmatpush3.bf16.msra.mxu0 %v5439_v31  ;;  %v855_v13 = vrot.slane %v823_v1, 7 }
 0x1da   : > { %5107 = vmatprep.subr.bf16.mxu0 %v5440_v55  ;;  %v683_v17 = vpop.f32.mrb[44].mxu0  ;;  %v6196_v21 = vld [vmem:[#allocation2 + $0xb0] sm:$0xff]  ;;  %v2249_v44 = vld [vmem:[#allocation2 + $0xb8] sm:$0x1] }
 0x1db   : > { %897 = vst [vmem:[#allocation2 + $0xc0] sm:$0xfe] %v855_v13  ;;  %898 = vst [vmem:[#allocation2 + $0xc8] sm:$0x1] %v855_v13  ;;  %v6198_v25 = vpop.f32.mrb[45].mxu0  ;;  %4846 = vmatmul.mubr.bf16.gmra.mrb[20].mxu1 %v6196_v21  ;;  %v761_v30 = vadd.f32 %v6093_v14, %v683_v17  ;;  %v2322_v58 = vrot.slane %v2249_v44, 1 }
 0x1dc   : > { %v687_v26 = vpop.f32.mrb[46].mxu0  ;;  %v2248_v39 = vld [vmem:[#allocation2 + $0xb0] sm:$0xfe] }
 0x1dd   : > { %5108 = vmatpush3.bf16.msra.mxu0 %v5440_v55  ;;  %v762_v31 = vadd.f32 %v6093_v14, %v687_v26  ;;  %v6203_v32 = vpop.f32.mrb[47].mxu0  ;;  %v2321_v57 = vrot.slane %v2248_v39, 1 }
 0x1de   : > { %5109 = vmatprep.subr.bf16.mxu0 %v5441_v9 }
 0x1df   : > { %v824_v50 = vpack.c.bf16 %v762_v31, %v761_v30  ;;  %v2323_v17 = vsel %vm1246_vm1, %v2321_v57, %v2322_v58 }
 0x1e0   : > { %5030 = vmatmul.mubr.bf16.gmra.mrb[92].mxu0 %v2317_v36 }
 0x1e1   : > { %5033 = vmatprep.mubr.bf16.mxu0 %v2320_v37  ;;  %5110 = vmatpush3.bf16.msra.mxu0 %v5441_v9  ;;  %v856_v55 = vrot.slane %v824_v50, 7 }
 0x1e2   : > { %5111 = vmatprep.subr.bf16.mxu0 %v5442_v28  ;;  %v693_v61 = vpop.f32.mrb[48].mxu0  ;;  %v6209_v0 = vld [vmem:[#allocation2 + $0xc0] sm:$0xff]  ;;  %v2251_v63 = vld [vmem:[#allocation2 + $0xc8] sm:$0x1] }
 0x1e3   : > { %v2250_v62 = vld [vmem:[#allocation2 + $0xc0] sm:$0xfe]  ;;  %899 = vst [vmem:[#allocation2 + $0xd0] sm:$0xfe] %v856_v55  ;;  %900 = vst [vmem:[#allocation2 + $0xd8] sm:$0x1] %v856_v55  ;;  %4849 = vmatprep.mubr.bf16.mxu1 %v6209_v0  ;;  %v763_v13 = vadd.f32 %v6093_v14, %v693_v61 }
 0x1e4   : > { %v6211_v1 = vpop.f32.mrb[49].mxu0  ;;  %v2324_v4 = vrot.slane %v2250_v62, 1  ;;  %v2325_v8 = vrot.slane %v2251_v63, 1 }
 0x1e5   : > { %5112 = vmatpush3.bf16.msra.mxu0 %v5442_v28  ;;  %v697_v9 = vpop.f32.mrb[50].mxu0 }
 0x1e6   : > { %5193 = vmatprep.subr.bf16.mxu0 %v6207_v54  ;;  %v764_v11 = vadd.f32 %v6093_v14, %v697_v9  ;;  %v6217_v15 = vpop.f32.mrb[51].mxu0  ;;  %v2326_v22 = vsel %vm1246_vm1, %v2324_v4, %v2325_v8  ;;  %v1182_v4 = vld [vmem:[#allocation2] sm:$0xfe]  ;;  %v1183_v8 = vld [vmem:[#allocation2 + $0x8] sm:$0x1] }
 0x1e8   : > { %5034 = vmatmul.mubr.bf16.gmra.mrb[96].mxu0 %v2323_v17  ;;  %v825_v23 = vpack.c.bf16 %v764_v11, %v763_v13 }
 0x1e9   : > { %5037 = vmatprep.mubr.bf16.mxu0 %v2326_v22 }
 0x1ea   : > { %v857_v26 = vrot.slane %v825_v23, 7  ;;  %v703_v30 = vpop.f32.mrb[52].mxu0  ;;  %v6221_v31 = vld [vmem:[#allocation2 + $0xd0] sm:$0xff]  ;;  %v2253_v36 = vld [vmem:[#allocation2 + $0xd8] sm:$0x1] }
 0x1eb   : > { %v2252_v28 = vld [vmem:[#allocation2 + $0xd0] sm:$0xfe]  ;;  %v6223_v37 = vpop.f32.mrb[53].mxu0  ;;  %4850 = vmatmul.mubr.bf16.gmra.mrb[24].mxu1 %v6221_v31  ;;  %v2328_v44 = vrot.slane %v2253_v36, 1  ;;  %v765_v55 = vadd.f32 %v6093_v14, %v703_v30 }
 0x1ec   : > { %901 = vst [vmem:[#allocation2 + $0xe0] sm:$0xfe] %v857_v26  ;;  %902 = vst [vmem:[#allocation2 + $0xe8] sm:$0x1] %v857_v26  ;;  %v2327_v39 = vrot.slane %v2252_v28, 1  ;;  %v707_v50 = vpop.f32.mrb[54].mxu0 }
 0x1ed   : > { %v766_v57 = vadd.f32 %v6093_v14, %v707_v50  ;;  %v6228_v58 = vpop.f32.mrb[55].mxu0  ;;  %v1247_v50 = vrot.slane %v1182_v4, 1 }
 0x1ee   : > { %v2329_v61 = vsel %vm1246_vm1, %v2327_v39, %v2328_v44 }
 0x1ef   : > { %v826_v62 = vpack.c.bf16 %v766_v57, %v765_v55  ;;  %v1248_v55 = vrot.slane %v1183_v8, 1 }
 0x1f0   : > { %5038 = vmatmul.mubr.bf16.gmra.mrb[100].mxu0 %v2329_v61  ;;  %v1184_v61 = vld [vmem:[#allocation2 + $0x10] sm:$0xfe] }
 0x1f1   : > { %v858_v63 = vrot.slane %v826_v62, 7 }
 0x1f2   : > { %v713_v13 = vpop.f32.mrb[56].mxu0 }
 0x1f3   : > { %v6231_v9 = vld [vmem:[#allocation2 + $0xe0] sm:$0xff]  ;;  %v2255_v17 = vld [vmem:[#allocation2 + $0xe8] sm:$0x1]  ;;  %903 = vst [vmem:[#allocation2 + $0xf0] sm:$0xfe] %v858_v63  ;;  %v767_v22 = vadd.f32 %v6093_v14, %v713_v13  ;;  %v6235_v30 = vpop.f32.mrb[57].mxu0 }
 0x1f4   : > { %v2254_v11 = vld [vmem:[#allocation2 + $0xe0] sm:$0xfe]  ;;  %904 = vst [vmem:[#allocation2 + $0xf8] sm:$0x1] %v858_v63  ;;  %4853 = vmatprep.mubr.bf16.mxu1 %v6231_v9  ;;  %v2331_v26 = vrot.slane %v2255_v17, 1  ;;  %v717_v28 = vpop.f32.mrb[58].mxu0  ;;  %v1249_v63 = vsel %vm1246_vm1, %v1247_v50, %v1248_v55 }
 0x1f5   : > { %v2330_v23 = vrot.slane %v2254_v11, 1  ;;  %v768_v39 = vadd.f32 %v6093_v14, %v717_v28  ;;  %v6239_v44 = vpop.f32.mrb[59].mxu0  ;;  %v1185_v13 = vld [vmem:[#allocation2 + $0x18] sm:$0x1]  ;;  %v1187_v50 = vld [vmem:[#allocation2 + $0x28] sm:$0x1] }
 0x1f6   : > { %7376 = vst [vmem:[#allocation21_spill] sm:$0xff] %v6239_v44  ;;  %v1254_v18 = vrot.slane %v1187_v50, 1  ;;  %v5500_v50 = vld [vmem:[#allocation8 + $0x88] sm:$0xff]  }
 0x1f7   : > { %v2332_v36 = vsel %vm1246_vm1, %v2330_v23, %v2331_v26  ;;  %v827_v57 = vpack.c.bf16 %v768_v39, %v767_v22  ;;  %v1250_v22 = vrot.slane %v1184_v61, 1  ;;  %v1186_v39 = vld [vmem:[#allocation2 + $0x20] sm:$0xfe] }
 0x1f8   : > { %5041 = vmatprep.mubr.bf16.mxu0 %v2332_v36  ;;  %v1251_v36 = vrot.slane %v1185_v13, 1  ;;  %v1189_v13 = vld [vmem:[#allocation2 + $0x38] sm:$0x1] }
 0x1f9   : > { %v859_v62 = vrot.slane %v827_v57, 7 }
 0x1fa   : > { %v723_v11 = vpop.f32.mrb[60].mxu0  ;;  %v6242_v17 = vld [vmem:[#allocation2 + $0xf0] sm:$0xff]  ;;  %v1252_v29 = vsel %vm1246_vm1, %v1250_v22, %v1251_v36  ;;  %v1190_v22 = vld [vmem:[#allocation2 + $0x40] sm:$0xfe]  ;;  %v1191_v36 = vld [vmem:[#allocation2 + $0x48] sm:$0x1] }
 0x1fb   : > { %v2256_v45 = vld [vmem:[#allocation2 + $0xf0] sm:$0xfe]  ;;  %v2257_v41 = vld [vmem:[#allocation2 + $0xf8] sm:$0x1]  ;;  %905 = vst [vmem:[#allocation2 + $0x100] sm:$0xfe] %v859_v62  ;;  %v769_v23 = vadd.f32 %v6093_v14, %v723_v11  ;;  %4854 = vmatmul.mubr.bf16.gmra.mrb[28].mxu1 %v6242_v17 }
 0x1fc   : > { %906 = vst [vmem:[#allocation2 + $0x108] sm:$0x1] %v859_v62  ;;  %v6245_v26 = vpop.f32.mrb[61].mxu0  ;;  %v2333_v4 = vrot.slane %v2256_v45, 1  ;;  %v2334_v8 = vrot.slane %v2257_v41, 1  ;;  %4873 = vmatprep.mubr.bf16.mxu1 %v1249_v63  ;;  %v1253_v11 = vrot.slane %v1186_v39, 1 }
 0x1fd   : > { %v727_v28 = vpop.f32.mrb[62].mxu0  ;;  %v1188_v41 = vld [vmem:[#allocation2 + $0x30] sm:$0xfe] }
 0x1fe   : > { %v770_v55 = vadd.f32 %v6093_v14, %v727_v28  ;;  %v2335_v57 = vsel %vm1246_vm1, %v2333_v4, %v2334_v8  ;;  %v6250_v34 = vpop.f32.mrb[63].mxu0  ;;  %v1255_v14 = vsel %vm1246_vm1, %v1253_v11, %v1254_v18  ;;  %v1257_v18 = vrot.slane %v1189_v13, 1  ;;  %v5501_v11 = vld [vmem:[#allocation8 + $0x90] sm:$0xff]   ;;  %v1195_v13 = vld [vmem:[#allocation2 + $0x68] sm:$0x1] }
 0x1ff   : > { %5042 = vmatmul.mubr.bf16.gmra.mrb[104].mxu0 %v2335_v57 }
 0x200   : > { %v828_v62 = vpack.c.bf16 %v770_v55, %v769_v23  ;;  %v5499_v23 = vld [vmem:[#allocation8 + $0x80] sm:$0xff]  }
 0x202   : > { %v860_v45 = vrot.slane %v828_v62, 7  ;;  %v2258_v61 = vld [vmem:[#allocation2 + $0x100] sm:$0xfe]  ;;  %v6253_v63 = vpop.f32.mrb[64].mxu0  ;;  %v1259_v62 = vrot.slane %v1190_v22, 1 }
 0x203   : > { %v2259_v44 = vld [vmem:[#allocation2 + $0x108] sm:$0x1]  ;;  %4874 = vmatmul.mubr.bf16.vlgmr.msra.gmra.mrb[32].mxu1 %v1252_v29  ;;  %v2336_v4 = vrot.slane %v2258_v61, 1  ;;  %v6256_v28 = vpop.f32.mrb[65].mxu0  ;;  %v1256_v29 = vrot.slane %v1188_v41, 1 }
 0x204   : > { %907 = vst [vmem:[#allocation2 + $0x110] sm:$0xfe] %v860_v45  ;;  %908 = vst [vmem:[#allocation2 + $0x118] sm:$0x1] %v860_v45  ;;  %v2337_v8 = vrot.slane %v2259_v44, 1  ;;  %5269 = vmatpush3.bf16.msra.mxu1 %v5499_v23  ;;  %4877 = vmatprep.mubr.bf16.mxu1 %v1255_v14  ;;  %v6258_v39 = vpop.f32.mrb[66].mxu0 }
 0x205   : > { %7377 = vst [vmem:[#allocation22_spill] sm:$0xff] %v6256_v28  ;;  %7378 = vst [vmem:[#allocation23_spill] sm:$0xff] %v6258_v39  ;;  %5262 = vmatprep.subr.bf16.mxu1 %v5500_v50  ;;  %v6261_v57 = vpop.f32.mrb[67].mxu0  ;;  %v1260_v44 = vrot.slane %v1191_v36, 1  ;;  %v1258_v45 = vsel %vm1246_vm1, %v1256_v29, %v1257_v18  ;;  %v1194_v41 = vld [vmem:[#allocation2 + $0x60] sm:$0xfe] }
 0x206   : > { %v2338_v55 = vsel %vm1246_vm1, %v2336_v4, %v2337_v8  ;;  %v1192_v4 = vld [vmem:[#allocation2 + $0x50] sm:$0xfe]  ;;  %v1193_v8 = vld [vmem:[#allocation2 + $0x58] sm:$0x1]  ;;  %v1265_v29 = vrot.slane %v1194_v41, 1  ;;  %v1266_v18 = vrot.slane %v1195_v13, 1 }
 0x207   : > { %5045 = vmatprep.mubr.bf16.mxu0 %v2338_v55  ;;  %v1261_v23 = vsel %vm1246_vm1, %v1259_v62, %v1260_v44  ;;  %v5502_v36 = vld [vmem:[#allocation8 + $0x98] sm:$0xff]   ;;  %v1263_v55 = vrot.slane %v1193_v8, 1  ;;  %v5445_v8 = vld [vmem:[#allocation8 + $0x210] sm:$0xff]  }
 0x208   : > { %5270 = vmatpush3.bf16.msra.mxu1 %v5500_v50  ;;  %v1262_v50 = vrot.slane %v1192_v4, 1  ;;  %v1267_v44 = vsel %vm1246_vm1, %v1265_v29, %v1266_v18  ;;  %v1201_v13 = vld [vmem:[#allocation2 + $0x98] sm:$0x1] }
 0x209   : > { %5263 = vmatprep.subr.bf16.mxu1 %v5501_v11 }
 0x20a   : > { %v1264_v62 = vsel %vm1246_vm1, %v1262_v50, %v1263_v55  ;;  %v5504_v50 = vld [vmem:[#allocation8 + $0xb8] sm:$0xff]   ;;  %v1275_v55 = vrot.slane %v1201_v13, 1  ;;  %v1210_v13 = vld [vmem:[#allocation2 + $0xe0] sm:$0xfe] }
 0x20b   : > { %v2260_v61 = vld [vmem:[#allocation2 + $0x110] sm:$0xfe]  ;;  %v2261_v14 = vld [vmem:[#allocation2 + $0x118] sm:$0x1]  ;;  %4878 = vmatmul.mubr.bf16.gmra.mrb[36].mxu1 %v1258_v45 }
 0x20c   : > { %v2339_v39 = vrot.slane %v2260_v61, 1  ;;  %v2340_v28 = vrot.slane %v2261_v14, 1  ;;  %4881 = vmatprep.mubr.bf16.mxu1 %v1261_v23  ;;  %5271 = vmatpush3.bf16.msra.mxu1 %v5501_v11  ;;  %v1196_v11 = vld [vmem:[#allocation2 + $0x70] sm:$0xfe]  ;;  %v1197_v45 = vld [vmem:[#allocation2 + $0x78] sm:$0x1] }
 0x20d   : > { %5264 = vmatprep.subr.bf16.mxu1 %v5502_v36  ;;  %v5444_v61 = vld [vmem:[#allocation8 + $0x208] sm:$0xff]   ;;  %v1269_v14 = vrot.slane %v1197_v45, 1  ;;  %v1204_v45 = vld [vmem:[#allocation2 + $0xb0] sm:$0xfe] }
 0x20e   : > { %v2341_v22 = vsel %vm1246_vm1, %v2339_v39, %v2340_v28  ;;  %v1198_v28 = vld [vmem:[#allocation2 + $0x80] sm:$0xfe]  ;;  %v1199_v39 = vld [vmem:[#allocation2 + $0x88] sm:$0x1] }
 0x20f   : > { %5046 = vmatmul.mubr.bf16.gmra.mrb[108].mxu0 %v2341_v22  ;;  %v1271_v23 = vrot.slane %v1198_v28, 1  ;;  %v1272_v4 = vrot.slane %v1199_v39, 1  ;;  %v1203_v22 = vld [vmem:[#allocation2 + $0xa8] sm:$0x1]  ;;  %v1205_v28 = vld [vmem:[#allocation2 + $0xb8] sm:$0x1] }
 0x210   : > { %5113 = vmatprep.mubr.bf16.mxu0 %v6121_v7  ;;  %5272 = vmatpush3.bf16.msra.mxu1 %v5502_v36  ;;  %v1268_v7 = vrot.slane %v1196_v11, 1  ;;  %v5503_v36 = vld [vmem:[#allocation8 + $0xb0] sm:$0xff]   ;;  %v1278_v18 = vrot.slane %v1203_v22, 1  ;;  %v1207_v39 = vld [vmem:[#allocation2 + $0xc8] sm:$0x1] }
 0x211   : > { %5265 = vmatprep.subr.bf16.mxu1 %v6068_v46  ;;  %v1273_v41 = vsel %vm1246_vm1, %v1271_v23, %v1272_v4  ;;  %v1284_v23 = vrot.slane %v1207_v39, 1  ;;  %v5453_v4 = vld [vmem:[#allocation8 + $0x230] sm:$0xff]   ;;  %v1588_v39 = vld [vmem:[#allocation2 + $0x98] sm:$0x3] }
 0x213   : > { %4882 = vmatmul.mubr.bf16.gmra.mrb[40].mxu1 %v1264_v62  ;;  %v5449_v62 = vld [vmem:[#allocation8 + $0x220] sm:$0xff]  }
 0x214   : > { %4885 = vmatprep.mubr.bf16.mxu1 %v1267_v44  ;;  %5273 = vmatpush3.bf16.msra.mxu1 %v6068_v46  ;;  %v1270_v46 = vsel %vm1246_vm1, %v1268_v7, %v1269_v14  ;;  %v1281_v7 = vrot.slane %v1205_v28, 1 }
 0x215   : > { %5266 = vmatprep.subr.bf16.mxu1 %v6072_v47 }
 0x217   : > { %5114 = vmatmul.mubr.bf16.vlgmr.msra.gmra.mrb[112].mxu0 %v6131_v24  ;;  %v1200_v24 = vld [vmem:[#allocation2 + $0x90] sm:$0xfe] }
 0x218   : > { %5117 = vmatprep.mubr.bf16.mxu0 %v6141_v42  ;;  %5194 = vmatpush3.bf16.msra.mxu0 %v6207_v54  ;;  %v1202_v42 = vld [vmem:[#allocation2 + $0xa0] sm:$0xfe]  ;;  %v5447_v54 = vld [vmem:[#allocation8 + $0x218] sm:$0xff]  }
 0x219   : > { %5274 = vmatpush3.bf16.msra.mxu1 %v6072_v47  ;;  %5195 = vmatprep.subr.bf16.mxu0 %v5444_v61  ;;  %v6279_v47 = vld [vmem:[#allocation8 + $0xc0] sm:$0xff]   ;;  %v1277_v29 = vrot.slane %v1202_v42, 1  ;;  %v5455_v42 = vld [vmem:[#allocation8 + $0x238] sm:$0xff]  }
 0x21a   : > { %5267 = vmatprep.subr.bf16.mxu1 %v6077_v48  ;;  %v1274_v48 = vrot.slane %v1200_v24, 1  ;;  %v1209_v24 = vld [vmem:[#allocation2 + $0xd8] sm:$0x1] }
 0x21b   : > { %4886 = vmatmul.mubr.bf16.gmra.mrb[44].mxu1 %v1270_v46  ;;  %v1279_v11 = vsel %vm1246_vm1, %v1277_v29, %v1278_v18  ;;  %v1287_v22 = vrot.slane %v1209_v24, 1  ;;  %v1213_v29 = vld [vmem:[#allocation2 + $0xf8] sm:$0x1]  ;;  %v1585_v18 = vld [vmem:[#allocation2 + $0x80] sm:$0xfc] }
 0x21c   : > { %5196 = vmatpush3.bf16.msra.mxu0 %v5444_v61  ;;  %4889 = vmatprep.mubr.bf16.mxu1 %v1273_v41  ;;  %v1276_v44 = vsel %vm1246_vm1, %v1274_v48, %v1275_v55  ;;  %v1280_v61 = vrot.slane %v1204_v45, 1  ;;  %v1208_v41 = vld [vmem:[#allocation2 + $0xd0] sm:$0xfe] }
 0x21d   : > { %5275 = vmatpush3.bf16.msra.mxu1 %v5503_v36  ;;  %5197 = vmatprep.subr.bf16.mxu0 %v5445_v8  ;;  %v1289_v36 = vrot.slane %v1210_v13, 1  ;;  %v1212_v55 = vld [vmem:[#allocation2 + $0xf0] sm:$0xfe]  ;;  %v1592_v13 = vld [vmem:[#allocation2 + $0xb8] sm:$0x3] }
 0x21e   : > { %5268 = vmatprep.subr.bf16.mxu1 %v5504_v50  ;;  %v1591_v24 = vld [vmem:[#allocation2 + $0xb0] sm:$0xfc] }
 0x21f   : > { %5118 = vmatmul.mubr.bf16.gmra.mrb[116].mxu0 %v6151_v3  ;;  %v1206_v3 = vld [vmem:[#allocation2 + $0xc0] sm:$0xfe] }
 0x220   : > { %5121 = vmatprep.mubr.bf16.mxu0 %v6162_v33  ;;  %5198 = vmatpush3.bf16.msra.mxu0 %v5445_v8  ;;  %v5451_v33 = vld [vmem:[#allocation8 + $0x228] sm:$0xff]   ;;  %v1283_v14 = vrot.slane %v1206_v3, 1  ;;  %v1282_v8 = vsel %vm1246_vm1, %v1280_v61, %v1281_v7  ;;  %v1587_v3 = vld [vmem:[#allocation2 + $0x90] sm:$0xfc]  ;;  %v6298_v7 = vld [vmem:[#allocation2 + $0x100] sm:$0xff] }
 0x221   : > { %5276 = vmatpush3.bf16.msra.mxu1 %v5504_v50  ;;  %5199 = vmatprep.subr.bf16.mxu0 %v5447_v54  ;;  %v1590_v61 = vld [vmem:[#allocation2 + $0xa8] sm:$0x3] }
 0x222   : > { %4953 = vmatprep.subr.bf16.mxu1 %v6279_v47  ;;  %v1285_v46 = vsel %vm1246_vm1, %v1283_v14, %v1284_v23  ;;  %v1662_v14 = vrot.slane %v1588_v39, 2 }
 0x223   : > { %4890 = vmatmul.mubr.bf16.gmra.mrb[48].mxu1 %v1276_v44  ;;  %v1293_v44 = vrot.slane %v1213_v29, 1  ;;  %v3664_v29 = vld [vmem:[#allocation2 + $0x48] sm:$0x3] }
 0x224   : > { %5200 = vmatpush3.bf16.msra.mxu0 %v5447_v54  ;;  %4893 = vmatprep.mubr.bf16.mxu1 %v1279_v11 }
 0x225   : > { %5201 = vmatprep.subr.bf16.mxu0 %v5449_v62 }
 0x227   : > { %5122 = vmatmul.mubr.bf16.gmra.mrb[120].mxu0 %v6174_v5  ;;  %v1211_v5 = vld [vmem:[#allocation2 + $0xe8] sm:$0x1] }
 0x228   : > { %5125 = vmatprep.mubr.bf16.mxu0 %v6185_v40  ;;  %5202 = vmatpush3.bf16.msra.mxu0 %v5449_v62  ;;  %v1286_v40 = vrot.slane %v1208_v41, 1  ;;  %v1290_v54 = vrot.slane %v1211_v5, 1  ;;  %v1586_v62 = vld [vmem:[#allocation2 + $0x88] sm:$0x3]  ;;  %v6304_v41 = vld [vmem:[#allocation2 + $0x110] sm:$0xff] }
 0x229   : > { %5203 = vmatprep.subr.bf16.mxu0 %v5451_v33  ;;  %v1659_v11 = vrot.slane %v1586_v62, 2  ;;  %v1593_v5 = vld [vmem:[#allocation2 + $0xc0] sm:$0xfc] }
 0x22a   : > { %v1288_v50 = vsel %vm1246_vm1, %v1286_v40, %v1287_v22  ;;  %v1291_v48 = vsel %vm1246_vm1, %v1289_v36, %v1290_v54  ;;  %v5450_v40 = vld [vmem:[#allocation8 + $0xd0] sm:$0xff]   ;;  %v1667_v22 = vrot.slane %v1591_v24, 2  ;;  %v1668_v36 = vrot.slane %v1592_v13, 2 }
 0x22b   : > { %4894 = vmatmul.mubr.bf16.gmra.mrb[52].mxu1 %v1282_v8  ;;  %v1670_v54 = vrot.slane %v1593_v5, 2 }
 0x22c   : > { %5204 = vmatpush3.bf16.msra.mxu0 %v5451_v33  ;;  %4897 = vmatprep.mubr.bf16.mxu1 %v1285_v46  ;;  %v1589_v33 = vld [vmem:[#allocation2 + $0xa0] sm:$0xfc] }
 0x22d   : > { %5205 = vmatprep.subr.bf16.mxu0 %v5453_v4  ;;  %v1664_v23 = vrot.slane %v1589_v33, 2 }
 0x22f   : > { %5126 = vmatmul.mubr.bf16.gmra.mrb[124].mxu0 %v6196_v21  ;;  %v1292_v21 = vrot.slane %v1212_v55, 1  ;;  %v3663_v55 = vld [vmem:[#allocation2 + $0x40] sm:$0xfc] }
 0x230   : > { %5129 = vmatprep.mubr.bf16.mxu0 %v6209_v0  ;;  %5206 = vmatpush3.bf16.msra.mxu0 %v5453_v4  ;;  %v1658_v0 = vrot.slane %v1585_v18, 2  ;;  %v5448_v4 = vld [vmem:[#allocation8 + $0xc8] sm:$0xff]   ;;  %v5452_v18 = vld [vmem:[#allocation8 + $0xd8] sm:$0xff]   ;;  %v3727_v62 = vrot.slane %v3663_v55, 2 }
 0x231   : > { %5207 = vmatprep.subr.bf16.mxu0 %v5455_v42  ;;  %v1294_v45 = vsel %vm1246_vm1, %v1292_v21, %v1293_v44  ;;  %v3728_v21 = vrot.slane %v3664_v29, 2 }
 0x232   : > { %v1660_v28 = vsel %vm1633_vm0, %v1658_v0, %v1659_v11  ;;  %v1595_v0 = vld [vmem:[#allocation2 + $0xd0] sm:$0xfc]  ;;  %v1596_v11 = vld [vmem:[#allocation2 + $0xd8] sm:$0x3] }
 0x233   : > { %4898 = vmatmul.mubr.bf16.gmra.mrb[56].mxu1 %v1288_v50  ;;  %v3729_v39 = vsel %vm1633_vm0, %v3727_v62, %v3728_v21  ;;  %v1673_v33 = vrot.slane %v1595_v0, 2  ;;  %v3670_v62 = vld [vmem:[#allocation2 + $0x78] sm:$0x3]  ;;  %v3671_v21 = vld [vmem:[#allocation2 + $0x80] sm:$0xfc] }
 0x234   : > { %5208 = vmatpush3.bf16.msra.mxu0 %v5455_v42  ;;  %4901 = vmatprep.mubr.bf16.mxu1 %v1291_v48  ;;  %v1594_v42 = vld [vmem:[#allocation2 + $0xc8] sm:$0x3]  ;;  %v5505_v48 = vld [vmem:[#allocation2] sm:$0xff]  ;;  %v5458_v0 = vld [vmem:[#allocation8 + $0xf8] sm:$0xff]  }
 0x235   : > { %v1671_v50 = vrot.slane %v1594_v42, 2 }
 0x237   : > { %5130 = vmatmul.mubr.bf16.gmra.mrb[128].mxu0 %v6221_v31  ;;  %v1661_v31 = vrot.slane %v1587_v3, 2  ;;  %v1672_v44 = vsel %vm1633_vm0, %v1670_v54, %v1671_v50  ;;  %v5454_v3 = vld [vmem:[#allocation8 + $0xe0] sm:$0xff]   ;;  %v1600_v54 = vld [vmem:[#allocation2 + $0xf8] sm:$0x3] }
 0x238   : > { %5133 = vmatprep.mubr.bf16.mxu0 %v6231_v9  ;;  %v1665_v9 = vrot.slane %v1590_v61, 2  ;;  %v1674_v61 = vrot.slane %v1596_v11, 2 }
 0x239   : > { %v1663_v8 = vsel %vm1633_vm0, %v1661_v31, %v1662_v14  ;;  %v3665_v31 = vld [vmem:[#allocation2 + $0x50] sm:$0xfc]  ;;  %v3666_v14 = vld [vmem:[#allocation2 + $0x58] sm:$0x3] }
 0x23a   : > { %v1666_v46 = vsel %vm1633_vm0, %v1664_v23, %v1665_v9  ;;  %v3730_v24 = vrot.slane %v3665_v31, 2  ;;  %v3731_v13 = vrot.slane %v3666_v14, 2  ;;  %v1675_v5 = vsel %vm1633_vm0, %v1673_v33, %v1674_v61  ;;  %v1956_v33 = vld [vmem:[#allocation2 + $0x20] sm:$0xff] }
 0x23b   : > { %4902 = vmatmul.mubr.bf16.gmra.mrb[60].mxu1 %v1294_v45  ;;  %v1597_v45 = vld [vmem:[#allocation2 + $0xe0] sm:$0xfc] }
 0x23c   : > { %4937 = vmatprep.mubr.bf16.mxu1 %v1660_v28  ;;  %v1598_v28 = vld [vmem:[#allocation2 + $0xe8] sm:$0x3]  ;;  %v1676_v23 = vrot.slane %v1597_v45, 2  ;;  %v3732_v50 = vsel %vm1633_vm0, %v3730_v24, %v3731_v13  ;;  %v3737_v45 = vrot.slane %v3670_v62, 2  ;;  %v5459_v31 = vld [vmem:[#allocation8 + $0x140] sm:$0xff]  }
 0x23d   : > { %v1677_v9 = vrot.slane %v1598_v28, 2  ;;  %v5460_v13 = vld [vmem:[#allocation8 + $0x148] sm:$0xff]  }
 0x23f   : > { %5134 = vmatmul.mubr.bf16.gmra.mrb[132].mxu0 %v6242_v17 }
 0x240   : > { %5137 = vmatprep.mubr.bf16.mxu0 %v6298_v7 }
 0x243   : > { %4938 = vmatmul.mubr.bf16.vlgmr.msra.gmra.mrb[64].mxu1 %v1663_v8  ;;  %v3668_v8 = vld [vmem:[#allocation2 + $0x68] sm:$0x3] }
 0x244   : > { %4954 = vmatpush3.bf16.msra.mxu1 %v6279_v47  ;;  %4941 = vmatprep.mubr.bf16.mxu1 %v1666_v46  ;;  %v1669_v47 = vsel %vm1633_vm0, %v1667_v22, %v1668_v36  ;;  %v5456_v46 = vld [vmem:[#allocation8 + $0xe8] sm:$0xff]   ;;  %v1678_v22 = vsel %vm1633_vm0, %v1676_v23, %v1677_v9  ;;  %v1599_v36 = vld [vmem:[#allocation2 + $0xf0] sm:$0xfc]  ;;  %v3674_v9 = vld [vmem:[#allocation2 + $0x98] sm:$0x3] }
 0x245   : > { %4955 = vmatprep.subr.bf16.mxu1 %v5448_v4  ;;  %v1679_v29 = vrot.slane %v1599_v36, 2  ;;  %v3673_v23 = vld [vmem:[#allocation2 + $0x90] sm:$0xfc]  ;;  %v3743_v24 = vrot.slane %v3674_v9, 2  ;;  %v3683_v9 = vld [vmem:[#allocation2 + $0xe0] sm:$0xfc] }
 0x247   : > { %5138 = vmatmul.mubr.bf16.gmra.mrb[136].mxu0 %v6304_v41 }
 0x248   : > { %5141 = vmatprep.mubr.bf16.mxu0 %v5505_v48  ;;  %4956 = vmatpush3.bf16.msra.mxu1 %v5448_v4  ;;  %v3667_v4 = vld [vmem:[#allocation2 + $0x60] sm:$0xfc] }
 0x249   : > { %4957 = vmatprep.subr.bf16.mxu1 %v5450_v40  ;;  %v3733_v42 = vrot.slane %v3667_v4, 2  ;;  %v3675_v4 = vld [vmem:[#allocation2 + $0xa0] sm:$0xfc] }
 0x24b   : > { %4942 = vmatmul.mubr.bf16.gmra.mrb[68].mxu1 %v1669_v47  ;;  %v3669_v47 = vld [vmem:[#allocation2 + $0x70] sm:$0xfc] }
 0x24c   : > { %4958 = vmatpush3.bf16.msra.mxu1 %v5450_v40  ;;  %4945 = vmatprep.mubr.bf16.mxu1 %v1672_v44  ;;  %v3734_v40 = vrot.slane %v3668_v8, 2  ;;  %v3672_v44 = vld [vmem:[#allocation2 + $0x88] sm:$0x3]  ;;  %v3736_v11 = vrot.slane %v3669_v47, 2 }
 0x24d   : > { %4959 = vmatprep.subr.bf16.mxu1 %v5452_v18  ;;  %v3676_v8 = vld [vmem:[#allocation2 + $0xa8] sm:$0x3] }
 0x24e   : > { %v3735_v55 = vsel %vm1633_vm0, %v3733_v42, %v3734_v40  ;;  %v3738_v61 = vsel %vm1633_vm0, %v3736_v11, %v3737_v45  ;;  %v3745_v42 = vrot.slane %v3675_v4, 2  ;;  %v3746_v40 = vrot.slane %v3676_v8, 2  ;;  %v1960_v45 = vld [vmem:[#allocation2 + $0x60] sm:$0xff]  ;;  %v3684_v4 = vld [vmem:[#allocation2 + $0xe8] sm:$0x3] }
 0x24f   : > { %5142 = vmatmul.mubr.bf16.gmra.mrb[140].mxu0 %v5505_v48  ;;  %v5457_v48 = vld [vmem:[#allocation8 + $0xf0] sm:$0xff]  }
 0x250   : > { %5209 = vmatprep.mubr.bf16.mxu0 %v3729_v39  ;;  %4960 = vmatpush3.bf16.msra.mxu1 %v5452_v18  ;;  %v1680_v18 = vrot.slane %v1600_v54, 2  ;;  %v3740_v39 = vrot.slane %v3672_v44, 2  ;;  %v5461_v54 = vld [vmem:[#allocation8 + $0x150] sm:$0xff]  }
 0x251   : > { %4961 = vmatprep.subr.bf16.mxu1 %v5454_v3  ;;  %v1959_v44 = vld [vmem:[#allocation2 + $0x50] sm:$0xff] }
 0x252   : > { %v1681_v28 = vsel %vm1633_vm0, %v1679_v29, %v1680_v18  ;;  %v3679_v29 = vld [vmem:[#allocation2 + $0xc0] sm:$0xfc]  ;;  %v3680_v18 = vld [vmem:[#allocation2 + $0xc8] sm:$0x3] }
 0x253   : > { %4946 = vmatmul.mubr.bf16.gmra.mrb[72].mxu1 %v1675_v5  ;;  %v1957_v5 = vld [vmem:[#allocation2 + $0x30] sm:$0xff]  ;;  %v3752_v11 = vrot.slane %v3680_v18, 2 }
 0x254   : > { %4962 = vmatpush3.bf16.msra.mxu1 %v5454_v3  ;;  %4949 = vmatprep.mubr.bf16.mxu1 %v1678_v22  ;;  %v3739_v3 = vrot.slane %v3671_v21, 2  ;;  %v1958_v22 = vld [vmem:[#allocation2 + $0x40] sm:$0xff]  ;;  %v5462_v21 = vld [vmem:[#allocation8 + $0x158] sm:$0xff]   ;;  %v5465_v18 = vld [vmem:[#allocation8 + $0x170] sm:$0xff]  }
 0x255   : > { %4963 = vmatprep.subr.bf16.mxu1 %v5456_v46 }
 0x256   : > { %v3741_v14 = vsel %vm1633_vm0, %v3739_v3, %v3740_v39  ;;  %v5463_v3 = vld [vmem:[#allocation8 + $0x160] sm:$0xff]  }
 0x257   : > { %5210 = vmatmul.mubr.bf16.vlgmr.msra.gmra.mrb[144].mxu0 %v3732_v50  ;;  %v3747_v50 = vsel %vm1633_vm0, %v3745_v42, %v3746_v40 }
 0x258   : > { %5213 = vmatprep.mubr.bf16.mxu0 %v3735_v55  ;;  %4964 = vmatpush3.bf16.msra.mxu1 %v5456_v46  ;;  %v3742_v46 = vrot.slane %v3673_v23, 2  ;;  %v3678_v55 = vld [vmem:[#allocation2 + $0xb8] sm:$0x3] }
 0x259   : > { %4965 = vmatprep.subr.bf16.mxu1 %v5457_v48  ;;  %v3749_v62 = vrot.slane %v3678_v55, 2 }
 0x25a   : > { %v3744_v36 = vsel %vm1633_vm0, %v3742_v46, %v3743_v24 }
 0x25b   : > { %4950 = vmatmul.mubr.bf16.gmra.mrb[76].mxu1 %v1681_v28 }
 0x25c   : > { %4966 = vmatpush3.bf16.msra.mxu1 %v5457_v48  ;;  %4969 = vmatprep.mubr.bf16.mxu1 %v1956_v33  ;;  %v3677_v48 = vld [vmem:[#allocation2 + $0xb0] sm:$0xfc] }
 0x25d   : > { %4967 = vmatprep.subr.bf16.mxu1 %v5458_v0  ;;  %v3748_v47 = vrot.slane %v3677_v48, 2 }
 0x25f   : > { %5214 = vmatmul.mubr.bf16.gmra.mrb[148].mxu0 %v3738_v61  ;;  %v3750_v28 = vsel %vm1633_vm0, %v3748_v47, %v3749_v62  ;;  %v3681_v61 = vld [vmem:[#allocation2 + $0xd0] sm:$0xfc]  ;;  %v3687_v47 = vld [vmem:[#allocation2 + $0x100] sm:$0xfc] }
 0x260   : > { %5217 = vmatprep.mubr.bf16.mxu0 %v3741_v14  ;;  %4968 = vmatpush3.bf16.msra.mxu1 %v5458_v0  ;;  %v3751_v0 = vrot.slane %v3679_v29, 2  ;;  %v3754_v42 = vrot.slane %v3681_v61, 2 }
 0x261   : > { %5049 = vmatprep.subr.bf16.mxu1 %v5459_v31 }
 0x262   : > { %v3753_v33 = vsel %vm1633_vm0, %v3751_v0, %v3752_v11  ;;  %v3763_v0 = vrot.slane %v3687_v47, 2  ;;  %v1965_v47 = vld [vmem:[#allocation2 + $0xb0] sm:$0xff] }
 0x263   : > { %4970 = vmatmul.mubr.bf16.vlgmr.msra.gmra.mrb[80].mxu1 %v1957_v5 }
 0x264   : > { %5050 = vmatpush3.bf16.msra.mxu1 %v5459_v31  ;;  %4973 = vmatprep.mubr.bf16.mxu1 %v1958_v22  ;;  %v3682_v31 = vld [vmem:[#allocation2 + $0xd8] sm:$0x3] }
 0x265   : > { %5051 = vmatprep.subr.bf16.mxu1 %v5460_v13  ;;  %v3755_v40 = vrot.slane %v3682_v31, 2  ;;  %v3689_v31 = vld [vmem:[#allocation2 + $0x110] sm:$0xfc] }
 0x267   : > { %5218 = vmatmul.mubr.bf16.gmra.mrb[152].mxu0 %v3744_v36  ;;  %v3756_v29 = vsel %vm1633_vm0, %v3754_v42, %v3755_v40  ;;  %v3766_v40 = vrot.slane %v3689_v31, 2 }
 0x268   : > { %5221 = vmatprep.mubr.bf16.mxu0 %v3747_v50  ;;  %5052 = vmatpush3.bf16.msra.mxu1 %v5460_v13  ;;  %v3758_v50 = vrot.slane %v3684_v4, 2  ;;  %v6346_v4 = vld [vmem:[#allocation8 + $0x1c0] sm:$0xff]  }
 0x269   : > { %5053 = vmatprep.subr.bf16.mxu1 %v5461_v54 }
 0x26b   : > { %4974 = vmatmul.mubr.bf16.gmra.mrb[84].mxu1 %v1959_v44  ;;  %v3686_v44 = vld [vmem:[#allocation2 + $0xf8] sm:$0x3] }
 0x26c   : > { %4977 = vmatprep.mubr.bf16.mxu1 %v1960_v45  ;;  %5054 = vmatpush3.bf16.msra.mxu1 %v5461_v54  ;;  %v1961_v54 = vld [vmem:[#allocation2 + $0x70] sm:$0xff] }
 0x26d   : > { %5055 = vmatprep.subr.bf16.mxu1 %v5462_v21 }
 0x26e   : > { %v4831_v39 = vpop.f32.mrb[4].mxu1 }
 0x26f   : > { %5222 = vmatmul.mubr.bf16.gmra.mrb[156].mxu0 %v3750_v28  ;;  %v6323_v14 = vadd.f32 %v4831_v39, %v6114_v60  ;;  %v1039_v23 = vpop.f32.mrb[5].mxu1  ;;  %v5464_v60 = vld [vmem:[#allocation8 + $0x168] sm:$0xff]   ;;  %v3761_v28 = vrot.slane %v3686_v44, 2  ;;  %v5466_v39 = vld [vmem:[#allocation8 + $0x178] sm:$0xff]   ;;  %v1968_v44 = vld [vmem:[#allocation2 + $0xe0] sm:$0xff] }
 0x270   : > { %5225 = vmatprep.mubr.bf16.mxu0 %v3753_v33  ;;  %v6326_v8 = vadd.f32 %v1039_v23, %v6107_v43  ;;  %v4832_v46 = vpop.f32.mrb[6].mxu1  ;;  %5056 = vmatpush3.bf16.msra.mxu1 %v5462_v21  ;;  %v3757_v43 = vrot.slane %v3683_v9, 2  ;;  %v3685_v21 = vld [vmem:[#allocation2 + $0xf0] sm:$0xfc]  ;;  %v1964_v33 = vld [vmem:[#allocation2 + $0xa0] sm:$0xff] }
 0x271   : > { %v6329_v24 = vadd.f32 %v4832_v46, %v6118_v2  ;;  %v1042_v13 = vpop.f32.mrb[7].mxu1  ;;  %5057 = vmatprep.subr.bf16.mxu1 %v5463_v3  ;;  %v1962_v2 = vld [vmem:[#allocation2 + $0x80] sm:$0xff]  ;;  %v3760_v45 = vrot.slane %v3685_v21, 2  ;;  %v3690_v23 = vld [vmem:[#allocation2 + $0x118] sm:$0x3] }
 0x272   : > { %v6331_v5 = vpop.f32.mrb[68].mxu0  ;;  %v6334_v22 = vadd.f32 %v1042_v13, %v6111_v52  ;;  %v3688_v52 = vld [vmem:[#allocation2 + $0x108] sm:$0x3]  ;;  %v3759_v62 = vsel %vm1633_vm0, %v3757_v43, %v3758_v50 }
 0x273   : > { %v6336_v36 = vpop.f32.mrb[69].mxu0  ;;  %4978 = vmatmul.mubr.bf16.gmra.mrb[88].mxu1 %v1961_v54  ;;  %v3764_v11 = vrot.slane %v3688_v52, 2  ;;  %v3762_v9 = vsel %vm1633_vm0, %v3760_v45, %v3761_v28 }
 0x274   : > { %v6338_v48 = vpop.f32.mrb[70].mxu0  ;;  %4981 = vmatprep.mubr.bf16.mxu1 %v1962_v2  ;;  %5058 = vmatpush3.bf16.msra.mxu1 %v5463_v3  ;;  %v1963_v3 = vld [vmem:[#allocation2 + $0x90] sm:$0xff] }
 0x275   : > { %v6340_v55 = vpop.f32.mrb[71].mxu0  ;;  %5059 = vmatprep.subr.bf16.mxu1 %v5464_v60  ;;  %v3765_v61 = vsel %vm1633_vm0, %v3763_v0, %v3764_v11 }
 0x277   : > { %5226 = vmatmul.mubr.bf16.gmra.mrb[160].mxu0 %v3756_v29 }
 0x278   : > { %5229 = vmatprep.mubr.bf16.mxu0 %v3759_v62  ;;  %5060 = vmatpush3.bf16.msra.mxu1 %v5464_v60  ;;  %v3767_v60 = vrot.slane %v3690_v23, 2 }
 0x279   : > { %5061 = vmatprep.subr.bf16.mxu1 %v5465_v18 }
 0x27a   : > { %v3768_v62 = vsel %vm1633_vm0, %v3766_v40, %v3767_v60 }
 0x27b   : > { %4982 = vmatmul.mubr.bf16.gmra.mrb[92].mxu1 %v1963_v3 }
 0x27c   : > { %4985 = vmatprep.mubr.bf16.mxu1 %v1964_v33  ;;  %5062 = vmatpush3.bf16.msra.mxu1 %v5465_v18 }
 0x27d   : > { %5063 = vmatprep.subr.bf16.mxu1 %v5466_v39 }
 0x27e   : > { %v4835_v46 = vpop.f32.mrb[8].mxu1 }
 0x27f   : > { %5230 = vmatmul.mubr.bf16.gmra.mrb[164].mxu0 %v3762_v9  ;;  %v6349_v13 = vadd.f32 %v4835_v46, %v6133_v27  ;;  %v1055_v42 = vpop.f32.mrb[9].mxu1  ;;  %v2617_v9 = vld [vmem:[#allocation2 + $0x28] sm:$0x3] }
 0x280   : > { %5233 = vmatprep.mubr.bf16.mxu0 %v3765_v61  ;;  %v6352_v54 = vadd.f32 %v1055_v42, %v6123_v10  ;;  %v4836_v43 = vpop.f32.mrb[10].mxu1  ;;  %5064 = vmatpush3.bf16.msra.mxu1 %v5466_v39  ;;  %v1966_v10 = vld [vmem:[#allocation2 + $0xc0] sm:$0xff]  ;;  %v2681_v46 = vrot.slane %v2617_v9, 2 }
 0x281   : > { %v6355_v50 = vadd.f32 %v4836_v43, %v6138_v35  ;;  %v1058_v2 = vpop.f32.mrb[11].mxu1  ;;  %5145 = vmatprep.subr.bf16.mxu1 %v6346_v4  ;;  %v1967_v35 = vld [vmem:[#allocation2 + $0xd0] sm:$0xff] }
 0x282   : > { %v6357_v29 = vpop.f32.mrb[72].mxu0  ;;  %v6361_v27 = vadd.f32 %v1058_v2, %v6128_v19  ;;  %v2620_v2 = vld [vmem:[#allocation2 + $0x40] sm:$0xfc] }
 0x283   : > { %v6363_v18 = vpop.f32.mrb[73].mxu0  ;;  %4986 = vmatmul.mubr.bf16.gmra.mrb[96].mxu1 %v1965_v47 }
 0x284   : > { %v6365_v52 = vpop.f32.mrb[74].mxu0  ;;  %4989 = vmatprep.mubr.bf16.mxu1 %v1966_v10  ;;  %v3691_v10 = vld [vmem:[#allocation2 + $0x120] sm:$0xfc] }
 0x285   : > { %v6368_v21 = vpop.f32.mrb[75].mxu0 }
 0x287   : > { %5234 = vmatmul.mubr.bf16.gmra.mrb[168].mxu0 %v3768_v62 }
 0x28b   : > { %4990 = vmatmul.mubr.bf16.gmra.mrb[100].mxu1 %v1967_v35  ;;  %v3692_v35 = vld [vmem:[#allocation2 + $0x128] sm:$0x3] }
 0x28c   : > { %4993 = vmatprep.mubr.bf16.mxu1 %v1968_v44  ;;  %v3769_v44 = vrot.slane %v3691_v10, 2 }
 0x28f   : > { %v4839_v0 = vpop.f32.mrb[12].mxu1 }
 0x290   : > { %v6371_v19 = vadd.f32 %v4839_v0, %v6153_v6  ;;  %v1071_v11 = vpop.f32.mrb[13].mxu1  ;;  %v3693_v0 = vld [vmem:[#allocation2 + $0x130] sm:$0xfc] }
 0x291   : > { %v6374_v45 = vadd.f32 %v1071_v11, %v6143_v49  ;;  %v4840_v28 = vpop.f32.mrb[14].mxu1  ;;  %v2616_v49 = vld [vmem:[#allocation2 + $0x20] sm:$0xfc] }
 0x292   : > { %v6377_v39 = vadd.f32 %v4840_v28, %v6158_v16  ;;  %v1074_v3 = vpop.f32.mrb[15].mxu1  ;;  %v2680_v16 = vrot.slane %v2616_v49, 2  ;;  %v3694_v49 = vld [vmem:[#allocation2 + $0x138] sm:$0x3] }
 0x293   : > { %v6379_v33 = vpop.f32.mrb[76].mxu0  ;;  %v6382_v61 = vadd.f32 %v1074_v3, %v6148_v56  ;;  %4994 = vmatmul.mubr.bf16.gmra.mrb[104].mxu1 %v6242_v17  ;;  %v2618_v56 = vld [vmem:[#allocation2 + $0x30] sm:$0xfc]  ;;  %v2619_v17 = vld [vmem:[#allocation2 + $0x38] sm:$0x3]  ;;  %v3770_v3 = vrot.slane %v3692_v35, 2 }
 0x294   : > { %v6384_v31 = vpop.f32.mrb[77].mxu0  ;;  %4997 = vmatprep.mubr.bf16.mxu1 %v6298_v7  ;;  %v2682_v43 = vsel %vm1633_vm0, %v2680_v16, %v2681_v46  ;;  %v2621_v7 = vld [vmem:[#allocation2 + $0x48] sm:$0x3]  ;;  %v2683_v62 = vrot.slane %v2618_v56, 2  ;;  %v2684_v28 = vrot.slane %v2619_v17, 2  ;;  %v2686_v46 = vrot.slane %v2620_v2, 2 }
 0x295   : > { %v6386_v23 = vpop.f32.mrb[78].mxu0  ;;  %v3771_v56 = vsel %vm1633_vm0, %v3769_v44, %v3770_v3  ;;  %v2623_v44 = vld [vmem:[#allocation2 + $0x58] sm:$0x3] }
 0x296   : > { %v6389_v6 = vpop.f32.mrb[79].mxu0  ;;  %5237 = vmatprep.mubr.bf16.mxu0 %v3771_v56 }
 0x29b   : > { %v6392_v42 = vpop.f32.mrb[80].mxu0  ;;  %4998 = vmatmul.mubr.bf16.gmra.mrb[108].mxu1 %v6304_v41  ;;  %v3772_v41 = vrot.slane %v3693_v0, 2  ;;  %v5468_v0 = vld [vmem:[#allocation8 + $0x1c8] sm:$0xff]  }
 0x29c   : > { %7379 = vst [vmem:[#allocation24_spill] sm:$0xff] %v6392_v42  ;;  %v6394_v40 = vpop.f32.mrb[81].mxu0  ;;  %5065 = vmatprep.mubr.bf16.mxu1 %v2682_v43 }
 0x29d   : > { %7380 = vst [vmem:[#allocation25_spill] sm:$0xff] %v6394_v40  ;;  %v6397_v60 = vpop.f32.mrb[82].mxu0  ;;  %v3773_v40 = vrot.slane %v3694_v49, 2  ;;  %v5469_v49 = vld [vmem:[#allocation8 + $0x1d0] sm:$0xff]  }
 0x29e   : > { %7381 = vst [vmem:[#allocation26_spill] sm:$0xff] %v6397_v60  ;;  %v6400_v47 = vpop.f32.mrb[83].mxu0  ;;  %v2687_v60 = vrot.slane %v2621_v7, 2 }
 0x29f   : > { %7382 = vst [vmem:[#allocation27_spill] sm:$0xff] %v6400_v47  ;;  %v4843_v11 = vpop.f32.mrb[16].mxu1 }
 0x2a0   : > { %v6403_v9 = vadd.f32 %v4843_v11, %v6176_v12  ;;  %v1087_v16 = vpop.f32.mrb[17].mxu1  ;;  %v3774_v12 = vsel %vm1633_vm0, %v3772_v41, %v3773_v40  ;;  %v2624_v40 = vld [vmem:[#allocation2 + $0x60] sm:$0xfc] }
 0x2a1   : > { %v6406_v43 = vadd.f32 %v1087_v16, %v6164_v38  ;;  %v4844_v47 = vpop.f32.mrb[18].mxu1  ;;  %v2685_v38 = vsel %vm1633_vm0, %v2683_v62, %v2684_v28  ;;  %5238 = vmatmul.mubr.bf16.gmra.mrb[172].mxu0 %v3774_v12  ;;  %v2690_v16 = vrot.slane %v2623_v44, 2  ;;  %v2692_v62 = vrot.slane %v2624_v40, 2  ;;  %v2629_v44 = vld [vmem:[#allocation2 + $0x88] sm:$0x3]  ;;  %v5471_v40 = vld [vmem:[#allocation8 + $0x1e0] sm:$0xff]  }
 0x2a2   : > { %v6410_v10 = vadd.f32 %v4844_v47, %v6181_v20  ;;  %v1090_v17 = vpop.f32.mrb[19].mxu1  ;;  %v2688_v20 = vsel %vm1633_vm0, %v2686_v46, %v2687_v60  ;;  %v2622_v47 = vld [vmem:[#allocation2 + $0x50] sm:$0xfc]  ;;  %v5470_v60 = vld [vmem:[#allocation8 + $0x1d8] sm:$0xff]  }
 0x2a3   : > { %v6412_v35 = vpop.f32.mrb[84].mxu0  ;;  %v6416_v2 = vadd.f32 %v1090_v17, %v6169_v51  ;;  %5066 = vmatmul.mubr.bf16.vlgmr.msra.gmra.mrb[112].mxu1 %v2685_v38  ;;  %v2625_v51 = vld [vmem:[#allocation2 + $0x68] sm:$0x3]  ;;  %v2689_v41 = vrot.slane %v2622_v47, 2  ;;  %v2626_v38 = vld [vmem:[#allocation2 + $0x70] sm:$0xfc] }
 0x2a4   : > { %7383 = vst [vmem:[#allocation28_spill] sm:$0xff] %v6412_v35  ;;  %v6418_v7 = vpop.f32.mrb[85].mxu0  ;;  %5146 = vmatpush3.bf16.msra.mxu1 %v6346_v4  ;;  %5069 = vmatprep.mubr.bf16.mxu1 %v2688_v20  ;;  %v2693_v28 = vrot.slane %v2625_v51, 2  ;;  %v2627_v20 = vld [vmem:[#allocation2 + $0x78] sm:$0x3] }
 0x2a5   : > { %7384 = vst [vmem:[#allocation29_spill] sm:$0xff] %v6418_v7  ;;  %v6421_v11 = vpop.f32.mrb[86].mxu0  ;;  %5147 = vmatprep.subr.bf16.mxu1 %v5468_v0  ;;  %v2691_v4 = vsel %vm1633_vm0, %v2689_v41, %v2690_v16  ;;  %v7410_v7 = vld [vmem:[#allocation20_spill] sm:$0xff] }
 0x2a6   : > { %7385 = vst [vmem:[#allocation30_spill] sm:$0xff] %v6421_v11  ;;  %v6425_v3 = vpop.f32.mrb[87].mxu0  ;;  %v2694_v12 = vsel %vm1633_vm0, %v2692_v62, %v2693_v28 }
 0x2a7   : > { %7386 = vst [vmem:[#allocation31_spill] sm:$0xff] %v6425_v3 }
 0x2a8   : > { %5148 = vmatpush3.bf16.msra.mxu1 %v5468_v0  ;;  %v2628_v0 = vld [vmem:[#allocation2 + $0x80] sm:$0xfc] }
 0x2a9   : > { %5149 = vmatprep.subr.bf16.mxu1 %v5469_v49 }
 0x2ab   : > { %v6427_v56 = vpop.f32.mrb[88].mxu0  ;;  %5070 = vmatmul.mubr.bf16.gmra.mrb[116].mxu1 %v2691_v4  ;;  %v2698_v4 = vrot.slane %v2628_v0, 2 }
 0x2ac   : > { %7387 = vst [vmem:[#allocation32_spill] sm:$0xff] %v6427_v56  ;;  %v6429_v46 = vpop.f32.mrb[89].mxu0  ;;  %5073 = vmatprep.mubr.bf16.mxu1 %v2694_v12  ;;  %5150 = vmatpush3.bf16.msra.mxu1 %v5469_v49  ;;  %v2695_v56 = vrot.slane %v2626_v38, 2  ;;  %v5472_v38 = vld [vmem:[#allocation8 + $0x1e8] sm:$0xff]  }
 0x2ad   : > { %7388 = vst [vmem:[#allocation33_spill] sm:$0xff] %v6429_v46  ;;  %v6432_v17 = vpop.f32.mrb[90].mxu0  ;;  %5151 = vmatprep.subr.bf16.mxu1 %v5470_v60  ;;  %v2696_v46 = vrot.slane %v2627_v20, 2 }
 0x2ae   : > { %7389 = vst [vmem:[#allocation34_spill] sm:$0xff] %v6432_v17  ;;  %v6435_v47 = vpop.f32.mrb[91].mxu0  ;;  %v4847_v51 = vpop.f32.mrb[20].mxu1  ;;  %v2699_v17 = vrot.slane %v2629_v44, 2 }
 0x2af   : > { %7390 = vst [vmem:[#allocation35_spill] sm:$0xff] %v6435_v47  ;;  %v6438_v41 = vadd.f32 %v4847_v51, %v6198_v25  ;;  %v1103_v16 = vpop.f32.mrb[21].mxu1  ;;  %v2697_v0 = vsel %vm1633_vm0, %v2695_v56, %v2696_v46  ;;  %v5474_v46 = vld [vmem:[#allocation8 + $0x1f8] sm:$0xff]  }
 0x2b0   : > { %v6441_v62 = vadd.f32 %v1103_v16, %v6187_v53  ;;  %v4848_v28 = vpop.f32.mrb[22].mxu1  ;;  %5152 = vmatpush3.bf16.msra.mxu1 %v5470_v60  ;;  %v2700_v53 = vsel %vm1633_vm0, %v2698_v4, %v2699_v17  ;;  %v2630_v60 = vld [vmem:[#allocation2 + $0x90] sm:$0xfc]  ;;  %v2632_v16 = vld [vmem:[#allocation2 + $0xa0] sm:$0xfc] }
 0x2b1   : > { %v6444_v49 = vadd.f32 %v4848_v28, %v6203_v32  ;;  %v1106_v12 = vpop.f32.mrb[23].mxu1  ;;  %5153 = vmatprep.subr.bf16.mxu1 %v5471_v40  ;;  %v2631_v32 = vld [vmem:[#allocation2 + $0x98] sm:$0x3]  ;;  %v2633_v28 = vld [vmem:[#allocation2 + $0xa8] sm:$0x3] }
 0x2b2   : > { %v6449_v20 = vadd.f32 %v1106_v12, %v6192_v59  ;;  %v5473_v59 = vld [vmem:[#allocation8 + $0x1f0] sm:$0xff]   ;;  %v2701_v12 = vrot.slane %v2630_v60, 2  ;;  %v2705_v3 = vrot.slane %v2633_v28, 2 }
 0x2b3   : > { %v6446_v47 = vpop.f32.mrb[92].mxu0  ;;  %5074 = vmatmul.mubr.bf16.gmra.mrb[120].mxu1 %v2697_v0 }
 0x2b4   : > { %7391 = vst [vmem:[#allocation36_spill] sm:$0xff] %v6446_v47  ;;  %v6451_v25 = vpop.f32.mrb[93].mxu0  ;;  %5077 = vmatprep.mubr.bf16.mxu1 %v2700_v53  ;;  %5154 = vmatpush3.bf16.msra.mxu1 %v5471_v40  ;;  %v2702_v47 = vrot.slane %v2631_v32, 2  ;;  %v2634_v53 = vld [vmem:[#allocation2 + $0xb0] sm:$0xfc] }
 0x2b5   : > { %7392 = vst [vmem:[#allocation37_spill] sm:$0xff] %v6451_v25  ;;  %v6454_v44 = vpop.f32.mrb[94].mxu0  ;;  %5155 = vmatprep.subr.bf16.mxu1 %v5472_v38  ;;  %v2704_v25 = vrot.slane %v2632_v16, 2  ;;  %v2636_v32 = vld [vmem:[#allocation2 + $0xc0] sm:$0xfc]  ;;  %v2707_v28 = vrot.slane %v2634_v53, 2 }
 0x2b6   : > { %7393 = vst [vmem:[#allocation38_spill] sm:$0xff] %v6454_v44  ;;  %v6457_v51 = vpop.f32.mrb[95].mxu0  ;;  %v2703_v4 = vsel %vm1633_vm0, %v2701_v12, %v2702_v47  ;;  %v2710_v12 = vrot.slane %v2636_v32, 2  ;;  %v2639_v32 = vld [vmem:[#allocation2 + $0xd8] sm:$0x3] }
 0x2b7   : > { %7394 = vst [vmem:[#allocation39_spill] sm:$0xff] %v6457_v51  ;;  %v2706_v40 = vsel %vm1633_vm0, %v2704_v25, %v2705_v3  ;;  %v2635_v51 = vld [vmem:[#allocation2 + $0xb8] sm:$0x3] }
 0x2b8   : > { %5156 = vmatpush3.bf16.msra.mxu1 %v5472_v38  ;;  %v2637_v38 = vld [vmem:[#allocation2 + $0xc8] sm:$0x3] }
 0x2b9   : > { %5157 = vmatprep.subr.bf16.mxu1 %v5473_v59 }
 0x2bb   : > { %v6459_v56 = vpop.f32.mrb[96].mxu0  ;;  %5078 = vmatmul.mubr.bf16.gmra.mrb[124].mxu1 %v2703_v4  ;;  %v2711_v4 = vrot.slane %v2637_v38, 2 }
 0x2bc   : > { %7395 = vst [vmem:[#allocation40_spill] sm:$0xff] %v6459_v56  ;;  %v6461_v17 = vpop.f32.mrb[97].mxu0  ;;  %5081 = vmatprep.mubr.bf16.mxu1 %v2706_v40  ;;  %5158 = vmatpush3.bf16.msra.mxu1 %v5473_v59  ;;  %v2708_v56 = vrot.slane %v2635_v51, 2 }
 0x2bd   : > { %7396 = vst [vmem:[#allocation41_spill] sm:$0xff] %v6461_v17  ;;  %v6464_v0 = vpop.f32.mrb[98].mxu0  ;;  %5159 = vmatprep.subr.bf16.mxu1 %v5474_v46 }
 0x2be   : > { %7397 = vst [vmem:[#allocation42_spill] sm:$0xff] %v6464_v0  ;;  %v6467_v60 = vpop.f32.mrb[99].mxu0  ;;  %v4851_v16 = vpop.f32.mrb[24].mxu1  ;;  %v7353_v0 = vmov 0.0   ;;  %v2709_v53 = vsel %vm1633_vm0, %v2707_v28, %v2708_v56  ;;  %v2642_v28 = vld [vmem:[#allocation2 + $0xf0] sm:$0xfc] }
 0x2bf   : > { %7398 = vst [vmem:[#allocation43_spill] sm:$0xff] %v6467_v60  ;;  %v6470_v17 = vadd.f32 %v4851_v16, %v6223_v37  ;;  %v1119_v47 = vpop.f32.mrb[25].mxu1  ;;  %v2640_v16 = vld [vmem:[#allocation2 + $0xe0] sm:$0xfc] }
 0x2c0   : > { %v6473_v3 = vadd.f32 %v1119_v47, %v6211_v1  ;;  %v4852_v25 = vpop.f32.mrb[26].mxu1  ;;  %5160 = vmatpush3.bf16.msra.mxu1 %v5474_v46  ;;  %v2712_v46 = vsel %vm1633_vm0, %v2710_v12, %v2711_v4  ;;  %v2641_v47 = vld [vmem:[#allocation2 + $0xe8] sm:$0x3]  ;;  %v2644_v12 = vld [vmem:[#allocation2 + $0x100] sm:$0xfc] }
 0x2c1   : > { %v6476_v40 = vadd.f32 %v4852_v25, %v6228_v58  ;;  %v1122_v60 = vpop.f32.mrb[27].mxu1  ;;  %5241 = vmatprep.subr.bf16.mxu1 %v7353_v0  ;;  %v2638_v58 = vld [vmem:[#allocation2 + $0xd0] sm:$0xfc]  ;;  %v2714_v0 = vrot.slane %v2639_v32, 2  ;;  %v2645_v4 = vld [vmem:[#allocation2 + $0x108] sm:$0x3] }
 0x2c2   : > { %v6482_v37 = vadd.f32 %v1122_v60, %v6217_v15  ;;  %v2713_v25 = vrot.slane %v2638_v58, 2  ;;  %v2716_v15 = vrot.slane %v2640_v16, 2  ;;  %v2717_v60 = vrot.slane %v2641_v47, 2 }
 0x2c3   : > { %v6478_v59 = vpop.f32.mrb[100].mxu0  ;;  %5082 = vmatmul.mubr.bf16.gmra.mrb[128].mxu1 %v2709_v53  ;;  %v2643_v53 = vld [vmem:[#allocation2 + $0xf8] sm:$0x3]  ;;  %v2722_v32 = vrot.slane %v2644_v12, 2  ;;  %v2723_v16 = vrot.slane %v2645_v4, 2 }
 0x2c4   : > { %7399 = vst [vmem:[#allocation44_spill] sm:$0xff] %v6478_v59  ;;  %v6484_v51 = vpop.f32.mrb[101].mxu0  ;;  %5085 = vmatprep.mubr.bf16.mxu1 %v2712_v46  ;;  %v2718_v56 = vsel %vm1633_vm0, %v2716_v15, %v2717_v60  ;;  %v2719_v59 = vrot.slane %v2642_v28, 2  ;;  %v7404_v60 = vld [vmem:[#allocation21_spill] sm:$0xff]  ;;  %v2647_v12 = vld [vmem:[#allocation2 + $0x118] sm:$0x3] }
 0x2c5   : > { %7400 = vst [vmem:[#allocation45_spill] sm:$0xff] %v6484_v51  ;;  %v6487_v1 = vpop.f32.mrb[102].mxu0  ;;  %v2715_v51 = vsel %vm1633_vm0, %v2713_v25, %v2714_v0 }
 0x2c6   : > { %7401 = vst [vmem:[#allocation46_spill] sm:$0xff] %v6487_v1  ;;  %v6490_v38 = vpop.f32.mrb[103].mxu0 }
 0x2c7   : > { %7402 = vst [vmem:[#allocation47_spill] sm:$0xff] %v6490_v38  ;;  %v2720_v38 = vrot.slane %v2643_v53, 2  ;;  %v2646_v53 = vld [vmem:[#allocation2 + $0x110] sm:$0xfc] }
 0x2cb   : > { %5086 = vmatmul.mubr.bf16.gmra.mrb[132].mxu1 %v2715_v51 }
 0x2cc   : > { %5089 = vmatprep.mubr.bf16.mxu1 %v2718_v56 }
 0x2ce   : > { %v4855_v1 = vpop.f32.mrb[28].mxu1 }
 0x2cf   : > { %v6495_v46 = vadd.f32 %v4855_v1, %v6245_v26  ;;  %v1135_v58 = vpop.f32.mrb[29].mxu1  ;;  %v2721_v26 = vsel %vm1633_vm0, %v2719_v59, %v2720_v38  ;;  %v7409_v38 = vld [vmem:[#allocation17_spill] sm:$0xff] }
 0x2d0   : > { %v6498_v47 = vadd.f32 %v1135_v58, %v6235_v30  ;;  %v4856_v0 = vpop.f32.mrb[30].mxu1  ;;  %v2724_v30 = vsel %vm1633_vm0, %v2722_v32, %v2723_v16  ;;  %v3278_v58 = vld [vmem:[#allocation2 + $0x48] sm:$0x1] }
 0x2d1   : > { %v6501_v51 = vadd.f32 %v4856_v0, %v6250_v34  ;;  %v1138_v25 = vpop.f32.mrb[31].mxu1  ;;  %v3277_v34 = vld [vmem:[#allocation2 + $0x40] sm:$0xfe]  ;;  %v3342_v59 = vrot.slane %v3278_v58, 1  ;;  %v3279_v58 = vld [vmem:[#allocation2 + $0x50] sm:$0xfe] }
 0x2d2   : > { %v6503_v15 = vpop.f32.mrb[104].mxu0  ;;  %v6506_v56 = vadd.f32 %v1138_v25, %v7404_v60  ;;  %v2726_v25 = vrot.slane %v2647_v12, 2  ;;  %v7408_v60 = vld [vmem:[#allocation19_spill] sm:$0xff]  ;;  %v3341_v11 = vrot.slane %v3277_v34, 1 }
 0x2d3   : > { %7403 = vst [vmem:[#allocation48_spill] sm:$0xff] %v6503_v15  ;;  %v6508_v28 = vpop.f32.mrb[105].mxu0  ;;  %5090 = vmatmul.mubr.bf16.gmra.mrb[136].mxu1 %v2721_v26  ;;  %v2725_v15 = vrot.slane %v2646_v53, 2  ;;  %v7412_v53 = vld [vmem:[#allocation22_spill] sm:$0xff] }
 0x2d4   : > { %7405 = vst [vmem:[#allocation21_spill] sm:$0xff] %v6508_v28  ;;  %v6511_v1 = vpop.f32.mrb[106].mxu0  ;;  %5093 = vmatprep.mubr.bf16.mxu1 %v2724_v30  ;;  %v7411_v30 = vld [vmem:[#allocation18_spill] sm:$0xff]  ;;  %v3343_v34 = vsel %vm1246_vm1, %v3341_v11, %v3342_v59 }
 0x2d5   : > { %7406 = vst [vmem:[#allocation49_spill] sm:$0xff] %v6511_v1  ;;  %v6514_v4 = vpop.f32.mrb[107].mxu0  ;;  %v2727_v42 = vsel %vm1633_vm0, %v2725_v15, %v2726_v25 }
 0x2d6   : > { %7407 = vst [vmem:[#allocation50_spill] sm:$0xff] %v6514_v4  ;;  %v4875_v0 = vpop.f32.mrb[32].mxu1 }
 0x2d7   : > { %v1539_v44 = vadd.f32 %v4875_v0, %v7408_v60  ;;  %v1410_v28 = vpop.f32.mrb[33].mxu1  ;;  %v3280_v0 = vld [vmem:[#allocation2 + $0x58] sm:$0x1] }
 0x2d8   : > { %v1537_v1 = vadd.f32 %v1410_v28, %v7409_v38  ;;  %v4876_v26 = vpop.f32.mrb[34].mxu1  ;;  %v7413_v28 = vld [vmem:[#allocation23_spill] sm:$0xff]  ;;  %v3282_v38 = vld [vmem:[#allocation2 + $0x68] sm:$0x1]  ;;  %v3345_v15 = vrot.slane %v3280_v0, 1 }
 0x2d9   : > { %v1540_v32 = vadd.f32 %v4876_v26, %v7410_v7  ;;  %v1413_v16 = vpop.f32.mrb[35].mxu1  ;;  %v6520_v35 = vadd.f32 %v6253_v63, %v1539_v44  ;;  %v3281_v7 = vld [vmem:[#allocation2 + $0x60] sm:$0xfe]  ;;  %v3344_v26 = vrot.slane %v3279_v58, 1 }
 0x2da   : > { %v1538_v4 = vadd.f32 %v1413_v16, %v7411_v30  ;;  %v6525_v12 = vadd.f32 %v7412_v53, %v1537_v1  ;;  %v3348_v16 = vrot.slane %v3282_v38, 1  ;;  %v5475_v30 = vld [vmem:[#allocation9] sm:$0xff]  }
 0x2db   : > { %5094 = vmatmul.mubr.bf16.gmra.mrb[140].mxu1 %v2727_v42  ;;  %v6529_v60 = vadd.f32 %v7413_v28, %v1540_v32  ;;  %v3347_v42 = vrot.slane %v3281_v7, 1  ;;  %v3346_v58 = vsel %vm1246_vm1, %v3344_v26, %v3345_v15  ;;  %v3284_v7 = vld [vmem:[#allocation2 + $0x78] sm:$0x1]  ;;  %v3286_v26 = vld [vmem:[#allocation2 + $0x88] sm:$0x1]  ;;  %v7414_v15 = vmov 0.0  }
 0x2dc   : > { %5161 = vmatprep.mubr.bf16.mxu1 %v3343_v34  ;;  %v6532_v63 = vadd.f32 %v6261_v57, %v1538_v4 }
 0x2de   : > { %v4879_v44 = vpop.f32.mrb[36].mxu1 }
 0x2df   : > { %v1543_v1 = vadd.f32 %v4879_v44, %v6323_v14  ;;  %v1426_v25 = vpop.f32.mrb[37].mxu1  ;;  %v3285_v44 = vld [vmem:[#allocation2 + $0x80] sm:$0xfe] }
 0x2e0   : > { %v1541_v11 = vadd.f32 %v1426_v25, %v6326_v8  ;;  %v4880_v59 = vpop.f32.mrb[38].mxu1  ;;  %v3349_v8 = vsel %vm1246_vm1, %v3347_v42, %v3348_v16  ;;  %v3351_v42 = vrot.slane %v3284_v7, 1 }
 0x2e1   : > { %v1544_v32 = vadd.f32 %v4880_v59, %v6329_v24  ;;  %v1429_v53 = vpop.f32.mrb[39].mxu1  ;;  %v6540_v57 = vadd.f32 %v6331_v5, %v1543_v1  ;;  %v3283_v24 = vld [vmem:[#allocation2 + $0x70] sm:$0xfe]  ;;  %v3354_v59 = vrot.slane %v3286_v26, 1  ;;  %v3288_v26 = vld [vmem:[#allocation2 + $0x98] sm:$0x1] }
 0x2e2   : > { %v6537_v34 = vpop.f32.mrb[108].mxu0  ;;  %v1542_v4 = vadd.f32 %v1429_v53, %v6334_v22  ;;  %v6547_v0 = vadd.f32 %v6336_v36, %v1541_v11  ;;  %v5476_v22 = vld [vmem:[#allocation9 + $0x8] sm:$0xff]   ;;  %v3350_v25 = vrot.slane %v3283_v24, 1  ;;  %v5477_v53 = vld [vmem:[#allocation9 + $0x10] sm:$0xff]  }
 0x2e3   : > { %v6544_v14 = vpop.f32.mrb[109].mxu0  ;;  %5162 = vmatmul.mubr.bf16.vlgmr.msra.gmra.mrb[144].mxu1 %v3346_v58  ;;  %v6553_v38 = vadd.f32 %v6338_v48, %v1544_v32  ;;  %v3353_v48 = vrot.slane %v3285_v44, 1  ;;  %v3287_v44 = vld [vmem:[#allocation2 + $0x90] sm:$0xfe] }
 0x2e4   : > { %v6550_v28 = vpop.f32.mrb[110].mxu0  ;;  %5242 = vmatpush3.bf16.msra.mxu1 %v5475_v30  ;;  %5165 = vmatprep.mubr.bf16.mxu1 %v3349_v8  ;;  %v6558_v36 = vadd.f32 %v6340_v55, %v1542_v4  ;;  %v3352_v7 = vsel %vm1246_vm1, %v3350_v25, %v3351_v42  ;;  %v5478_v25 = vld [vmem:[#allocation9 + $0x18] sm:$0xff]  }
 0x2e5   : > { %v6555_v5 = vpop.f32.mrb[111].mxu0  ;;  %5243 = vmatprep.subr.bf16.mxu1 %v7414_v15 }
 0x2e6   : > { %v4883_v1 = vpop.f32.mrb[40].mxu1 }
 0x2e7   : > { %v1547_v16 = vadd.f32 %v4883_v1, %v6349_v13  ;;  %v1442_v11 = vpop.f32.mrb[41].mxu1 }
 0x2e8   : > { %v1545_v30 = vadd.f32 %v1442_v11, %v6352_v54  ;;  %v4884_v32 = vpop.f32.mrb[42].mxu1  ;;  %5244 = vmatpush3.bf16.msra.mxu1 %v5476_v22  ;;  %v3356_v11 = vrot.slane %v3287_v44, 1 }
 0x2e9   : > { %v1548_v58 = vadd.f32 %v4884_v32, %v6355_v50  ;;  %v1445_v8 = vpop.f32.mrb[43].mxu1  ;;  %5245 = vmatprep.subr.bf16.mxu1 %v7414_v15  ;;  %v6568_v4 = vadd.f32 %v6357_v29, %v1547_v16  ;;  %v3355_v50 = vsel %vm1246_vm1, %v3353_v48, %v3354_v59  ;;  %v3290_v16 = vld [vmem:[#allocation2 + $0xa8] sm:$0x1]  ;;  %v3357_v48 = vrot.slane %v3288_v26, 1 }
 0x2ea   : > { %v6564_v55 = vpop.f32.mrb[112].mxu0  ;;  %v1546_v13 = vadd.f32 %v1445_v8, %v6361_v27  ;;  %v6575_v54 = vadd.f32 %v6363_v18, %v1545_v30  ;;  %v3289_v27 = vld [vmem:[#allocation2 + $0xa0] sm:$0xfe]  ;;  %v3360_v32 = vrot.slane %v3290_v16, 1  ;;  %v3291_v16 = vld [vmem:[#allocation2 + $0xb0] sm:$0xfe] }
 0x2eb   : > { %v6571_v24 = vpop.f32.mrb[113].mxu0  ;;  %5166 = vmatmul.mubr.bf16.gmra.mrb[148].mxu1 %v3352_v7  ;;  %v6581_v1 = vadd.f32 %v6365_v52, %v1548_v58  ;;  %v3359_v52 = vrot.slane %v3289_v27, 1  ;;  %v3358_v26 = vsel %vm1246_vm1, %v3356_v11, %v3357_v48  ;;  %v5480_v11 = vld [vmem:[#allocation9 + $0x28] sm:$0xff]  }
 0x2ec   : > { %v6577_v22 = vpop.f32.mrb[114].mxu0  ;;  %5169 = vmatprep.mubr.bf16.mxu1 %v3355_v50  ;;  %5246 = vmatpush3.bf16.msra.mxu1 %v5477_v53  ;;  %v6586_v18 = vadd.f32 %v6368_v21, %v1546_v13  ;;  %v5479_v53 = vld [vmem:[#allocation9 + $0x20] sm:$0xff]  }
 0x2ed   : > { %v6583_v29 = vpop.f32.mrb[115].mxu0  ;;  %5247 = vmatprep.subr.bf16.mxu1 %v7414_v15 }
 0x2ee   : > { %v4887_v42 = vpop.f32.mrb[44].mxu1 }
 0x2ef   : > { %v1551_v59 = vadd.f32 %v4887_v42, %v6371_v19  ;;  %v1458_v30 = vpop.f32.mrb[45].mxu1 }
 0x2f0   : > { %v1549_v58 = vadd.f32 %v1458_v30, %v6374_v45  ;;  %v4888_v8 = vpop.f32.mrb[46].mxu1  ;;  %5248 = vmatpush3.bf16.msra.mxu1 %v5478_v25  ;;  %v3292_v25 = vld [vmem:[#allocation2 + $0xb8] sm:$0x1]  ;;  %v3362_v30 = vrot.slane %v3291_v16, 1 }
 0x2f1   : > { %v1552_v7 = vadd.f32 %v4888_v8, %v6377_v39  ;;  %v1461_v50 = vpop.f32.mrb[47].mxu1  ;;  %5249 = vmatprep.subr.bf16.mxu1 %v7414_v15  ;;  %v6596_v13 = vadd.f32 %v6379_v33, %v1551_v59  ;;  %v3361_v39 = vsel %vm1246_vm1, %v3359_v52, %v3360_v32  ;;  %v3294_v59 = vld [vmem:[#allocation2 + $0xc8] sm:$0x1]  ;;  %v3363_v52 = vrot.slane %v3292_v25, 1 }
 0x2f2   : > { %v6592_v21 = vpop.f32.mrb[116].mxu0  ;;  %v1550_v19 = vadd.f32 %v1461_v50, %v6382_v61  ;;  %v6603_v45 = vadd.f32 %v6384_v31, %v1549_v58  ;;  %v3293_v61 = vld [vmem:[#allocation2 + $0xc0] sm:$0xfe]  ;;  %v3366_v8 = vrot.slane %v3294_v59, 1 }
 0x2f3   : > { %v6599_v44 = vpop.f32.mrb[117].mxu0  ;;  %5170 = vmatmul.mubr.bf16.gmra.mrb[152].mxu1 %v3358_v26  ;;  %v6609_v42 = vadd.f32 %v6386_v23, %v1552_v7  ;;  %v3365_v58 = vrot.slane %v3293_v61, 1  ;;  %v3364_v16 = vsel %vm1246_vm1, %v3362_v30, %v3363_v52  ;;  %v3295_v61 = vld [vmem:[#allocation2 + $0xd0] sm:$0xfe] }
 0x2f4   : > { %v6605_v27 = vpop.f32.mrb[118].mxu0  ;;  %5173 = vmatprep.mubr.bf16.mxu1 %v3361_v39  ;;  %5250 = vmatpush3.bf16.msra.mxu1 %v5479_v53  ;;  %v6614_v31 = vadd.f32 %v6389_v6, %v1550_v19  ;;  %v5481_v53 = vld [vmem:[#allocation9 + $0x30] sm:$0xff]  }
 0x2f5   : > { %v6611_v33 = vpop.f32.mrb[119].mxu0  ;;  %5251 = vmatprep.subr.bf16.mxu1 %v7414_v15  ;;  %v3367_v25 = vsel %vm1246_vm1, %v3365_v58, %v3366_v8 }
 0x2f6   : > { %7415 = vst [vmem:[#allocation19_spill] sm:$0xff] %v6611_v33  ;;  %v4891_v48 = vpop.f32.mrb[48].mxu1 }
 0x2f7   : > { %v6618_v32 = vadd.f32 %v4891_v48, %v6403_v9  ;;  %v1474_v23 = vpop.f32.mrb[49].mxu1  ;;  %v3298_v48 = vld [vmem:[#allocation2 + $0xe8] sm:$0x1] }
 0x2f8   : > { %v6621_v7 = vadd.f32 %v1474_v23, %v6406_v43  ;;  %v4892_v50 = vpop.f32.mrb[50].mxu1  ;;  %5252 = vmatpush3.bf16.msra.mxu1 %v5480_v11  ;;  %v3297_v11 = vld [vmem:[#allocation2 + $0xe0] sm:$0xfe]  ;;  %v5482_v23 = vld [vmem:[#allocation9 + $0x38] sm:$0xff]   ;;  %v3372_v58 = vrot.slane %v3298_v48, 1 }
 0x2f9   : > { %v6624_v6 = vadd.f32 %v4892_v50, %v6410_v10  ;;  %v1477_v19 = vpop.f32.mrb[51].mxu1  ;;  %5253 = vmatprep.subr.bf16.mxu1 %v7414_v15  ;;  %v3296_v10 = vld [vmem:[#allocation2 + $0xd8] sm:$0x1]  ;;  %v3368_v50 = vrot.slane %v3295_v61, 1 }
 0x2fa   : > { %v6626_v26 = vpop.f32.mrb[120].mxu0  ;;  %v6630_v9 = vadd.f32 %v1477_v19, %v6416_v2  ;;  %v3369_v19 = vrot.slane %v3296_v10, 1 }
 0x2fb   : > { %7416 = vst [vmem:[#allocation17_spill] sm:$0xff] %v6626_v26  ;;  %v6632_v39 = vpop.f32.mrb[121].mxu0  ;;  %5174 = vmatmul.mubr.bf16.gmra.mrb[156].mxu1 %v3364_v16  ;;  %v3371_v16 = vrot.slane %v3297_v11, 1  ;;  %v7422_v11 = vld [vmem:[#allocation16_spill] sm:$0xff] }
 0x2fc   : > { %7417 = vst [vmem:[#allocation20_spill] sm:$0xff] %v6632_v39  ;;  %v6635_v43 = vpop.f32.mrb[122].mxu0  ;;  %5177 = vmatprep.mubr.bf16.mxu1 %v3367_v25  ;;  %5254 = vmatpush3.bf16.msra.mxu1 %v5481_v53  ;;  %v4112_v48 = vrot.slane %v7422_v11, 4 }
 0x2fd   : > { %7418 = vst [vmem:[#allocation18_spill] sm:$0xff] %v6635_v43  ;;  %v6638_v59 = vpop.f32.mrb[123].mxu0  ;;  %5255 = vmatprep.subr.bf16.mxu1 %v7414_v15 }
 0x2fe   : > { %7419 = vst [vmem:[#allocation22_spill] sm:$0xff] %v6638_v59  ;;  %v4895_v2 = vpop.f32.mrb[52].mxu1 }
 0x2ff   : > { %v6642_v30 = vadd.f32 %v4895_v2, %v6438_v41  ;;  %v1490_v52 = vpop.f32.mrb[53].mxu1  ;;  %v3370_v41 = vsel %vm1246_vm1, %v3368_v50, %v3369_v19 }
 0x300   : > { %v6645_v8 = vadd.f32 %v1490_v52, %v6441_v62  ;;  %v4896_v59 = vpop.f32.mrb[54].mxu1  ;;  %5256 = vmatpush3.bf16.msra.mxu1 %v5482_v23  ;;  %v3373_v62 = vsel %vm1246_vm1, %v3371_v16, %v3372_v58  ;;  %v3299_v23 = vld [vmem:[#allocation2 + $0xf0] sm:$0xfe]  ;;  %v3301_v52 = vld [vmem:[#allocation2 + $0x100] sm:$0xfe] }
 0x301   : > { %v6648_v25 = vadd.f32 %v4896_v59, %v6444_v49  ;;  %v1493_v53 = vpop.f32.mrb[55].mxu1  ;;  %v3300_v49 = vld [vmem:[#allocation2 + $0xf8] sm:$0x1] }
 0x302   : > { %v6650_v43 = vpop.f32.mrb[124].mxu0  ;;  %v6653_v61 = vadd.f32 %v1493_v53, %v6449_v20  ;;  %v3374_v53 = vrot.slane %v3299_v23, 1  ;;  %v3375_v39 = vrot.slane %v3300_v49, 1  ;;  %v3306_v49 = vld [vmem:[#allocation2 + $0x128] sm:$0x1] }
 0x303   : > { %7420 = vst [vmem:[#allocation23_spill] sm:$0xff] %v6650_v43  ;;  %v6655_v10 = vpop.f32.mrb[125].mxu0  ;;  %5178 = vmatmul.mubr.bf16.gmra.mrb[160].mxu1 %v3370_v41  ;;  %v3302_v43 = vld [vmem:[#allocation2 + $0x108] sm:$0x1] }
 0x304   : > { %7421 = vst [vmem:[#allocation51_spill] sm:$0xff] %v6655_v10  ;;  %v6659_v2 = vpop.f32.mrb[126].mxu0  ;;  %5181 = vmatprep.mubr.bf16.mxu1 %v3373_v62  ;;  %v4113_v10 = vadd.f32 %v4112_v48, %v7422_v11  ;;  %v3378_v41 = vrot.slane %v3302_v43, 1  ;;  %v3305_v48 = vld [vmem:[#allocation2 + $0x120] sm:$0xfe] }
 0x305   : > { %7423 = vst [vmem:[#allocation16_spill] sm:$0xff] %v6659_v2  ;;  %v6662_v59 = vpop.f32.mrb[127].mxu0  ;;  %v3377_v2 = vrot.slane %v3301_v52, 1 }
 0x306   : > { %7424 = vst [vmem:[#allocation52_spill] sm:$0xff] %v6662_v59  ;;  %v4899_v20 = vpop.f32.mrb[56].mxu1  ;;  %v4114_v43 = vrot.slane %v4113_v10, 2 }
 0x307   : > { %v6666_v50 = vadd.f32 %v4899_v20, %v6470_v17  ;;  %v1506_v19 = vpop.f32.mrb[57].mxu1  ;;  %v3376_v17 = vsel %vm1246_vm1, %v3374_v53, %v3375_v39  ;;  %v3304_v20 = vld [vmem:[#allocation2 + $0x118] sm:$0x1] }
 0x308   : > { %v6669_v16 = vadd.f32 %v1506_v19, %v6473_v3  ;;  %v4900_v58 = vpop.f32.mrb[58].mxu1  ;;  %v3379_v3 = vsel %vm1246_vm1, %v3377_v2, %v3378_v41  ;;  %v4115_v33 = vadd.f32 %v4114_v43, %v4113_v10 }
 0x309   : > { %v6672_v59 = vadd.f32 %v4900_v58, %v6476_v40  ;;  %v1509_v62 = vpop.f32.mrb[59].mxu1  ;;  %v3303_v40 = vld [vmem:[#allocation2 + $0x110] sm:$0xfe]  ;;  %v3383_v58 = vrot.slane %v3305_v48, 1 }
 0x30a   : > { %v6674_v26 = vpop.f32.mrb[128].mxu0  ;;  %v6677_v23 = vadd.f32 %v1509_v62, %v6482_v37  ;;  %v3384_v37 = vrot.slane %v3306_v49, 1  ;;  %v3307_v49 = vld [vmem:[#allocation2 + $0x130] sm:$0xfe] }
 0x30b   : > { %7425 = vst [vmem:[#allocation53_spill] sm:$0xff] %v6674_v26  ;;  %v6679_v11 = vpop.f32.mrb[129].mxu0  ;;  %5182 = vmatmul.mubr.bf16.gmra.mrb[164].mxu1 %v3376_v17  ;;  %v3380_v26 = vrot.slane %v3303_v40, 1  ;;  %v4116_v40 = vrot.slane %v4115_v33, 1 }
 0x30c   : > { %7426 = vst [vmem:[#allocation54_spill] sm:$0xff] %v6679_v11  ;;  %v6682_v52 = vpop.f32.mrb[130].mxu0  ;;  %5185 = vmatprep.mubr.bf16.mxu1 %v3379_v3  ;;  %v3381_v11 = vrot.slane %v3304_v20, 1  ;;  %v3385_v48 = vsel %vm1246_vm1, %v3383_v58, %v3384_v37  ;;  %v3308_v3 = vld [vmem:[#allocation2 + $0x138] sm:$0x1] }
 0x30d   : > { %7427 = vst [vmem:[#allocation55_spill] sm:$0xff] %v6682_v52  ;;  %v6685_v19 = vpop.f32.mrb[131].mxu0 }
 0x30e   : > { %7428 = vst [vmem:[#allocation56_spill] sm:$0xff] %v6685_v19  ;;  %v4903_v62 = vpop.f32.mrb[60].mxu1 }
 0x30f   : > { %v6688_v39 = vadd.f32 %v4903_v62, %v6495_v46  ;;  %v1522_v53 = vpop.f32.mrb[61].mxu1  ;;  %v3382_v46 = vsel %vm1246_vm1, %v3380_v26, %v3381_v11  ;;  %v3387_v62 = vrot.slane %v3308_v3, 1 }
 0x310   : > { %v6691_v52 = vadd.f32 %v1522_v53, %v6498_v47  ;;  %v4904_v17 = vpop.f32.mrb[62].mxu1 }
 0x311   : > { %v6694_v2 = vadd.f32 %v4904_v17, %v6501_v51  ;;  %v1525_v41 = vpop.f32.mrb[63].mxu1  ;;  %v3386_v51 = vrot.slane %v3307_v49, 1  ;;  %v4117_v17 = vadd.f32 %v4116_v40, %v4115_v33 }
 0x312   : > { %v6696_v19 = vpop.f32.mrb[132].mxu0  ;;  %v1566_v10 = vadd.f32 %v1525_v41, %v6506_v56 }
 0x313   : > { %v6700_v43 = vpop.f32.mrb[133].mxu0  ;;  %5186 = vmatmul.mubr.bf16.gmra.mrb[168].mxu1 %v3382_v46  ;;  %v3388_v26 = vsel %vm1246_vm1, %v3386_v51, %v3387_v62  ;;  %v4119_v33 = vmul.f32 0.00390625, %v4117_v17 }
 0x314   : > { %v6703_v47 = vpop.f32.mrb[134].mxu0  ;;  %5189 = vmatprep.mubr.bf16.mxu1 %v3385_v48 }
 0x315   : > { %v6705_v20 = vpop.f32.mrb[135].mxu0  ;;  %v4120_v51 = vpack.c.bf16 %v4119_v33, %v4119_v33 }
 0x316   : > { %7429 = vst [vmem:[#allocation57_spill] sm:$0xff] %v6705_v20  ;;  %v4939_v53 = vpop.f32.mrb[64].mxu1 }
 0x317   : > { %v6708_v58 = vadd.f32 %v4939_v53, %v6618_v32  ;;  %v1861_v37 = vpop.f32.mrb[65].mxu1 }
 0x318   : > { %v6711_v56 = vadd.f32 %v1861_v37, %v6621_v7  ;;  %v4940_v41 = vpop.f32.mrb[66].mxu1 }
 0x319   : > { %v6715_v11 = vadd.f32 %v4940_v41, %v6624_v6  ;;  %v1864_v46 = vpop.f32.mrb[67].mxu1 }
 0x31a   : > { %v6717_v20 = vpop.f32.mrb[136].mxu0  ;;  %v6720_v48 = vadd.f32 %v1864_v46, %v6630_v9 }
 0x31b   : > { %v6722_v49 = vpop.f32.mrb[137].mxu0  ;;  %5190 = vmatmul.mubr.bf16.gmra.mrb[172].mxu1 %v3388_v26 }
 0x31c   : > { %v6724_v32 = vpop.f32.mrb[138].mxu0  ;;  %5257 = vmatprep.mubr.msk.bf16.mxu1 %vm5706_vm2, %v7414_v15 }
 0x31d   : > { %v6727_v7 = vpop.f32.mrb[139].mxu0 }
 0x31e   : > { %7430 = vst [vmem:[#allocation58_spill] sm:$0xff] %v6727_v7  ;;  %v4943_v3 = vpop.f32.mrb[68].mxu1  ;;  %v7486_v7 = vld [vmem:[#allocation47_spill] sm:$0xff] }
 0x31f   : > { %v6730_v6 = vadd.f32 %v4943_v3, %v6642_v30  ;;  %v1877_v40 = vpop.f32.mrb[69].mxu1 }
 0x320   : > { %v6733_v9 = vadd.f32 %v1877_v40, %v6645_v8  ;;  %v4944_v62 = vpop.f32.mrb[70].mxu1 }
 0x321   : > { %v6736_v53 = vadd.f32 %v4944_v62, %v6648_v25  ;;  %v1880_v37 = vpop.f32.mrb[71].mxu1 }
 0x322   : > { %v6738_v17 = vpop.f32.mrb[140].mxu0  ;;  %v6741_v15 = vadd.f32 %v1880_v37, %v6653_v61 }
 0x323   : > { %7431 = vst [vmem:[#allocation59_spill] sm:$0xff] %v6738_v17  ;;  %v6743_v41 = vpop.f32.mrb[141].mxu0  ;;  %5258 = vmatmul.mubr.bf16.vlgmr.msra.gmra.mrb[176].mxu1 %v4120_v51 }
 0x324   : > { %7432 = vst [vmem:[#allocation60_spill] sm:$0xff] %v6743_v41  ;;  %v6745_v30 = vpop.f32.mrb[142].mxu0 }
 0x325   : > { %7433 = vst [vmem:[#allocation61_spill] sm:$0xff] %v6745_v30  ;;  %v6747_v26 = vpop.f32.mrb[143].mxu0 }
 0x326   : > { %7434 = vst [vmem:[#allocation62_spill] sm:$0xff] %v6747_v26  ;;  %v4947_v46 = vpop.f32.mrb[72].mxu1 }
 0x327   : > { %v6750_v8 = vadd.f32 %v4947_v46, %v6666_v50  ;;  %v1893_v33 = vpop.f32.mrb[73].mxu1 }
 0x328   : > { %v6753_v25 = vadd.f32 %v1893_v33, %v6669_v16  ;;  %v4948_v3 = vpop.f32.mrb[74].mxu1 }
 0x329   : > { %v6756_v40 = vadd.f32 %v4948_v3, %v6672_v59  ;;  %v1896_v61 = vpop.f32.mrb[75].mxu1 }
 0x32a   : > { %v6758_v62 = vpop.f32.mrb[144].mxu0  ;;  %v6761_v51 = vadd.f32 %v1896_v61, %v6677_v23 }
 0x32b   : > { %7435 = vst [vmem:[#allocation63_spill] sm:$0xff] %v6758_v62  ;;  %v6763_v37 = vpop.f32.mrb[145].mxu0 }
 0x32c   : > { %7436 = vst [vmem:[#allocation64_spill] sm:$0xff] %v6763_v37  ;;  %v6765_v26 = vpop.f32.mrb[146].mxu0 }
 0x32d   : > { %7437 = vst [vmem:[#allocation65_spill] sm:$0xff] %v6765_v26  ;;  %v6767_v50 = vpop.f32.mrb[147].mxu0 }
 0x32e   : > { %7438 = vst [vmem:[#allocation66_spill] sm:$0xff] %v6767_v50  ;;  %v4951_v46 = vpop.f32.mrb[76].mxu1 }
 0x32f   : > { %v6770_v16 = vadd.f32 %v4951_v46, %v6688_v39  ;;  %v1909_v33 = vpop.f32.mrb[77].mxu1 }
 0x330   : > { %v6773_v59 = vadd.f32 %v1909_v33, %v6691_v52  ;;  %v4952_v3 = vpop.f32.mrb[78].mxu1 }
 0x331   : > { %v6776_v62 = vadd.f32 %v4952_v3, %v6694_v2  ;;  %v1912_v23 = vpop.f32.mrb[79].mxu1 }
 0x332   : > { %v6778_v61 = vpop.f32.mrb[148].mxu0  ;;  %v6780_v37 = vadd.f32 %v1912_v23, %v1566_v10  ;;  %v7444_v10 = vld [vmem:[#allocation24_spill] sm:$0xff] }
 0x333   : > { %7439 = vst [vmem:[#allocation67_spill] sm:$0xff] %v6778_v61  ;;  %v6782_v26 = vpop.f32.mrb[149].mxu0 }
 0x334   : > { %7440 = vst [vmem:[#allocation68_spill] sm:$0xff] %v6782_v26  ;;  %v6784_v50 = vpop.f32.mrb[150].mxu0 }
 0x335   : > { %7441 = vst [vmem:[#allocation69_spill] sm:$0xff] %v6784_v50  ;;  %v6786_v30 = vpop.f32.mrb[151].mxu0 }
 0x336   : > { %7442 = vst [vmem:[#allocation70_spill] sm:$0xff] %v6786_v30  ;;  %v4971_v39 = vpop.f32.mrb[80].mxu1  ;;  %v7446_v30 = vld [vmem:[#allocation25_spill] sm:$0xff] }
 0x337   : > { %v2200_v46 = vadd.f32 %v4971_v39, %v6520_v35  ;;  %v2071_v52 = vpop.f32.mrb[81].mxu1  ;;  %v7448_v39 = vld [vmem:[#allocation26_spill] sm:$0xff] }
 0x338   : > { %v2198_v33 = vadd.f32 %v2071_v52, %v6525_v12  ;;  %v4972_v41 = vpop.f32.mrb[82].mxu1 }
 0x339   : > { %v2201_v2 = vadd.f32 %v4972_v41, %v6529_v60  ;;  %v2074_v3 = vpop.f32.mrb[83].mxu1  ;;  %v6794_v23 = vadd.f32 %v7444_v10, %v2200_v46  ;;  %v7450_v60 = vld [vmem:[#allocation27_spill] sm:$0xff] }
 0x33a   : > { %v6791_v17 = vpop.f32.mrb[152].mxu0  ;;  %v2199_v26 = vadd.f32 %v2074_v3, %v6532_v63  ;;  %v6800_v61 = vadd.f32 %v7446_v30, %v2198_v33 }
 0x33b   : > { %7443 = vst [vmem:[#allocation71_spill] sm:$0xff] %v6791_v17  ;;  %v6797_v50 = vpop.f32.mrb[153].mxu0  ;;  %v6805_v12 = vadd.f32 %v7448_v39, %v2201_v2 }
 0x33c   : > { %7445 = vst [vmem:[#allocation24_spill] sm:$0xff] %v6797_v50  ;;  %v6802_v35 = vpop.f32.mrb[154].mxu0  ;;  %v6810_v41 = vadd.f32 %v7450_v60, %v2199_v26  ;;  %v7454_v26 = vld [vmem:[#allocation29_spill] sm:$0xff] }
 0x33d   : > { %7447 = vst [vmem:[#allocation25_spill] sm:$0xff] %v6802_v35  ;;  %v6807_v52 = vpop.f32.mrb[155].mxu0  ;;  %v7452_v35 = vld [vmem:[#allocation28_spill] sm:$0xff] }
 0x33e   : > { %7449 = vst [vmem:[#allocation26_spill] sm:$0xff] %v6807_v52  ;;  %v4975_v17 = vpop.f32.mrb[84].mxu1 }
 0x33f   : > { %v2204_v46 = vadd.f32 %v4975_v17, %v6540_v57  ;;  %v2087_v10 = vpop.f32.mrb[85].mxu1  ;;  %v7456_v17 = vld [vmem:[#allocation30_spill] sm:$0xff] }
 0x340   : > { %v2202_v63 = vadd.f32 %v2087_v10, %v6547_v0  ;;  %v4976_v3 = vpop.f32.mrb[86].mxu1 }
 0x341   : > { %v2205_v30 = vadd.f32 %v4976_v3, %v6553_v38  ;;  %v2090_v33 = vpop.f32.mrb[87].mxu1  ;;  %v6818_v2 = vadd.f32 %v7452_v35, %v2204_v46  ;;  %v7458_v38 = vld [vmem:[#allocation31_spill] sm:$0xff] }
 0x342   : > { %v6815_v50 = vpop.f32.mrb[156].mxu0  ;;  %v2203_v39 = vadd.f32 %v2090_v33, %v6558_v36  ;;  %v6824_v60 = vadd.f32 %v7454_v26, %v2202_v63 }
 0x343   : > { %7451 = vst [vmem:[#allocation27_spill] sm:$0xff] %v6815_v50  ;;  %v6821_v52 = vpop.f32.mrb[157].mxu0  ;;  %v6829_v0 = vadd.f32 %v7456_v17, %v2205_v30 }
 0x344   : > { %7453 = vst [vmem:[#allocation28_spill] sm:$0xff] %v6821_v52  ;;  %v6826_v57 = vpop.f32.mrb[158].mxu0  ;;  %v6834_v3 = vadd.f32 %v7458_v38, %v2203_v39  ;;  %v7462_v39 = vld [vmem:[#allocation33_spill] sm:$0xff] }
 0x345   : > { %7455 = vst [vmem:[#allocation29_spill] sm:$0xff] %v6826_v57  ;;  %v6831_v10 = vpop.f32.mrb[159].mxu0  ;;  %v7460_v57 = vld [vmem:[#allocation32_spill] sm:$0xff] }
 0x346   : > { %7457 = vst [vmem:[#allocation30_spill] sm:$0xff] %v6831_v10  ;;  %v4979_v50 = vpop.f32.mrb[88].mxu1 }
 0x347   : > { %v2208_v35 = vadd.f32 %v4979_v50, %v6568_v4  ;;  %v2103_v46 = vpop.f32.mrb[89].mxu1  ;;  %v7464_v50 = vld [vmem:[#allocation34_spill] sm:$0xff] }
 0x348   : > { %v2206_v36 = vadd.f32 %v2103_v46, %v6575_v54  ;;  %v4980_v33 = vpop.f32.mrb[90].mxu1 }
 0x349   : > { %v2209_v63 = vadd.f32 %v4980_v33, %v6581_v1  ;;  %v2106_v26 = vpop.f32.mrb[91].mxu1  ;;  %v6842_v30 = vadd.f32 %v7460_v57, %v2208_v35  ;;  %v7466_v1 = vld [vmem:[#allocation35_spill] sm:$0xff] }
 0x34a   : > { %v6839_v52 = vpop.f32.mrb[160].mxu0  ;;  %v2207_v17 = vadd.f32 %v2106_v26, %v6586_v18  ;;  %v6848_v38 = vadd.f32 %v7462_v39, %v2206_v36 }
 0x34b   : > { %7459 = vst [vmem:[#allocation31_spill] sm:$0xff] %v6839_v52  ;;  %v6845_v10 = vpop.f32.mrb[161].mxu0  ;;  %v6853_v54 = vadd.f32 %v7464_v50, %v2209_v63 }
 0x34c   : > { %7461 = vst [vmem:[#allocation32_spill] sm:$0xff] %v6845_v10  ;;  %v6850_v4 = vpop.f32.mrb[162].mxu0  ;;  %v6858_v33 = vadd.f32 %v7466_v1, %v2207_v17  ;;  %v7470_v17 = vld [vmem:[#allocation37_spill] sm:$0xff] }
 0x34d   : > { %7463 = vst [vmem:[#allocation33_spill] sm:$0xff] %v6850_v4  ;;  %v6855_v46 = vpop.f32.mrb[163].mxu0  ;;  %v7468_v4 = vld [vmem:[#allocation36_spill] sm:$0xff] }
 0x34e   : > { %7465 = vst [vmem:[#allocation34_spill] sm:$0xff] %v6855_v46  ;;  %v4983_v52 = vpop.f32.mrb[92].mxu1 }
 0x34f   : > { %v2212_v57 = vadd.f32 %v4983_v52, %v6596_v13  ;;  %v2119_v35 = vpop.f32.mrb[93].mxu1  ;;  %v7472_v52 = vld [vmem:[#allocation38_spill] sm:$0xff] }
 0x350   : > { %v2210_v18 = vadd.f32 %v2119_v35, %v6603_v45  ;;  %v4984_v26 = vpop.f32.mrb[94].mxu1 }
 0x351   : > { %v2213_v36 = vadd.f32 %v4984_v26, %v6609_v42  ;;  %v2122_v39 = vpop.f32.mrb[95].mxu1  ;;  %v6866_v63 = vadd.f32 %v7468_v4, %v2212_v57  ;;  %v7474_v42 = vld [vmem:[#allocation39_spill] sm:$0xff] }
 0x352   : > { %v6863_v10 = vpop.f32.mrb[164].mxu0  ;;  %v2211_v50 = vadd.f32 %v2122_v39, %v6614_v31  ;;  %v6872_v1 = vadd.f32 %v7470_v17, %v2210_v18 }
 0x353   : > { %7467 = vst [vmem:[#allocation35_spill] sm:$0xff] %v6863_v10  ;;  %v6869_v46 = vpop.f32.mrb[165].mxu0  ;;  %v6877_v45 = vadd.f32 %v7472_v52, %v2213_v36 }
 0x354   : > { %7469 = vst [vmem:[#allocation36_spill] sm:$0xff] %v6869_v46  ;;  %v6874_v13 = vpop.f32.mrb[166].mxu0  ;;  %v6882_v26 = vadd.f32 %v7474_v42, %v2211_v50  ;;  %v7478_v50 = vld [vmem:[#allocation41_spill] sm:$0xff] }
 0x355   : > { %7471 = vst [vmem:[#allocation37_spill] sm:$0xff] %v6874_v13  ;;  %v6879_v35 = vpop.f32.mrb[167].mxu0  ;;  %v7476_v13 = vld [vmem:[#allocation40_spill] sm:$0xff] }
 0x356   : > { %7473 = vst [vmem:[#allocation38_spill] sm:$0xff] %v6879_v35  ;;  %v4987_v10 = vpop.f32.mrb[96].mxu1 }
 0x357   : > { %v2216_v4 = vadd.f32 %v4987_v10, %v6708_v58  ;;  %v2135_v57 = vpop.f32.mrb[97].mxu1  ;;  %v7480_v10 = vld [vmem:[#allocation42_spill] sm:$0xff] }
 0x358   : > { %v2214_v31 = vadd.f32 %v2135_v57, %v6711_v56  ;;  %v4988_v39 = vpop.f32.mrb[98].mxu1 }
 0x359   : > { %v2217_v18 = vadd.f32 %v4988_v39, %v6715_v11  ;;  %v2138_v17 = vpop.f32.mrb[99].mxu1  ;;  %v6890_v36 = vadd.f32 %v7476_v13, %v2216_v4  ;;  %v7482_v11 = vld [vmem:[#allocation43_spill] sm:$0xff] }
 0x35a   : > { %v6887_v46 = vpop.f32.mrb[168].mxu0  ;;  %v2215_v52 = vadd.f32 %v2138_v17, %v6720_v48  ;;  %v6896_v42 = vadd.f32 %v7478_v50, %v2214_v31 }
 0x35b   : > { %7475 = vst [vmem:[#allocation39_spill] sm:$0xff] %v6887_v46  ;;  %v6893_v35 = vpop.f32.mrb[169].mxu0  ;;  %v6901_v56 = vadd.f32 %v7480_v10, %v2217_v18  ;;  %v7484_v10 = vld [vmem:[#allocation45_spill] sm:$0xff] }
 0x35c   : > { %7477 = vst [vmem:[#allocation40_spill] sm:$0xff] %v6893_v35  ;;  %v6898_v58 = vpop.f32.mrb[170].mxu0  ;;  %v6906_v39 = vadd.f32 %v7482_v11, %v2215_v52  ;;  %v7483_v35 = vld [vmem:[#allocation44_spill] sm:$0xff]  ;;  %v7485_v52 = vld [vmem:[#allocation46_spill] sm:$0xff] }
 0x35d   : > { %7479 = vst [vmem:[#allocation41_spill] sm:$0xff] %v6898_v58  ;;  %v6903_v57 = vpop.f32.mrb[171].mxu0 }
 0x35e   : > { %7481 = vst [vmem:[#allocation42_spill] sm:$0xff] %v6903_v57  ;;  %v4991_v46 = vpop.f32.mrb[100].mxu1 }
 0x35f   : > { %v2220_v13 = vadd.f32 %v4991_v46, %v6730_v6  ;;  %v2151_v4 = vpop.f32.mrb[101].mxu1 }
 0x360   : > { %v2218_v48 = vadd.f32 %v2151_v4, %v6733_v9  ;;  %v4992_v17 = vpop.f32.mrb[102].mxu1 }
 0x361   : > { %v2221_v31 = vadd.f32 %v4992_v17, %v6736_v53  ;;  %v2154_v50 = vpop.f32.mrb[103].mxu1  ;;  %v6912_v58 = vadd.f32 %v7483_v35, %v2220_v13 }
 0x362   : > { %v2219_v18 = vadd.f32 %v2154_v50, %v6741_v15  ;;  %v6916_v57 = vadd.f32 %v7484_v10, %v2218_v48  ;;  %v7487_v15 = vld [vmem:[#allocation48_spill] sm:$0xff] }
 0x363   : > { %v6919_v11 = vadd.f32 %v7485_v52, %v2221_v31  ;;  %v7488_v31 = vld [vmem:[#allocation21_spill] sm:$0xff]  ;;  %v7490_v52 = vld [vmem:[#allocation50_spill] sm:$0xff] }
 0x364   : > { %v6922_v6 = vadd.f32 %v7486_v7, %v2219_v18  ;;  %v7489_v7 = vld [vmem:[#allocation49_spill] sm:$0xff] }
 0x366   : > { %v4995_v46 = vpop.f32.mrb[104].mxu1 }
 0x367   : > { %v2224_v9 = vadd.f32 %v4995_v46, %v6750_v8  ;;  %v2167_v4 = vpop.f32.mrb[105].mxu1 }
 0x368   : > { %v2222_v53 = vadd.f32 %v2167_v4, %v6753_v25  ;;  %v4996_v17 = vpop.f32.mrb[106].mxu1 }
 0x369   : > { %v2225_v35 = vadd.f32 %v4996_v17, %v6756_v40  ;;  %v2170_v13 = vpop.f32.mrb[107].mxu1  ;;  %v6928_v50 = vadd.f32 %v7487_v15, %v2224_v9 }
 0x36a   : > { %v2223_v48 = vadd.f32 %v2170_v13, %v6761_v51  ;;  %v6932_v10 = vadd.f32 %v7488_v31, %v2222_v53 }
 0x36b   : > { %v6935_v18 = vadd.f32 %v7489_v7, %v2225_v35 }
 0x36c   : > { %v6938_v8 = vadd.f32 %v7490_v52, %v2223_v48 }
 0x36e   : > { %v4999_v46 = vpop.f32.mrb[108].mxu1 }
 0x36f   : > { %v2228_v25 = vadd.f32 %v4999_v46, %v6770_v16  ;;  %v2183_v4 = vpop.f32.mrb[109].mxu1 }
 0x370   : > { %v2226_v40 = vadd.f32 %v2183_v4, %v6773_v59  ;;  %v5000_v17 = vpop.f32.mrb[110].mxu1 }
 0x371   : > { %v2229_v9 = vadd.f32 %v5000_v17, %v6776_v62  ;;  %v2186_v15 = vpop.f32.mrb[111].mxu1  ;;  %v6944_v51 = vadd.f32 %v6537_v34, %v2228_v25 }
 0x372   : > { %v2227_v53 = vadd.f32 %v2186_v15, %v6780_v37  ;;  %v6948_v35 = vadd.f32 %v6544_v14, %v2226_v40 }
 0x373   : > { %v6951_v13 = vadd.f32 %v6550_v28, %v2229_v9 }
 0x374   : > { %v6954_v16 = vadd.f32 %v6555_v5, %v2227_v53  ;;  %v6956_v48 = vpop.f32.mrb[172].mxu0 }
 0x375   : > { %v6958_v31 = vpop.f32.mrb[173].mxu0 }
 0x376   : > { %v5067_v59 = vpop.f32.mrb[112].mxu1  ;;  %v6961_v7 = vpop.f32.mrb[174].mxu0 }
 0x377   : > { %v2972_v62 = vadd.f32 %v5067_v59, %v6794_v23  ;;  %v2843_v34 = vpop.f32.mrb[113].mxu1  ;;  %v6964_v52 = vpop.f32.mrb[175].mxu0  ;;  %v7491_v59 = vld [vmem:[#allocation19_spill] sm:$0xff] }
 0x378   : > { %v2970_v37 = vadd.f32 %v2843_v34, %v6800_v61  ;;  %v5068_v14 = vpop.f32.mrb[114].mxu1 }
 0x379   : > { %v2973_v28 = vadd.f32 %v5068_v14, %v6805_v12  ;;  %v2846_v46 = vpop.f32.mrb[115].mxu1  ;;  %v6968_v5 = vadd.f32 %v6564_v55, %v2972_v62 }
 0x37a   : > { %v2971_v25 = vadd.f32 %v2846_v46, %v6810_v41  ;;  %v6972_v4 = vadd.f32 %v6571_v24, %v2970_v37 }
 0x37b   : > { %v6975_v23 = vadd.f32 %v6577_v22, %v2973_v28 }
 0x37c   : > { %v6978_v40 = vadd.f32 %v6583_v29, %v2971_v25  ;;  %v7494_v25 = vld [vmem:[#allocation18_spill] sm:$0xff] }
 0x37e   : > { %v5071_v61 = vpop.f32.mrb[116].mxu1 }
 0x37f   : > { %v2976_v17 = vadd.f32 %v5071_v61, %v6818_v2  ;;  %v2859_v9 = vpop.f32.mrb[117].mxu1 }
 0x380   : > { %v2974_v12 = vadd.f32 %v2859_v9, %v6824_v60  ;;  %v5072_v15 = vpop.f32.mrb[118].mxu1 }
 0x381   : > { %v2977_v55 = vadd.f32 %v5072_v15, %v6829_v0  ;;  %v2862_v53 = vpop.f32.mrb[119].mxu1  ;;  %v6984_v41 = vadd.f32 %v6592_v21, %v2976_v17  ;;  %v7495_v17 = vld [vmem:[#allocation22_spill] sm:$0xff] }
 0x382   : > { %v2975_v24 = vadd.f32 %v2862_v53, %v6834_v3  ;;  %v6988_v22 = vadd.f32 %v6599_v44, %v2974_v12  ;;  %v7492_v3 = vld [vmem:[#allocation17_spill] sm:$0xff] }
 0x383   : > { %v6991_v29 = vadd.f32 %v6605_v27, %v2977_v55  ;;  %v7493_v27 = vld [vmem:[#allocation20_spill] sm:$0xff] }
 0x384   : > { %v6994_v2 = vadd.f32 %v7491_v59, %v2975_v24 }
 0x386   : > { %v5075_v62 = vpop.f32.mrb[120].mxu1 }
 0x387   : > { %v2980_v60 = vadd.f32 %v5075_v62, %v6842_v30  ;;  %v2875_v34 = vpop.f32.mrb[121].mxu1  ;;  %v7497_v62 = vld [vmem:[#allocation51_spill] sm:$0xff] }
 0x388   : > { %v2978_v0 = vadd.f32 %v2875_v34, %v6848_v38  ;;  %v5076_v37 = vpop.f32.mrb[122].mxu1  ;;  %v7498_v34 = vld [vmem:[#allocation16_spill] sm:$0xff] }
 0x389   : > { %v2981_v21 = vadd.f32 %v5076_v37, %v6853_v54  ;;  %v2878_v14 = vpop.f32.mrb[123].mxu1  ;;  %v7000_v28 = vadd.f32 %v7492_v3, %v2980_v60  ;;  %v7499_v37 = vld [vmem:[#allocation52_spill] sm:$0xff] }
 0x38a   : > { %v2979_v44 = vadd.f32 %v2878_v14, %v6858_v33  ;;  %v7004_v46 = vadd.f32 %v7493_v27, %v2978_v0  ;;  %v7496_v33 = vld [vmem:[#allocation23_spill] sm:$0xff] }
 0x38b   : > { %v7007_v61 = vadd.f32 %v7494_v25, %v2981_v21 }
 0x38c   : > { %v7010_v30 = vadd.f32 %v7495_v17, %v2979_v44 }
 0x38e   : > { %v5079_v9 = vpop.f32.mrb[124].mxu1 }
 0x38f   : > { %v2984_v38 = vadd.f32 %v5079_v9, %v6866_v63  ;;  %v2891_v12 = vpop.f32.mrb[125].mxu1  ;;  %v7501_v9 = vld [vmem:[#allocation54_spill] sm:$0xff] }
 0x390   : > { %v2982_v54 = vadd.f32 %v2891_v12, %v6872_v1  ;;  %v5080_v15 = vpop.f32.mrb[126].mxu1  ;;  %v7502_v12 = vld [vmem:[#allocation55_spill] sm:$0xff] }
 0x391   : > { %v2985_v55 = vadd.f32 %v5080_v15, %v6877_v45  ;;  %v2894_v53 = vpop.f32.mrb[127].mxu1  ;;  %v7016_v24 = vadd.f32 %v7496_v33, %v2984_v38  ;;  %v7503_v15 = vld [vmem:[#allocation56_spill] sm:$0xff] }
 0x392   : > { %v2983_v59 = vadd.f32 %v2894_v53, %v6882_v26  ;;  %v7020_v60 = vadd.f32 %v7497_v62, %v2982_v54  ;;  %v7500_v26 = vld [vmem:[#allocation53_spill] sm:$0xff] }
 0x393   : > { %v7023_v0 = vadd.f32 %v7498_v34, %v2985_v55 }
 0x394   : > { %v7026_v63 = vadd.f32 %v7499_v37, %v2983_v59 }
 0x396   : > { %v5083_v21 = vpop.f32.mrb[128].mxu1 }
 0x397   : > { %v2988_v1 = vadd.f32 %v5083_v21, %v6890_v36  ;;  %v2907_v14 = vpop.f32.mrb[129].mxu1 }
 0x398   : > { %v2986_v45 = vadd.f32 %v2907_v14, %v6896_v42  ;;  %v5084_v3 = vpop.f32.mrb[130].mxu1 }
 0x399   : > { %v2989_v44 = vadd.f32 %v5084_v3, %v6901_v56  ;;  %v2910_v27 = vpop.f32.mrb[131].mxu1  ;;  %v7032_v25 = vadd.f32 %v7500_v26, %v2988_v1  ;;  %v7504_v1 = vld [vmem:[#allocation57_spill] sm:$0xff]  ;;  %v7505_v26 = vld [vmem:[#allocation58_spill] sm:$0xff] }
 0x39a   : > { %v2987_v17 = vadd.f32 %v2910_v27, %v6906_v39  ;;  %v7036_v38 = vadd.f32 %v7501_v9, %v2986_v45 }
 0x39b   : > { %v7039_v54 = vadd.f32 %v7502_v12, %v2989_v44 }
 0x39c   : > { %v7042_v36 = vadd.f32 %v7503_v15, %v2987_v17 }
 0x39e   : > { %v5087_v55 = vpop.f32.mrb[132].mxu1 }
 0x39f   : > { %v2992_v42 = vadd.f32 %v5087_v55, %v6912_v58  ;;  %v2923_v53 = vpop.f32.mrb[133].mxu1 }
 0x3a0   : > { %v2990_v56 = vadd.f32 %v2923_v53, %v6916_v57  ;;  %v5088_v33 = vpop.f32.mrb[134].mxu1  ;;  %v7508_v53 = vld [vmem:[#allocation61_spill] sm:$0xff] }
 0x3a1   : > { %v2993_v59 = vadd.f32 %v5088_v33, %v6919_v11  ;;  %v2926_v62 = vpop.f32.mrb[135].mxu1  ;;  %v7048_v39 = vadd.f32 %v6696_v19, %v2992_v42  ;;  %v7509_v33 = vld [vmem:[#allocation62_spill] sm:$0xff] }
 0x3a2   : > { %v2991_v34 = vadd.f32 %v2926_v62, %v6922_v6  ;;  %v7052_v37 = vadd.f32 %v6700_v43, %v2990_v56 }
 0x3a3   : > { %v7055_v21 = vadd.f32 %v6703_v47, %v2993_v59 }
 0x3a4   : > { %v7058_v58 = vadd.f32 %v7504_v1, %v2991_v34  ;;  %v7510_v1 = vld [vmem:[#allocation63_spill] sm:$0xff] }
 0x3a6   : > { %v5091_v14 = vpop.f32.mrb[136].mxu1 }
 0x3a7   : > { %v2996_v57 = vadd.f32 %v5091_v14, %v6928_v50  ;;  %v2939_v45 = vpop.f32.mrb[137].mxu1 }
 0x3a8   : > { %v2994_v11 = vadd.f32 %v2939_v45, %v6932_v10  ;;  %v5092_v3 = vpop.f32.mrb[138].mxu1  ;;  %v7511_v45 = vld [vmem:[#allocation64_spill] sm:$0xff] }
 0x3a9   : > { %v2997_v19 = vadd.f32 %v5092_v3, %v6935_v18  ;;  %v2942_v44 = vpop.f32.mrb[139].mxu1  ;;  %v7064_v6 = vadd.f32 %v6717_v20, %v2996_v57 }
 0x3aa   : > { %v2995_v43 = vadd.f32 %v2942_v44, %v6938_v8  ;;  %v7068_v47 = vadd.f32 %v6722_v49, %v2994_v11  ;;  %v7506_v8 = vld [vmem:[#allocation59_spill] sm:$0xff] }
 0x3ab   : > { %v7071_v27 = vadd.f32 %v6724_v32, %v2997_v19  ;;  %v7507_v32 = vld [vmem:[#allocation60_spill] sm:$0xff]  ;;  %v7512_v19 = vld [vmem:[#allocation65_spill] sm:$0xff] }
 0x3ac   : > { %v7074_v50 = vadd.f32 %v7505_v26, %v2995_v43  ;;  %v7513_v43 = vld [vmem:[#allocation66_spill] sm:$0xff] }
 0x3ae   : > { %v5095_v17 = vpop.f32.mrb[140].mxu1 }
 0x3af   : > { %v3000_v10 = vadd.f32 %v5095_v17, %v6944_v51  ;;  %v2955_v9 = vpop.f32.mrb[141].mxu1 }
 0x3b0   : > { %v2998_v18 = vadd.f32 %v2955_v9, %v6948_v35  ;;  %v5096_v12 = vpop.f32.mrb[142].mxu1 }
 0x3b1   : > { %v3001_v20 = vadd.f32 %v5096_v12, %v6951_v13  ;;  %v2958_v15 = vpop.f32.mrb[143].mxu1  ;;  %v7080_v55 = vadd.f32 %v7506_v8, %v3000_v10 }
 0x3b2   : > { %v2999_v49 = vadd.f32 %v2958_v15, %v6954_v16  ;;  %v7084_v42 = vadd.f32 %v7507_v32, %v2998_v18 }
 0x3b3   : > { %v7087_v56 = vadd.f32 %v7508_v53, %v3001_v20  ;;  %v7517_v53 = vld [vmem:[#allocation70_spill] sm:$0xff] }
 0x3b4   : > { %v7090_v51 = vadd.f32 %v7509_v33, %v2999_v49  ;;  %v7516_v49 = vld [vmem:[#allocation69_spill] sm:$0xff] }
 0x3b6   : > { %v5163_v59 = vpop.f32.mrb[144].mxu1 }
 0x3b7   : > { %v3633_v35 = vadd.f32 %v5163_v59, %v6968_v5  ;;  %v3504_v62 = vpop.f32.mrb[145].mxu1 }
 0x3b8   : > { %v3631_v13 = vadd.f32 %v3504_v62, %v6972_v4  ;;  %v5164_v34 = vpop.f32.mrb[146].mxu1 }
 0x3b9   : > { %v7095_v14 = vadd.f32 %v7510_v1, %v3633_v35  ;;  %v3634_v16 = vadd.f32 %v5164_v34, %v6975_v23  ;;  %v3507_v57 = vpop.f32.mrb[147].mxu1  ;;  %v7514_v23 = vld [vmem:[#allocation67_spill] sm:$0xff] }
 0x3ba   : > { %v7099_v11 = vadd.f32 %v7511_v45, %v3631_v13  ;;  %v3632_v3 = vadd.f32 %v3507_v57, %v6978_v40  ;;  %v7515_v40 = vld [vmem:[#allocation68_spill] sm:$0xff]  ;;  %v7520_v45 = vld [vmem:[#allocation25_spill] sm:$0xff] }
 0x3bb   : > { %v7103_v44 = vadd.f32 %v7512_v19, %v3634_v16  ;;  %v7521_v19 = vld [vmem:[#allocation26_spill] sm:$0xff] }
 0x3bc   : > { %v7106_v5 = vadd.f32 %v7513_v43, %v3632_v3 }
 0x3be   : > { %v5167_v26 = vpop.f32.mrb[148].mxu1 }
 0x3bf   : > { %v3637_v4 = vadd.f32 %v5167_v26, %v6984_v41  ;;  %v3520_v17 = vpop.f32.mrb[149].mxu1 }
 0x3c0   : > { %v3635_v10 = vadd.f32 %v3520_v17, %v6988_v22  ;;  %v5168_v9 = vpop.f32.mrb[150].mxu1 }
 0x3c1   : > { %v7111_v18 = vadd.f32 %v7514_v23, %v3637_v4  ;;  %v3638_v12 = vadd.f32 %v5168_v9, %v6991_v29  ;;  %v3523_v20 = vpop.f32.mrb[151].mxu1  ;;  %v7518_v29 = vld [vmem:[#allocation71_spill] sm:$0xff] }
 0x3c2   : > { %v7115_v15 = vadd.f32 %v7515_v40, %v3635_v10  ;;  %v3636_v8 = vadd.f32 %v3523_v20, %v6994_v2  ;;  %v7519_v2 = vld [vmem:[#allocation24_spill] sm:$0xff]  ;;  %v7524_v40 = vld [vmem:[#allocation29_spill] sm:$0xff] }
 0x3c3   : > { %v7119_v32 = vadd.f32 %v7516_v49, %v3638_v12  ;;  %v7525_v49 = vld [vmem:[#allocation30_spill] sm:$0xff] }
 0x3c4   : > { %v7122_v41 = vadd.f32 %v7517_v53, %v3636_v8 }
 0x3c6   : > { %v5171_v33 = vpop.f32.mrb[152].mxu1 }
 0x3c7   : > { %v3641_v22 = vadd.f32 %v5171_v33, %v7000_v28  ;;  %v3536_v59 = vpop.f32.mrb[153].mxu1 }
 0x3c8   : > { %v3639_v35 = vadd.f32 %v3536_v59, %v7004_v46  ;;  %v5172_v62 = vpop.f32.mrb[154].mxu1 }
 0x3c9   : > { %v7127_v13 = vadd.f32 %v7518_v29, %v3641_v22  ;;  %v3642_v34 = vadd.f32 %v5172_v62, %v7007_v61  ;;  %v3539_v1 = vpop.f32.mrb[155].mxu1  ;;  %v7522_v61 = vld [vmem:[#allocation27_spill] sm:$0xff] }
 0x3ca   : > { %v7131_v16 = vadd.f32 %v7519_v2, %v3639_v35  ;;  %v3640_v57 = vadd.f32 %v3539_v1, %v7010_v30  ;;  %v7523_v30 = vld [vmem:[#allocation28_spill] sm:$0xff]  ;;  %v7528_v2 = vld [vmem:[#allocation33_spill] sm:$0xff] }
 0x3cb   : > { %v7135_v3 = vadd.f32 %v7520_v45, %v3642_v34  ;;  %v7529_v45 = vld [vmem:[#allocation34_spill] sm:$0xff] }
 0x3cc   : > { %v7138_v28 = vadd.f32 %v7521_v19, %v3640_v57 }
 0x3ce   : > { %v5175_v43 = vpop.f32.mrb[156].mxu1 }
 0x3cf   : > { %v3645_v46 = vadd.f32 %v5175_v43, %v7016_v24  ;;  %v3552_v26 = vpop.f32.mrb[157].mxu1 }
 0x3d0   : > { %v3643_v4 = vadd.f32 %v3552_v26, %v7020_v60  ;;  %v5176_v17 = vpop.f32.mrb[158].mxu1 }
 0x3d1   : > { %v7143_v10 = vadd.f32 %v7522_v61, %v3645_v46  ;;  %v3646_v9 = vadd.f32 %v5176_v17, %v7023_v0  ;;  %v3555_v23 = vpop.f32.mrb[159].mxu1  ;;  %v7526_v0 = vld [vmem:[#allocation31_spill] sm:$0xff] }
 0x3d2   : > { %v7147_v12 = vadd.f32 %v7523_v30, %v3643_v4  ;;  %v3644_v20 = vadd.f32 %v3555_v23, %v7026_v63  ;;  %v7527_v63 = vld [vmem:[#allocation32_spill] sm:$0xff]  ;;  %v7532_v30 = vld [vmem:[#allocation37_spill] sm:$0xff] }
 0x3d3   : > { %v7151_v8 = vadd.f32 %v7524_v40, %v3646_v9  ;;  %v7533_v40 = vld [vmem:[#allocation38_spill] sm:$0xff] }
 0x3d4   : > { %v7154_v24 = vadd.f32 %v7525_v49, %v3644_v20 }
 0x3d6   : > { %v5179_v53 = vpop.f32.mrb[160].mxu1 }
 0x3d7   : > { %v3649_v60 = vadd.f32 %v5179_v53, %v7032_v25  ;;  %v3568_v33 = vpop.f32.mrb[161].mxu1 }
 0x3d8   : > { %v3647_v22 = vadd.f32 %v3568_v33, %v7036_v38  ;;  %v5180_v59 = vpop.f32.mrb[162].mxu1 }
 0x3d9   : > { %v7159_v35 = vadd.f32 %v7526_v0, %v3649_v60  ;;  %v3650_v62 = vadd.f32 %v5180_v59, %v7039_v54  ;;  %v3571_v29 = vpop.f32.mrb[163].mxu1  ;;  %v7530_v54 = vld [vmem:[#allocation35_spill] sm:$0xff] }
 0x3da   : > { %v7163_v34 = vadd.f32 %v7527_v63, %v3647_v22  ;;  %v3648_v1 = vadd.f32 %v3571_v29, %v7042_v36  ;;  %v7531_v36 = vld [vmem:[#allocation36_spill] sm:$0xff]  ;;  %v7534_v22 = vld [vmem:[#allocation39_spill] sm:$0xff]  ;;  %v7536_v63 = vld [vmem:[#allocation41_spill] sm:$0xff] }
 0x3db   : > { %v7167_v57 = vadd.f32 %v7528_v2, %v3650_v62  ;;  %v7535_v62 = vld [vmem:[#allocation40_spill] sm:$0xff]  ;;  %v4225_v2 = vlaneseq }
 0x3dc   : > { %v7170_v25 = vadd.f32 %v7529_v45, %v3648_v1  ;;  %v7537_v45 = vld [vmem:[#allocation42_spill] sm:$0xff] }
 0x3de   : > { %v5183_v19 = vpop.f32.mrb[164].mxu1 }
 0x3df   : > { %v3653_v38 = vadd.f32 %v5183_v19, %v7048_v39  ;;  %v3584_v43 = vpop.f32.mrb[165].mxu1 }
 0x3e0   : > { %v3651_v46 = vadd.f32 %v3584_v43, %v7052_v37  ;;  %v5184_v26 = vpop.f32.mrb[166].mxu1 }
 0x3e1   : > { %v7175_v4 = vadd.f32 %v7530_v54, %v3653_v38  ;;  %v3654_v17 = vadd.f32 %v5184_v26, %v7055_v21  ;;  %v3587_v61 = vpop.f32.mrb[167].mxu1 }
 0x3e2   : > { %v4037_v9 = vadd.f32 %v7531_v36, %v3651_v46  ;;  %v3652_v23 = vadd.f32 %v3587_v61, %v7058_v58 }
 0x3e3   : > { %v4040_v20 = vadd.f32 %v7532_v30, %v3654_v17 }
 0x3e4   : > { %v4038_v49 = vadd.f32 %v7533_v40, %v3652_v23 }
 0x3e6   : > { %v5187_v53 = vpop.f32.mrb[168].mxu1 }
 0x3e7   : > { %v3657_v39 = vadd.f32 %v5187_v53, %v7064_v6  ;;  %v3600_v60 = vpop.f32.mrb[169].mxu1 }
 0x3e8   : > { %v3655_v37 = vadd.f32 %v3600_v60, %v7068_v47  ;;  %v5188_v33 = vpop.f32.mrb[170].mxu1  ;;  %v4226_v47 = vshrl.u32 %v4225_v2, 7 }
 0x3e9   : > { %v4043_v59 = vadd.f32 %v7534_v22, %v3657_v39  ;;  %v3658_v21 = vadd.f32 %v5188_v33, %v7071_v27  ;;  %v3603_v0 = vpop.f32.mrb[171].mxu1 }
 0x3ea   : > { %v4041_v29 = vadd.f32 %v7535_v62, %v3655_v37  ;;  %v3656_v58 = vadd.f32 %v3603_v0, %v7074_v50  ;;  %v4227_v23 = vsub.s32 0, %v4226_v47 }
 0x3eb   : > { %v4044_v1 = vadd.f32 %v7536_v63, %v3658_v21 }
 0x3ec   : > { %v4042_v19 = vadd.f32 %v7537_v45, %v3656_v58 }
 0x3ee   : > { %v5191_v38 = vpop.f32.mrb[172].mxu1 }
 0x3ef   : > { %v3661_v6 = vadd.f32 %v5191_v38, %v7080_v55  ;;  %v3616_v43 = vpop.f32.mrb[173].mxu1 }
 0x3f0   : > { %v3659_v46 = vadd.f32 %v3616_v43, %v7084_v42  ;;  %v5192_v26 = vpop.f32.mrb[174].mxu1 }
 0x3f1   : > { %v3662_v27 = vadd.f32 %v5192_v26, %v7087_v56  ;;  %v4047_v54 = vadd.f32 %v6956_v48, %v3661_v6  ;;  %v3619_v17 = vpop.f32.mrb[175].mxu1 }
 0x3f2   : > { %v3660_v50 = vadd.f32 %v3619_v17, %v7090_v51  ;;  %v4045_v61 = vadd.f32 %v6958_v31, %v3659_v46 }
 0x3f3   : > { %v4048_v36 = vadd.f32 %v6961_v7, %v3662_v27 }
 0x3f4   : > { %v4046_v30 = vadd.f32 %v6964_v52, %v3660_v50 }
 0x3f6   : > { %v4219_v55 = vpop.f32.mrb[176].mxu1 }
 0x3f7   : > { %v4228_v40 = vrot.slane %v4219_v55, %v4227_v23  ;;  %v5259_v53 = vpop.f32.mrb[177].mxu1 }
 0x3f8   : > { %v4222_v39 = vpop.f32.mrb[178].mxu1 }
 0x3f9   : > { %v4229_v42 = vadd.f32 %v4228_v40, %v7099_v11  ;;  %v4230_v56 = vadd.f32 %v4228_v40, %v7106_v5  ;;  %v4231_v48 = vadd.f32 %v4228_v40, %v7095_v14  ;;  %v4232_v51 = vadd.f32 %v4228_v40, %v7103_v44  ;;  %v5260_v60 = vpop.f32.mrb[179].mxu1 }
 0x3fa   : > { %v4233_v31 = vadd.f32 %v4228_v40, %v7115_v15  ;;  %v4234_v7 = vadd.f32 %v4228_v40, %v7122_v41  ;;  %v4235_v52 = vadd.f32 %v4228_v40, %v7111_v18  ;;  %v4236_v37 = vadd.f32 %v4228_v40, %v7119_v32 }
 0x3fb   : > { %v4237_v33 = vadd.f32 %v4228_v40, %v7131_v16  ;;  %v4238_v11 = vadd.f32 %v4228_v40, %v7138_v28  ;;  %v4239_v5 = vadd.f32 %v4228_v40, %v7127_v13  ;;  %v4240_v22 = vadd.f32 %v4228_v40, %v7135_v3  ;;  %v7222_v13 = vld [vmem:[%s7347_s5] ss:$0 sm:$0xff] }
 0x3fc   : > { %v4241_v14 = vadd.f32 %v4228_v40, %v7147_v12  ;;  %v4242_v44 = vadd.f32 %v4228_v40, %v7154_v24  ;;  %v4243_v15 = vadd.f32 %v4228_v40, %v7143_v10  ;;  %v4244_v41 = vadd.f32 %v4228_v40, %v7151_v8 }
 0x3fd   : > { %v4245_v18 = vadd.f32 %v4228_v40, %v7163_v34  ;;  %v4246_v32 = vadd.f32 %v4228_v40, %v7170_v25  ;;  %v4247_v16 = vadd.f32 %v4228_v40, %v7159_v35  ;;  %v4248_v28 = vadd.f32 %v4228_v40, %v7167_v57 }
 0x3fe   : > { %v4249_v3 = vadd.f32 %v4228_v40, %v4037_v9  ;;  %v4250_v12 = vadd.f32 %v4228_v40, %v4038_v49  ;;  %v4251_v10 = vadd.f32 %v4228_v40, %v7175_v4  ;;  %v4252_v24 = vadd.f32 %v4228_v40, %v4040_v20 }
 0x3ff   : > { %v4253_v8 = vadd.f32 %v4228_v40, %v4041_v29  ;;  %v4254_v21 = vadd.f32 %v4228_v40, %v4042_v19  ;;  %v4255_v0 = vadd.f32 %v4228_v40, %v4043_v59  ;;  %v4256_v34 = vadd.f32 %v4228_v40, %v4044_v1 }
 0x400   : > { %v4257_v62 = vadd.f32 %v4228_v40, %v4045_v61  ;;  %v4258_v25 = vadd.f32 %v4228_v40, %v4046_v30  ;;  %v4259_v58 = vadd.f32 %v4228_v40, %v4047_v54  ;;  %v4260_v35 = vadd.f32 %v4228_v40, %v4048_v36 }
 0x401   : > { %v4268_v57 = vadd.f32 %v7222_v13, %v4229_v42  ;;  %v4269_v63 = vadd.f32 %v7222_v13, %v4230_v56  ;;  %v4270_v2 = vadd.f32 %v7222_v13, %v4231_v48  ;;  %v4271_v9 = vadd.f32 %v7222_v13, %v4232_v51 }
 0x402   : > { %v4272_v49 = vadd.f32 %v7222_v13, %v4233_v31  ;;  %v4273_v4 = vadd.f32 %v7222_v13, %v4234_v7  ;;  %v4274_v20 = vadd.f32 %v7222_v13, %v4235_v52  ;;  %v4275_v59 = vadd.f32 %v7222_v13, %v4236_v37 }
 0x403   : > { %v4276_v29 = vadd.f32 %v7222_v13, %v4237_v33  ;;  %v4277_v1 = vadd.f32 %v7222_v13, %v4238_v11  ;;  %v4278_v45 = vadd.f32 %v7222_v13, %v4239_v5  ;;  %v4279_v19 = vadd.f32 %v7222_v13, %v4240_v22  ;;  %4300 = vst [vmem:[%s7237_s10] sm:$0xff] %v4268_v57 }
 0x404   : > { %4301 = vst [vmem:[%s7237_s10 + $0x8] sm:$0xff] %v4269_v63  ;;  %4302 = vst [vmem:[%s7237_s10 + $0x10] sm:$0xff] %v4270_v2  ;;  %v4280_v38 = vadd.f32 %v7222_v13, %v4241_v14  ;;  %v4281_v6 = vadd.f32 %v7222_v13, %v4242_v44  ;;  %v4282_v43 = vadd.f32 %v7222_v13, %v4243_v15 }
 0x405   : > { %4303 = vst [vmem:[%s7237_s10 + $0x18] sm:$0xff] %v4271_v9  ;;  %v4283_v47 = vadd.f32 %v7222_v13, %v4244_v41  ;;  %4304 = vst [vmem:[%s7237_s10 + $0x20] sm:$0xff] %v4272_v49  ;;  %v4284_v46 = vadd.f32 %v7222_v13, %v4245_v18  ;;  %v4285_v26 = vadd.f32 %v7222_v13, %v4246_v32 }
 0x406   : > { %4305 = vst [vmem:[%s7237_s10 + $0x28] sm:$0xff] %v4273_v4  ;;  %4306 = vst [vmem:[%s7237_s10 + $0x30] sm:$0xff] %v4274_v20  ;;  %v4286_v27 = vadd.f32 %v7222_v13, %v4247_v16  ;;  %v4287_v54 = vadd.f32 %v7222_v13, %v4248_v28  ;;  %v4288_v17 = vadd.f32 %v7222_v13, %v4249_v3 }
 0x407   : > { %4307 = vst [vmem:[%s7237_s10 + $0x38] sm:$0xff] %v4275_v59  ;;  %4308 = vst [vmem:[%s7237_s10 + $0x40] sm:$0xff] %v4276_v29  ;;  %v4289_v50 = vadd.f32 %v7222_v13, %v4250_v12  ;;  %v4290_v61 = vadd.f32 %v7222_v13, %v4251_v10  ;;  %v4291_v36 = vadd.f32 %v7222_v13, %v4252_v24 }
 0x408   : > { %4309 = vst [vmem:[%s7237_s10 + $0x48] sm:$0xff] %v4277_v1  ;;  %4310 = vst [vmem:[%s7237_s10 + $0x50] sm:$0xff] %v4278_v45  ;;  %v4292_v23 = vadd.f32 %v7222_v13, %v4253_v8  ;;  %v4293_v30 = vadd.f32 %v7222_v13, %v4254_v21  ;;  %v4294_v55 = vadd.f32 %v7222_v13, %v4255_v0 }
 0x409   : > { %4311 = vst [vmem:[%s7237_s10 + $0x58] sm:$0xff] %v4279_v19  ;;  %4312 = vst [vmem:[%s7237_s10 + $0x60] sm:$0xff] %v4280_v38  ;;  %v4295_v40 = vadd.f32 %v7222_v13, %v4256_v34  ;;  %v4296_v53 = vadd.f32 %v7222_v13, %v4257_v62  ;;  %v4297_v39 = vadd.f32 %v7222_v13, %v4258_v25 }
 0x40a   : > { %4313 = vst [vmem:[%s7237_s10 + $0x68] sm:$0xff] %v4281_v6  ;;  %4314 = vst [vmem:[%s7237_s10 + $0x70] sm:$0xff] %v4282_v43  ;;  %v4298_v42 = vadd.f32 %v7222_v13, %v4259_v58  ;;  %v4299_v56 = vadd.f32 %v7222_v13, %v4260_v35 }
 0x40b   : > { %4315 = vst [vmem:[%s7237_s10 + $0x78] sm:$0xff] %v4283_v47  ;;  %4316 = vst [vmem:[%s7237_s10 + $0x80] sm:$0xff] %v4284_v46 }
 0x40c   : > { %4317 = vst [vmem:[%s7237_s10 + $0x88] sm:$0xff] %v4285_v26  ;;  %4318 = vst [vmem:[%s7237_s10 + $0x90] sm:$0xff] %v4286_v27 }
 0x40d   : > { %4319 = vst [vmem:[%s7237_s10 + $0x98] sm:$0xff] %v4287_v54  ;;  %4320 = vst [vmem:[%s7237_s10 + $0xa0] sm:$0xff] %v4288_v17 }
 0x40e   : > { %4321 = vst [vmem:[%s7237_s10 + $0xa8] sm:$0xff] %v4289_v50  ;;  %4322 = vst [vmem:[%s7237_s10 + $0xb0] sm:$0xff] %v4290_v61 }
 0x40f   : > { %4323 = vst [vmem:[%s7237_s10 + $0xb8] sm:$0xff] %v4291_v36  ;;  %4324 = vst [vmem:[%s7237_s10 + $0xc0] sm:$0xff] %v4292_v23 }
 0x410   : > { %4325 = vst [vmem:[%s7237_s10 + $0xc8] sm:$0xff] %v4293_v30  ;;  %4326 = vst [vmem:[%s7237_s10 + $0xd0] sm:$0xff] %v4294_v55 }
 0x411   : > { %4327 = vst [vmem:[%s7237_s10 + $0xd8] sm:$0xff] %v4295_v40  ;;  %4328 = vst [vmem:[%s7237_s10 + $0xe0] sm:$0xff] %v4296_v53 }
 0x412   : > { %4329 = vst [vmem:[%s7237_s10 + $0xe8] sm:$0xff] %v4297_v39  ;;  %4330 = vst [vmem:[%s7237_s10 + $0xf0] sm:$0xff] %v4298_v42 }
 0x413   : > { %4331 = vst [vmem:[%s7237_s10 + $0xf8] sm:$0xff] %v4299_v56 }
 0x414   : > { %5633 = shalt.err (!%p5630_p4)
}
 0x415   : > { %s5634_s27 = scalar_lea.hbm %s7280_s7, 4096  ;;  %s5638_s20 = scalar_lea.hbm %s7348_s6, 8192 }
 0x416   : > { %p5635_p9 = scmp.ne.s32.totalorder %s7280_s7, %s5634_s27  ;;  %p5639_p8 = scmp.lt.u32.totalorder %s7280_s7, %s7348_s6 }
 0x417   : > { %p5640_p13 = scmp.lt.u32.totalorder %s5638_s20, %s5634_s27  ;;  %p5642_p10 = scmp.lt.u32.totalorder %s5634_s27, %s7280_s7 }
 0x418   : > { %p5636_p0 = pnand %p5635_p9, %p5893_p5 }
 0x419   : > { %p5641_p6 = por %p5640_p13, %p5639_p8 }
 0x41a   : > { %p5637_p11 = pneg %p5636_p0 }
 0x41b   : > { %p5643_p3 = por %p5642_p10, %p5641_p6 }
 0x41d   : > { %p5644_p7 = pnand %p5643_p3, %p5637_p11 }
 0x41f   : > { %5647 = shalt.err (!%p5644_p7)
}
 0x420   : > { %s5708_s1 = smov 128   ;;  %s5709_s25 = smov 8  }
 0x421   : > { %5291 = dma.vmem_to_hbm [thread:$0]  (%p5893_p5), %s7282_s26, 4096, %s7280_s7, %s4333_s8, %s5708_s1, %s5708_s1, %s5709_s25  }
 0x422 PF: > { %s4361_s13 = sand.u32 1, %s5682_s21   ;;  %p7538_p12 = scmp.ne.s32.totalorder %s7357_s28, 0 }
 0x423   : > { %p7539_p2 = scmp.ge.s32.totalorder %s5694_s24, 2  ;;  %s4362_s14 = scalar_lea.sflag [#allocation5], %s4361_s13 }
 0x425   : > { %p5308_p1 = pnand %p7539_p2, %p7538_p12 }
 0x427   : > { %5677 = dma.done.wait (!%p5308_p1), %s4362_s14, 4096  }
 0x428   : > { %5679 = vsyncadd (!%p5308_p1), %s4362_s14, 4294963200  ;;  %p21_p4 = scmp.ge.s32.totalorder %s5858_s12, 4   ;;  %s7540_s21 = smov %s5686_s22 }
 0x429   : > { %s7541_s22 = smov %s5690_s23  ;;  %s7542_s23 = smov %s5889_s30 }
 0x42a   : > { %s7543_s24 = smov %s5858_s12  ;;  %23 = sbr.rel (!%p21_p4) target bundleno = 9 (0x9), region = 112 }
 0x431   :  { %4367 = vsyncpa [#allocation4], 1 }
 0x432   :  { %4369 = vsyncpa [#allocation4 + $0x1], 1 }
 0x433   :  { %4370 = vsyncpa [#allocation7], 1 }
 0x434   :  { %4371 = vsyncpa [#allocation10], 1 }
 0x435   :  { %4372 = vsyncpa [#allocation5], 1 }
 0x436   :  { %4374 = vsyncpa [#allocation5 + $0x1], 1 }

</bundles_post_ra>
